<compile_context>
chip_gen: v5e
topology: v5e:2x2
jax: 0.10.0
libtpu: 0.0.40
codegen_flags: <defaults>
</compile_context>

<pallas_src>
import numpy as np
import jax
import jax.numpy as jnp
from jax.experimental import pallas as pl
from jax.experimental.pallas import tpu as pltpu

KH = KW = 3          # conv kernel size
POOL = 8             # AvgPool2d(kernel_size=8, stride=8)
NCLS_PAD = 128       # logits lane padding -> unmasked 128-lane stores


def _fused_kernel(patches_ref, wconv_ref, bconv_ref, wfc_ref, bfc_ref,
                  pooled_ref, logits_ref):
    """One grid step == one batch tile of B samples.

    patches_ref: (B*H*W, 9*Cin)          bf16  im2col rows ordered (p, b, dh, dw)
                                                (p = pool-window index)
    wconv_ref  : (9*Cin, Cout)           bf16  conv taps, rows (kh, kw, cin)
    bconv_ref  : (1, Cout)               f32
    wfc_ref    : (NPOOL, Cout, NCLS_PAD) bf16  fc weight per pool window
    bfc_ref    : (1, NCLS_PAD)           f32
    pooled_ref : (NPOOL*B, Cout)         f32   pooled features, rows (p, b)
    logits_ref : (B, NCLS_PAD)           f32
    """
    M = patches_ref.shape[0]
    npool, cout, _ = wfc_ref.shape
    b = logits_ref.shape[0]
    window = M // (npool * b)            # = POOL*POOL pixels per pool window

    # --- 3x3 "same" conv: one im2col MXU dot, f32 accumulation ---
    z = jnp.dot(patches_ref[...], wconv_ref[...],
                preferred_element_type=jnp.float32)          # (M, Cout)

    # --- bias + ReLU (VPU) ---
    relu = jnp.maximum(z + bconv_ref[...], 0.0)

    # --- AvgPool2d(8,8): each pool window's 64 pixels are contiguous rows
    #     (host-side row ordering), so pooling is a vreg-aligned reshape+sum ---
    pooled = relu.reshape(npool * b, window, cout).sum(axis=1) * (1.0 / window)
    pooled_ref[...] = pooled                                  # rows (p, b)
    # NOTE: this writeback could be dropped entirely when return_feats=False.

    # --- Flatten + Linear fc: one batched MXU einsum over pool windows ---
    p3 = pooled.reshape(npool, b, cout).astype(jnp.bfloat16)
    logits = jnp.einsum("pbc,pcn->pbn", p3, wfc_ref[...],
                        preferred_element_type=jnp.float32).sum(axis=0)
    logits_ref[...] = logits + bfc_ref[...]


def base_model_forward(x_nchw, params, return_feats=False, b_tile=16):
    """Pallas implementation of BaseModel.forward (NCHW input, like PyTorch)."""
    N, Cin, H, W = x_nchw.shape
    Cout = params["conv_w"].shape[0]
    nclass = params["fc_w"].shape[0]
    PH, PW = H // POOL, W // POOL
    NPOOL = PH * PW
    HW = H * W
    K9 = KH * KW * Cin
    assert H % POOL == 0 and W % POOL == 0
    assert N % b_tile == 0, "batch must be divisible by the batch tile"
    G = N // b_tile
    ncls_pad = max(NCLS_PAD, ((nclass + 127) // 128) * 128)

    # --- host-side im2col (pure layout plumbing, plain XLA ops) ---
    # NCHW -> NHWC, bf16 for the MXU, 1px zero halo (conv padding=1), 9 shifted
    # views concatenated along channels -> columns ordered (kh, kw, cin).
    # TODO(synk): at backbone scale do the halo/im2col inside the kernel (or in
    # the tile DMA) instead of materializing the 9x-expanded patches in HBM.
    x_nhwc = jnp.transpose(x_nchw, (0, 2, 3, 1)).astype(jnp.bfloat16)
    xpad = jnp.pad(x_nhwc, ((0, 0), (1, 1), (1, 1), (0, 0)))
    patches = jnp.concatenate(
        [xpad[:, kh:kh + H, kw:kw + W, :] for kh in range(KH) for kw in range(KW)],
        axis=-1)                                             # (N, H, W, 9*Cin)
    # Re-order rows to (g, ph, pw, b, dh, dw) so every pool window's 64 pixels
    # are contiguous rows inside a batch tile (pooling becomes reshape+sum).
    patches = patches.reshape(G, b_tile, PH, POOL, PW, POOL, K9)
    patches = jnp.transpose(patches, (0, 2, 4, 1, 3, 5, 6))
    patches = patches.reshape(N * HW, K9)

    # conv weight (Cout, Cin, 3, 3) -> (9*Cin, Cout), rows (kh, kw, cin), bf16
    wconv = jnp.transpose(params["conv_w"], (2, 3, 1, 0)).reshape(K9, Cout)
    wconv = wconv.astype(jnp.bfloat16)
    bconv = params["conv_b"].reshape(1, Cout).astype(jnp.float32)

    # fc weight (nclass, Cout*PH*PW) in PyTorch NCHW-flatten order (c, ph, pw)
    # -> (NPOOL, Cout, ncls_pad), bf16, classes zero-padded to 128 lanes
    wfc = params["fc_w"].T.reshape(Cout, PH, PW, nclass)
    wfc = jnp.transpose(wfc, (1, 2, 0, 3)).reshape(NPOOL, Cout, nclass)
    wfc = jnp.pad(wfc, ((0, 0), (0, 0), (0, ncls_pad - nclass))).astype(jnp.bfloat16)
    bfc = jnp.pad(params["fc_b"], (0, ncls_pad - nclass)).reshape(1, ncls_pad)
    bfc = bfc.astype(jnp.float32)

    pooled_pb, logits_pad = pl.pallas_call(
        _fused_kernel,
        grid=(G,),
        in_specs=[
            pl.BlockSpec((b_tile * HW, K9),            lambda g: (g, 0)),
            pl.BlockSpec((K9, Cout),                   lambda g: (0, 0)),
            pl.BlockSpec((1, Cout),                    lambda g: (0, 0)),
            pl.BlockSpec((NPOOL, Cout, ncls_pad),      lambda g: (0, 0, 0)),
            pl.BlockSpec((1, ncls_pad),                lambda g: (0, 0)),
        ],
        out_specs=[
            pl.BlockSpec((None, NPOOL * b_tile, Cout), lambda g: (g, 0, 0)),
            pl.BlockSpec((None, b_tile, ncls_pad),     lambda g: (g, 0, 0)),
        ],
        out_shape=[
            jax.ShapeDtypeStruct((G, NPOOL * b_tile, Cout), jnp.float32),
            jax.ShapeDtypeStruct((G, b_tile, ncls_pad), jnp.float32),
        ],
        compiler_params=pltpu.CompilerParams(
            dimension_semantics=("parallel",),        # G >= 2 -> both TCs on v7x
            vmem_limit_bytes=32 * 1024 * 1024),       # raise v5e's 16MiB default
    )(patches, wconv, bconv, wfc, bfc)

    logits = logits_pad.reshape(N, ncls_pad)[:, :nclass]

    # pooled_pb[g, (ph*PW+pw)*b_tile + b, c] -> PyTorch NCHW flatten (c, ph, pw)
    pooled = pooled_pb.reshape(G, PH, PW, b_tile, Cout)
    feat = jnp.transpose(pooled, (0, 3, 4, 1, 2)).reshape(N, Cout * PH * PW)

    if return_feats:
        return feat, logits
    return logits


def reference_forward(x_nchw, params):
    """Pure-JAX reference mirroring the PyTorch module semantics."""
    y = jax.lax.conv_general_dilated(
        x_nchw, params["conv_w"], window_strides=(1, 1),
        padding=((1, 1), (1, 1)), dimension_numbers=("NCHW", "OIHW", "NCHW"))
    y = y + params["conv_b"][None, :, None, None]
    y = jnp.maximum(y, 0.0)
    N, C, H, W = y.shape
    y = y.reshape(N, C, H // POOL, POOL, W // POOL, POOL).mean(axis=(3, 5))
    feat = y.reshape(N, -1)
    logits = feat @ params["fc_w"].T + params["fc_b"]
    return feat, logits


if __name__ == "__main__":
    key = jax.random.PRNGKey(0)
    k1, k2, k3, k4, k5 = jax.random.split(key, 5)

    N, Cin, H, W = 32, 3, 16, 16     # small CIFAR-like batch (NCHW, like PyTorch)
    Cout, nclass = 16, 10            # conv width / cifar10-style classes
    F = Cout * (H // POOL) * (W // POOL)   # fc input dim = 64

    params = {
        "conv_w": jax.random.normal(k1, (Cout, Cin, KH, KW), jnp.float32) * 0.1,
        "conv_b": jax.random.normal(k2, (Cout,), jnp.float32) * 0.1,
        "fc_w":   jax.random.normal(k3, (nclass, F), jnp.float32) * 0.1,
        "fc_b":   jax.random.normal(k4, (nclass,), jnp.float32) * 0.1,
    }
    x = jax.random.normal(k5, (N, Cin, H, W), jnp.float32)

    feat, logits = base_model_forward(x, params, return_feats=True, b_tile=16)
    jax.block_until_ready(logits)

    feat_r, logits_r = reference_forward(x, params)
    # bf16 matmul operands (f32 accumulation) -> slightly relaxed tolerance
    np.testing.assert_allclose(np.asarray(feat), np.asarray(feat_r), rtol=2e-2, atol=2e-2)
    np.testing.assert_allclose(np.asarray(logits), np.asarray(logits_r), rtol=2e-2, atol=2e-2)

    print("KERNEL_OK")
</pallas_src>

<mosaic_0001>
module attributes {stable_mosaic.version = 11 : i64} {
  func.func @_fused_kernel(%arg0: i32, %arg1: memref<4096x27xbf16, #tpu.memory_space<vmem>>, %arg2: memref<27x16xbf16, #tpu.memory_space<vmem>>, %arg3: memref<1x16xf32, #tpu.memory_space<vmem>>, %arg4: memref<4x16x128xbf16, #tpu.memory_space<vmem>>, %arg5: memref<1x128xf32, #tpu.memory_space<vmem>>, %arg6: memref<1x64x16xf32, #tpu.memory_space<vmem>>, %arg7: memref<1x16x128xf32, #tpu.memory_space<vmem>>) attributes {dimension_semantics = [#tpu.dimension_semantics<parallel>], iteration_bounds = array<i64: 2>, scalar_prefetch = 0 : i64, scratch_operands = 0 : i64, tpu.core_type = #tpu.core_type<tc>, window_params = [{transform_indices = @transform_0, window_bounds = array<i64: 4096, 27>}, {pipeline_mode = #tpu.pipeline_mode<synchronous>, transform_indices = @transform_1, window_bounds = array<i64: 27, 16>}, {pipeline_mode = #tpu.pipeline_mode<synchronous>, transform_indices = @transform_2, window_bounds = array<i64: 1, 16>}, {pipeline_mode = #tpu.pipeline_mode<synchronous>, transform_indices = @transform_3, window_bounds = array<i64: 4, 16, 128>}, {pipeline_mode = #tpu.pipeline_mode<synchronous>, transform_indices = @transform_4, window_bounds = array<i64: 1, 128>}, {transform_indices = @transform_5, window_bounds = array<i64: 1, 64, 16>}, {transform_indices = @transform_6, window_bounds = array<i64: 1, 16, 128>}]} {
    %c0 = arith.constant 0 : index
    %c0_0 = arith.constant 0 : index
    %0 = vector.load %arg1[%c0, %c0_0] : memref<4096x27xbf16, #tpu.memory_space<vmem>>, vector<4096x27xbf16>
    %c0_1 = arith.constant 0 : index
    %c0_2 = arith.constant 0 : index
    %1 = vector.load %arg2[%c0_1, %c0_2] : memref<27x16xbf16, #tpu.memory_space<vmem>>, vector<27x16xbf16>
    %cst = arith.constant dense<0.000000e+00> : vector<4096x16xf32>
    %2 = tpu.matmul %0, %1, %cst {dimension_numbers = #tpu.dot_dimension_numbers<[1], [0], [0], [1], [0, 0, 1, 1], [], []>} : vector<4096x27xbf16>, vector<27x16xbf16>, vector<4096x16xf32> -> vector<4096x16xf32>
    %c0_3 = arith.constant 0 : index
    %c0_4 = arith.constant 0 : index
    %3 = vector.load %arg3[%c0_3, %c0_4] : memref<1x16xf32, #tpu.memory_space<vmem>>, vector<1x16xf32>
    %4 = vector.broadcast %3 : vector<1x16xf32> to vector<4096x16xf32>
    %5 = arith.addf %2, %4 : vector<4096x16xf32>
    %cst_5 = arith.constant 0.000000e+00 : f32
    %6 = vector.broadcast %cst_5 : f32 to vector<4096x16xf32>
    %7 = arith.maximumf %5, %6 : vector<4096x16xf32>
    %8 = vector.shape_cast %7 : vector<4096x16xf32> to vector<64x64x16xf32>
    %cst_6 = arith.constant dense<0.000000e+00> : vector<64x16xf32>
    %9 = vector.multi_reduction <add>, %8, %cst_6 [1] : vector<64x64x16xf32> to vector<64x16xf32>
    %cst_7 = arith.constant 1.562500e-02 : f32
    %10 = vector.broadcast %cst_7 : f32 to vector<64x16xf32>
    %11 = arith.mulf %9, %10 : vector<64x16xf32>
    %c0_8 = arith.constant 0 : index
    %c0_9 = arith.constant 0 : index
    %c0_10 = arith.constant 0 : index
    %12 = vector.load %arg6[%c0_8, %c0_9, %c0_10] : memref<1x64x16xf32, #tpu.memory_space<vmem>>, vector<1x64x16xf32>
    %13 = vector.shape_cast %12 : vector<1x64x16xf32> to vector<64x16xf32>
    %14 = vector.shape_cast %11 : vector<64x16xf32> to vector<1x64x16xf32>
    tpu.vector_store %arg6[%c0_8, %c0_9, %c0_10], %14 {strides = array<i32>} : memref<1x64x16xf32, #tpu.memory_space<vmem>>, vector<1x64x16xf32>,
    %15 = vector.shape_cast %11 : vector<64x16xf32> to vector<4x16x16xf32>
    %16 = arith.truncf %15 : vector<4x16x16xf32> to vector<4x16x16xbf16>
    %c0_11 = arith.constant 0 : index
    %c0_12 = arith.constant 0 : index
    %c0_13 = arith.constant 0 : index
    %17 = vector.load %arg4[%c0_11, %c0_12, %c0_13] : memref<4x16x128xbf16, #tpu.memory_space<vmem>>, vector<4x16x128xbf16>
    "tpu.trace_start"() <{level = 10 : i32, message = "pbc,pcn->pbn"}> : () -> ()
    %cst_14 = arith.constant dense<0.000000e+00> : vector<4x16x128xf32>
    %18 = tpu.matmul %16, %17, %cst_14 {dimension_numbers = #tpu.dot_dimension_numbers<[2], [1], [1], [2], [0, 0, 0, 1, 1, 2], [0], [0]>} : vector<4x16x16xbf16>, vector<4x16x128xbf16>, vector<4x16x128xf32> -> vector<4x16x128xf32>
    "tpu.trace_stop"() : () -> ()
    %cst_15 = arith.constant dense<0.000000e+00> : vector<16x128xf32>
    %19 = vector.multi_reduction <add>, %18, %cst_15 [0] : vector<4x16x128xf32> to vector<16x128xf32>
    %c0_16 = arith.constant 0 : index
    %c0_17 = arith.constant 0 : index
    %20 = vector.load %arg5[%c0_16, %c0_17] : memref<1x128xf32, #tpu.memory_space<vmem>>, vector<1x128xf32>
    %21 = vector.broadcast %20 : vector<1x128xf32> to vector<16x128xf32>
    %22 = arith.addf %19, %21 : vector<16x128xf32>
    %c0_18 = arith.constant 0 : index
    %c0_19 = arith.constant 0 : index
    %c0_20 = arith.constant 0 : index
    %23 = vector.load %arg7[%c0_18, %c0_19, %c0_20] : memref<1x16x128xf32, #tpu.memory_space<vmem>>, vector<1x16x128xf32>
    %24 = vector.shape_cast %23 : vector<1x16x128xf32> to vector<16x128xf32>
    %25 = vector.shape_cast %22 : vector<16x128xf32> to vector<1x16x128xf32>
    tpu.vector_store %arg7[%c0_18, %c0_19, %c0_20], %25 {strides = array<i32>} : memref<1x16x128xf32, #tpu.memory_space<vmem>>, vector<1x16x128xf32>,
    return
  }
  func.func @transform_0(%arg0: i32) -> (i32, i32) {
    %c0_i32 = arith.constant 0 : i32
    %c0_i32_0 = arith.constant 0 : i32
    return %arg0, %c0_i32 : i32, i32
  }
  func.func @transform_1(%arg0: i32) -> (i32, i32) {
    %c0_i32 = arith.constant 0 : i32
    %c0_i32_0 = arith.constant 0 : i32
    %c0_i32_1 = arith.constant 0 : i32
    return %c0_i32, %c0_i32_0 : i32, i32
  }
  func.func @transform_2(%arg0: i32) -> (i32, i32) {
    %c0_i32 = arith.constant 0 : i32
    %c0_i32_0 = arith.constant 0 : i32
    %c0_i32_1 = arith.constant 0 : i32
    return %c0_i32, %c0_i32_0 : i32, i32
  }
  func.func @transform_3(%arg0: i32) -> (i32, i32, i32) {
    %c0_i32 = arith.constant 0 : i32
    %c0_i32_0 = arith.constant 0 : i32
    %c0_i32_1 = arith.constant 0 : i32
    %c0_i32_2 = arith.constant 0 : i32
    return %c0_i32, %c0_i32_0, %c0_i32_1 : i32, i32, i32
  }
  func.func @transform_4(%arg0: i32) -> (i32, i32) {
    %c0_i32 = arith.constant 0 : i32
    %c0_i32_0 = arith.constant 0 : i32
    %c0_i32_1 = arith.constant 0 : i32
    return %c0_i32, %c0_i32_0 : i32, i32
  }
  func.func @transform_5(%arg0: i32) -> (i32, i32, i32) {
    %c0_i32 = arith.constant 0 : i32
    %c0_i32_0 = arith.constant 0 : i32
    %c0_i32_1 = arith.constant 0 : i32
    return %arg0, %c0_i32, %c0_i32_0 : i32, i32, i32
  }
  func.func @transform_6(%arg0: i32) -> (i32, i32, i32) {
    %c0_i32 = arith.constant 0 : i32
    %c0_i32_0 = arith.constant 0 : i32
    %c0_i32_1 = arith.constant 0 : i32
    return %arg0, %c0_i32, %c0_i32_0 : i32, i32, i32
  }
}

</mosaic_0001>

<bundles_post_ra>
// kernel: tpu_custom_call.1
= control target key start
LH: loop header
LB: loop body
LE: loop exit
PB: predicated region body
PF: predicated region fallthrough
CT: control target
= control target key end

     0   :  { %12 = vsyncpa [#allocation3], 0  ;;  %s10714_s0 = inlined_call_operand.vmem [shape: bf16[8192,27], index: 0, kind: input, shape index: {}]   ;;  %s10715_s1 = inlined_call_operand.vmem [shape: bf16[27,16], index: 1, kind: input, shape index: {}]   ;;  %s10716_s2 = inlined_call_operand.vmem [shape: f32[1,16], index: 2, kind: input, shape index: {}]   ;;  %s10717_s3 = inlined_call_operand.vmem [shape: bf16[4,16,128], index: 3, kind: input, shape index: {}]   ;;  %s10718_s4 = inlined_call_operand.vmem [shape: f32[1,128], index: 4, kind: input, shape index: {}]   ;;  %s10719_s5 = inlined_call_operand.vmem [shape: f32[2,64,16], index: 5, kind: output, shape index: {0}]   ;;  %s10720_s6 = inlined_call_operand.hbm [shape: f32[2,16,128], index: 6, kind: output, shape index: {1}]  }
   0x1   :  { %14 = vsyncpa [#allocation3 + $0x1], 0  ;;  %s8491_s21 = smov 0   ;;  %s8493_s22 = smov 0  }
   0x2   :  { %s8495_s23 = smov 0   ;;  %s8497_s24 = smov 0  }
   0x3 LB: > { %s8512_s25 = sadd.s32 4294967295, %s8451_s24   ;;  %s6747_s26 = sadd.s32 4294967294, %s8451_s24   ;;  %s8451_s24 = sphi %s8497_s24, %s10726_s24   ;;  %s8447_s23 = sphi %s8495_s23, %s10725_s23   ;;  %s8443_s22 = sphi %s8493_s22, %s10724_s22   ;;  %s8439_s21 = sphi %s8491_s21, %s10723_s21  }
   0x4   : > { %s8516_s27 = sadd.s32 1, %s8451_s24   ;;  %s163_s28 = sadd.s32 1, %s8447_s23 }
   0x5   : > { %s160_s29 = ssub.s32 %s8451_s24, %s8516_s27  ;;  %p173_p0 = scmp.ne.s32.totalorder %s8447_s23, %s8443_s22 }
   0x6   : > { %p161_p1 = scmp.eq.s32.totalorder %s160_s29, 0  ;;  %p174_p2 = scmp.eq.s32.totalorder %s8512_s25, 1 }
   0x7   : > { %p179_p3 = scmp.ne.s32.totalorder %s8443_s22, %s8439_s21  ;;  %p180_p4 = scmp.eq.s32.totalorder %s6747_s26, 1 }
   0x8   : > { %s8527_s30 = scalar_select %p161_p1, %s8447_s23, %s163_s28  }
   0x9   : > { %p8529_p5 = por %p174_p2, %p173_p0  ;;  %p8533_p6 = por %p180_p4, %p179_p3 }
   0xa   : > { %p6750_p7 = scmp.ge.s32.totalorder %s8451_s24, 1  ;;  %p219_p8 = scmp.lt.s32.totalorder %s8451_s24, 3 }
   0xc   : > { %p220_p9 = pnand %p6750_p7, %p219_p8 }
   0xd   : > { %s6752_s13 = sshll.u32 (!%p220_p9), %s8512_s25, 9  ;;  %p260_p11 = scmp.lt.s32.totalorder (!%p220_p9), %s8512_s25, 1 }
   0xe   : > { %223 = sbr.rel (%p220_p9) target bundleno = 1390 (0x56e), region = 40  ;;  %p255_p10 = scmp.lt.s32.totalorder (!%p220_p9), %s6752_s13, 1023 }
   0xf   : > { %s251_s17 = sand.u32 (!%p220_p9), 1, %s8443_s22   ;;  %s8332_s28 = sshll.u32 (!%p220_p9), %s8512_s25, 4 }
  0x10   : > { %s6751_s18 = sshll.u32 (!%p220_p9), %s251_s17, 4  ;;  %s6656_s10 = scalar_lea.hbm (!%p220_p9), %s10720_s6, %s8332_s28 }
  0x11   : > { %s253_s11 = scalar_lea.vmem (!%p220_p9), [#allocation2], %s6751_s18  ;;  %s8409_s18 = scalar_lea.hbm (!%p220_p9), %s10720_s6, 32 }
  0x12   : > { %s6657_s12 = sshll.u32 (!%p220_p9), %s253_s11, 4  ;;  %s6658_s12 = int_to_ptr.vmem [resolvable:$true] %s6657_s12 }
  0x13   : > { %v7786_v0 = vld [vmem:[%s10715_s1 + $0x8] sm:$0xf]  ;;  %v8327_v1 = vld [vmem:[%s10715_s1 + $0x8] sm:$0x30]  ;;  %vm2846_vm0 = vcmask 1044480   ;;  %vm2847_vm1 = vcmask 1045504  }
  0x14   : > { %v7787_v2 = vor.u32 %v8327_v1, %v7786_v0  ;;  %v8453_v3 = vmov 65535   ;;  %s10728_s13 = smov (!%p255_p10, %s6752_s13), 1023  ;;  %v8326_v7 = vld [vmem:[%s10715_s1] sm:$0xff]  ;;  %vm2077_vm2 = vcmask 220160   ;;  %vm4654_vm3 = vcmask 130048  }
  0x15   : > { %v2848_v4 = vsel %vm2846_vm0, 4294967295, %v8453_v3  ;;  %s6753_s16 = sshll.u32 %s10728_s13, 2  ;;  %v8627_v46 = vld [vmem:[%s10716_s2] ss:$0 sm:$0xff]  ;;  %vm6127_vm4 = vcmask 1041409   ;;  %vm6129_vm5 = vcmask 1042434  }
  0x16   : > { %v2849_v5 = vsel %vm2847_vm1, %v2848_v4, 0  ;;  %s8552_s19 = scalar_lea.vmem %s10714_s0, %s6753_s16  ;;  %vm6131_vm6 = vcmask 1043459   ;;  %vm6133_vm7 = vcmask 1044484   ;;  %vm6135_vm8 = vcmask 1045509   ;;  %s6659_s13 = sshll.u32 %s6656_s10, 4  ;;  %s6660_s13 = int_to_ptr.hbm [resolvable:$true] %s6659_s13 }
  0x17   : > { %v2851_v6 = vand.u32 %v7787_v2, %v2849_v5  ;;  %v8070_v8 = vld [vmem:[%s8552_s19] sm:$0xff]  ;;  %v8135_v9 = vld [vmem:[%s8552_s19 + $0x208] sm:$0xff]  ;;  %v8136_v13 = vld [vmem:[%s8552_s19 + $0x210] sm:$0xff]  ;;  %vm6137_vm9 = vcmask 1046534   ;;  %s261_s20 = scalar_select %p260_p11, %s8512_s25, 1  ;;  %vm6139_vm10 = vcmask 1047559  }
  0x18   : > { %v8198_v10 = vld [vmem:[%s8552_s19 + $0x400] sm:$0xff]  ;;  %v8071_v12 = vld [vmem:[%s8552_s19 + $0x8] sm:$0xff]  ;;  %v8072_v16 = vld [vmem:[%s8552_s19 + $0x10] sm:$0xff]  ;;  %s6642_s25 = scalar_lea.sflag [#allocation3], %s251_s17  ;;  %s8403_s14 = sshra.s32 %s6660_s13, 4  ;;  %s8404_s14 = int_to_ptr.hbm [resolvable:$true] %s8403_s14 }
  0x19   : > { %2859 = vmatpush.bf16.msra.mxu0 %v2851_v6  ;;  %8333 = vmatpush.bf16.msra.mxu1 %v2851_v6  ;;  %v8262_v11 = vld [vmem:[%s8552_s19 + $0x600] sm:$0xff]  ;;  %v8199_v14 = vld [vmem:[%s8552_s19 + $0x408] sm:$0xff]  ;;  %v8137_v17 = vld [vmem:[%s8552_s19 + $0x218] sm:$0xff]  ;;  %s8069_s26 = sshll.u32 %s261_s20, 6  ;;  %s8405_s15 = scalar_lea.hbm %s8404_s14, 16 }
  0x1a   : > { %8334 = vmatpush.bf16.msra.mxu2 %v2851_v6  ;;  %8335 = vmatpush.bf16.msra.mxu3 %v2851_v6  ;;  %v8263_v15 = vld [vmem:[%s8552_s19 + $0x608] sm:$0xff]  ;;  %v8200_v18 = vld [vmem:[%s8552_s19 + $0x410] sm:$0xff]  ;;  %v8073_v20 = vld [vmem:[%s8552_s19 + $0x18] sm:$0xff]  ;;  %s9631_s9 = scalar_lea.vmem %s10719_s5, %s8069_s26  ;;  %p8406_p12 = scmp.ne.s32.totalorder %s8404_s14, %s8405_s15 }
  0x1b   : > { %v8264_v19 = vld [vmem:[%s8552_s19 + $0x610] sm:$0xff]  ;;  %v8138_v21 = vld [vmem:[%s8552_s19 + $0x220] sm:$0xff]  ;;  %v8201_v22 = vld [vmem:[%s8552_s19 + $0x418] sm:$0xff]  ;;  %p8410_p1 = scmp.lt.s32.totalorder %s8404_s14, %s10720_s6  ;;  %p8411_p2 = scmp.lt.s32.totalorder %s8409_s18, %s8405_s15 }
  0x1c   : > { %v8265_v23 = vld [vmem:[%s8552_s19 + $0x618] sm:$0xff]  ;;  %v8074_v24 = vld [vmem:[%s8552_s19 + $0x20] sm:$0xff]  ;;  %v8139_v25 = vld [vmem:[%s8552_s19 + $0x228] sm:$0xff]  ;;  %p8407_p13 = pnand %p8406_p12, %p8529_p5 }
  0x1d   : > { %2860 = vmatpush.bf16.msra.mxu0 %v8326_v7  ;;  %8336 = vmatpush.bf16.msra.mxu1 %v8326_v7  ;;  %v8202_v26 = vld [vmem:[%s8552_s19 + $0x420] sm:$0xff]  ;;  %v8075_v28 = vld [vmem:[%s8552_s19 + $0x28] sm:$0xff]  ;;  %v8140_v29 = vld [vmem:[%s8552_s19 + $0x230] sm:$0xff]  ;;  %p8412_p3 = por %p8411_p2, %p8410_p1 }
  0x1e   : > { %8337 = vmatpush.bf16.msra.mxu2 %v8326_v7  ;;  %8338 = vmatpush.bf16.msra.mxu3 %v8326_v7  ;;  %v8266_v27 = vld [vmem:[%s8552_s19 + $0x620] sm:$0xff]  ;;  %v8203_v30 = vld [vmem:[%s8552_s19 + $0x428] sm:$0xff]  ;;  %v8076_v32 = vld [vmem:[%s8552_s19 + $0x30] sm:$0xff]  ;;  %p8408_p0 = pneg %p8407_p13 }
  0x1f   : > { %v8267_v31 = vld [vmem:[%s8552_s19 + $0x628] sm:$0xff]  ;;  %v8141_v33 = vld [vmem:[%s8552_s19 + $0x238] sm:$0xff]  ;;  %v8204_v34 = vld [vmem:[%s8552_s19 + $0x430] sm:$0xff] }
  0x20   : > { %7788 = vmatmul.msk.bf16.vlgmr.msra.gmra.mxu0 %vm2077_vm2, %v8070_v8  ;;  %7853 = vmatmul.msk.bf16.vlgmr.msra.gmra.mxu1 %vm2077_vm2, %v8135_v9  ;;  %v8268_v35 = vld [vmem:[%s8552_s19 + $0x630] sm:$0xff]  ;;  %v8077_v36 = vld [vmem:[%s8552_s19 + $0x38] sm:$0xff]  ;;  %v8142_v37 = vld [vmem:[%s8552_s19 + $0x240] sm:$0xff]  ;;  %p8413_p4 = pnand %p8412_p3, %p8408_p0 }
  0x21   : > { %7916 = vmatmul.msk.bf16.vlgmr.msra.gmra.mxu2 %vm2077_vm2, %v8198_v10  ;;  %7980 = vmatmul.msk.bf16.vlgmr.msra.gmra.mxu3 %vm2077_vm2, %v8262_v11  ;;  %v8205_v38 = vld [vmem:[%s8552_s19 + $0x438] sm:$0xff]  ;;  %v8078_v40 = vld [vmem:[%s8552_s19 + $0x40] sm:$0xff]  ;;  %v8143_v41 = vld [vmem:[%s8552_s19 + $0x248] sm:$0xff] }
  0x22   : > { %v8269_v39 = vld [vmem:[%s8552_s19 + $0x638] sm:$0xff]  ;;  %v8206_v44 = vld [vmem:[%s8552_s19 + $0x440] sm:$0xff]  ;;  %v8079_v0 = vld [vmem:[%s8552_s19 + $0x48] sm:$0xff] }
  0x23   : > { %v8270_v45 = vld [vmem:[%s8552_s19 + $0x640] sm:$0xff]  ;;  %v8144_v1 = vld [vmem:[%s8552_s19 + $0x250] sm:$0xff]  ;;  %v8207_v6 = vld [vmem:[%s8552_s19 + $0x448] sm:$0xff] }
  0x24   : > { %v8271_v7 = vld [vmem:[%s8552_s19 + $0x648] sm:$0xff] }
  0x30   : > { %7789 = vmatmul.msk.bf16.gmra.mxu0 %vm2077_vm2, %v8071_v12  ;;  %7854 = vmatmul.msk.bf16.gmra.mxu1 %vm2077_vm2, %v8136_v13 }
  0x31   : > { %7917 = vmatmul.msk.bf16.gmra.mxu2 %vm2077_vm2, %v8199_v14  ;;  %7981 = vmatmul.msk.bf16.gmra.mxu3 %vm2077_vm2, %v8263_v15 }
  0x40   : > { %7790 = vmatmul.msk.bf16.gmra.mxu0 %vm2077_vm2, %v8072_v16  ;;  %7855 = vmatmul.msk.bf16.gmra.mxu1 %vm2077_vm2, %v8137_v17 }
  0x41   : > { %7918 = vmatmul.msk.bf16.gmra.mxu2 %vm2077_vm2, %v8200_v18  ;;  %7982 = vmatmul.msk.bf16.gmra.mxu3 %vm2077_vm2, %v8264_v19 }
  0x50   : > { %7791 = vmatmul.msk.bf16.gmra.mxu0 %vm2077_vm2, %v8073_v20  ;;  %7856 = vmatmul.msk.bf16.gmra.mxu1 %vm2077_vm2, %v8138_v21 }
  0x51   : > { %7919 = vmatmul.msk.bf16.gmra.mxu2 %vm2077_vm2, %v8201_v22  ;;  %7983 = vmatmul.msk.bf16.gmra.mxu3 %vm2077_vm2, %v8265_v23 }
  0x60   : > { %7792 = vmatmul.msk.bf16.gmra.mxu0 %vm2077_vm2, %v8074_v24  ;;  %7857 = vmatmul.msk.bf16.gmra.mxu1 %vm2077_vm2, %v8139_v25 }
  0x61   : > { %7920 = vmatmul.msk.bf16.gmra.mxu2 %vm2077_vm2, %v8202_v26  ;;  %7984 = vmatmul.msk.bf16.gmra.mxu3 %vm2077_vm2, %v8266_v27 }
  0x70   : > { %7793 = vmatmul.msk.bf16.gmra.mxu0 %vm2077_vm2, %v8075_v28  ;;  %7858 = vmatmul.msk.bf16.gmra.mxu1 %vm2077_vm2, %v8140_v29 }
  0x71   : > { %7921 = vmatmul.msk.bf16.gmra.mxu2 %vm2077_vm2, %v8203_v30  ;;  %7985 = vmatmul.msk.bf16.gmra.mxu3 %vm2077_vm2, %v8267_v31 }
  0x80   : > { %7794 = vmatmul.msk.bf16.gmra.mxu0 %vm2077_vm2, %v8076_v32  ;;  %7859 = vmatmul.msk.bf16.gmra.mxu1 %vm2077_vm2, %v8141_v33 }
  0x81   : > { %7922 = vmatmul.msk.bf16.gmra.mxu2 %vm2077_vm2, %v8204_v34  ;;  %7986 = vmatmul.msk.bf16.gmra.mxu3 %vm2077_vm2, %v8268_v35 }
  0x90   : > { %7795 = vmatmul.msk.bf16.gmra.mxu0 %vm2077_vm2, %v8077_v36  ;;  %7860 = vmatmul.msk.bf16.gmra.mxu1 %vm2077_vm2, %v8142_v37 }
  0x91   : > { %7923 = vmatmul.msk.bf16.gmra.mxu2 %vm2077_vm2, %v8205_v38  ;;  %7987 = vmatmul.msk.bf16.gmra.mxu3 %vm2077_vm2, %v8269_v39  ;;  %v8080_v38 = vld [vmem:[%s8552_s19 + $0x50] sm:$0xff]  ;;  %v8145_v39 = vld [vmem:[%s8552_s19 + $0x258] sm:$0xff] }
  0x9d   : > { %v2862_v42 = vpop.f32.mrf.mxu0  ;;  %v8620_v43 = vpop.f32.mrf.mxu1 }
  0x9e   : > { %v2863_v47 = vadd.f32 %v8627_v46, %v2862_v42 }
  0xa0   : > { %7796 = vmatmul.msk.bf16.gmra.mxu0 %vm2077_vm2, %v8078_v40  ;;  %7861 = vmatmul.msk.bf16.gmra.mxu1 %vm2077_vm2, %v8143_v41  ;;  %v4142_v52 = vmax.f32 %v2863_v47, 0.0  ;;  %v8272_v47 = vld [vmem:[%s8552_s19 + $0x650] sm:$0xff] }
  0xa1   : > { %7924 = vmatmul.msk.bf16.gmra.mxu2 %vm2077_vm2, %v8206_v44  ;;  %7988 = vmatmul.msk.bf16.gmra.mxu3 %vm2077_vm2, %v8270_v45  ;;  %v8208_v45 = vld [vmem:[%s8552_s19 + $0x450] sm:$0xff] }
  0xa2   : > { %v4655_v57 = vsel %vm4654_vm3, %v4142_v52, 0.0 }
  0xa4   : > { %v3502_v48 = vpop.f32.mrf.mxu2  ;;  %v3822_v49 = vpop.f32.mrf.mxu3 }
  0xa5   : > { %v2864_v50 = vpop.f32.mrf.mxu0  ;;  %v8634_v51 = vpop.f32.mrf.mxu1  ;;  %v3503_v54 = vadd.f32 %v8627_v46, %v3502_v48  ;;  %v3823_v55 = vadd.f32 %v8627_v46, %v3822_v49 }
  0xa6   : > { %v2865_v53 = vadd.f32 %v8627_v46, %v2864_v50 }
  0xa7   : > { %v4398_v59 = vmax.f32 %v3503_v54, 0.0  ;;  %v4526_v60 = vmax.f32 %v3823_v55, 0.0 }
  0xa8   : > { %v4143_v56 = vmax.f32 %v2865_v53, 0.0 }
  0xa9   : > { %v5327_v9 = vsel %vm4654_vm3, %v4398_v59, 0.0  ;;  %v5663_v10 = vsel %vm4654_vm3, %v4526_v60, 0.0 }
  0xaa   : > { %v4656_v58 = vsel %vm4654_vm3, %v4143_v56, 0.0 }
  0xab   : > { %v4657_v61 = vadd.f32 %v4656_v58, %v4655_v57 }
  0xac   : > { %v3504_v62 = vpop.f32.mrf.mxu2  ;;  %v3824_v63 = vpop.f32.mrf.mxu3 }
  0xad   : > { %v3505_v2 = vadd.f32 %v8627_v46, %v3504_v62  ;;  %v3825_v3 = vadd.f32 %v8627_v46, %v3824_v63  ;;  %v2867_v4 = vpop.f32.mrf.mxu0  ;;  %v8645_v5 = vpop.f32.mrf.mxu1 }
  0xae   : > { %v2868_v8 = vadd.f32 %v8627_v46, %v2867_v4 }
  0xaf   : > { %v4399_v11 = vmax.f32 %v3505_v2, 0.0  ;;  %v4527_v12 = vmax.f32 %v3825_v3, 0.0 }
  0xb0   : > { %v4144_v13 = vmax.f32 %v2868_v8, 0.0  ;;  %7797 = vmatmul.msk.bf16.gmra.mxu0 %vm2077_vm2, %v8079_v0  ;;  %7862 = vmatmul.msk.bf16.gmra.mxu1 %vm2077_vm2, %v8144_v1 }
  0xb1   : > { %v5328_v14 = vsel %vm4654_vm3, %v4399_v11, 0.0  ;;  %v5664_v15 = vsel %vm4654_vm3, %v4527_v12, 0.0  ;;  %7925 = vmatmul.msk.bf16.gmra.mxu2 %vm2077_vm2, %v8207_v6  ;;  %7989 = vmatmul.msk.bf16.gmra.mxu3 %vm2077_vm2, %v8271_v7 }
  0xb2   : > { %v5329_v16 = vadd.f32 %v5328_v14, %v5327_v9  ;;  %v5665_v17 = vadd.f32 %v5664_v15, %v5663_v10  ;;  %v4658_v18 = vsel %vm4654_vm3, %v4144_v13, 0.0  ;;  %v8081_v14 = vld [vmem:[%s8552_s19 + $0x58] sm:$0xff]  ;;  %v8146_v15 = vld [vmem:[%s8552_s19 + $0x260] sm:$0xff] }
  0xb3   : > { %v4659_v19 = vadd.f32 %v4658_v18, %v4657_v61 }
  0xb4   : > { %v3507_v20 = vpop.f32.mrf.mxu2  ;;  %v3827_v21 = vpop.f32.mrf.mxu3 }
  0xb5   : > { %v3508_v22 = vadd.f32 %v8627_v46, %v3507_v20  ;;  %v3828_v23 = vadd.f32 %v8627_v46, %v3827_v21  ;;  %v2869_v24 = vpop.f32.mrf.mxu0  ;;  %v8661_v25 = vpop.f32.mrf.mxu1  ;;  %v8209_v20 = vld [vmem:[%s8552_s19 + $0x458] sm:$0xff] }
  0xb6   : > { %v2870_v26 = vadd.f32 %v8627_v46, %v2869_v24  ;;  %v8273_v21 = vld [vmem:[%s8552_s19 + $0x658] sm:$0xff] }
  0xb7   : > { %v4400_v27 = vmax.f32 %v3508_v22, 0.0  ;;  %v4528_v28 = vmax.f32 %v3828_v23, 0.0 }
  0xb8   : > { %v4145_v29 = vmax.f32 %v2870_v26, 0.0  ;;  %v8329_v26 = vld [vmem:[%s10717_s3 + $0x8] sm:$0xff] }
  0xb9   : > { %v5330_v30 = vsel %vm4654_vm3, %v4400_v27, 0.0  ;;  %v5666_v31 = vsel %vm4654_vm3, %v4528_v28, 0.0  ;;  %v8330_v27 = vld [vmem:[%s10717_s3 + $0x10] sm:$0xff]  ;;  %6443 = vmatpush.bf16.msrb.mxu2 %v8329_v26 }
  0xba   : > { %v5331_v32 = vadd.f32 %v5330_v30, %v5329_v16  ;;  %v5667_v33 = vadd.f32 %v5666_v31, %v5665_v17  ;;  %v4660_v34 = vsel %vm4654_vm3, %v4145_v29, 0.0  ;;  %6529 = vmatpush.bf16.msrb.mxu3 %v8330_v27 }
  0xbb   : > { %v4661_v35 = vadd.f32 %v4660_v34, %v4659_v19 }
  0xbc   : > { %v3509_v36 = vpop.f32.mrf.mxu2  ;;  %v3829_v37 = vpop.f32.mrf.mxu3 }
  0xbd   : > { %v3510_v40 = vadd.f32 %v8627_v46, %v3509_v36  ;;  %v3830_v41 = vadd.f32 %v8627_v46, %v3829_v37  ;;  %v2872_v42 = vpop.f32.mrf.mxu0  ;;  %v8671_v44 = vpop.f32.mrf.mxu1 }
  0xbe   : > { %v2873_v48 = vadd.f32 %v8627_v46, %v2872_v42 }
  0xbf   : > { %v4401_v49 = vmax.f32 %v3510_v40, 0.0  ;;  %v4529_v50 = vmax.f32 %v3830_v41, 0.0 }
  0xc0   : > { %v4146_v52 = vmax.f32 %v2873_v48, 0.0  ;;  %7798 = vmatmul.msk.bf16.gmra.mxu0 %vm2077_vm2, %v8080_v38  ;;  %7863 = vmatmul.msk.bf16.gmra.mxu1 %vm2077_vm2, %v8145_v39  ;;  %v8328_v48 = vld [vmem:[%s10717_s3] sm:$0xff] }
  0xc1   : > { %v5332_v53 = vsel %vm4654_vm3, %v4401_v49, 0.0  ;;  %v5668_v54 = vsel %vm4654_vm3, %v4529_v50, 0.0  ;;  %7926 = vmatmul.msk.bf16.gmra.mxu2 %vm2077_vm2, %v8208_v45  ;;  %7990 = vmatmul.msk.bf16.gmra.mxu3 %vm2077_vm2, %v8272_v47 }
  0xc2   : > { %v5333_v55 = vadd.f32 %v5332_v53, %v5331_v32  ;;  %v5669_v56 = vadd.f32 %v5668_v54, %v5667_v33  ;;  %v4662_v57 = vsel %vm4654_vm3, %v4146_v52, 0.0  ;;  %6357 = vmatpush.bf16.msrb.mxu1 %v8328_v48 }
  0xc3   : > { %v4663_v58 = vadd.f32 %v4662_v57, %v4661_v35 }
  0xc4   : > { %v3512_v59 = vpop.f32.mrf.mxu2  ;;  %v3832_v60 = vpop.f32.mrf.mxu3 }
  0xc5   : > { %v3513_v61 = vadd.f32 %v8627_v46, %v3512_v59  ;;  %v3833_v62 = vadd.f32 %v8627_v46, %v3832_v60  ;;  %v2874_v63 = vpop.f32.mrf.mxu0  ;;  %v8685_v0 = vpop.f32.mrf.mxu1 }
  0xc6   : > { %v2875_v1 = vadd.f32 %v8627_v46, %v2874_v63 }
  0xc7   : > { %v4402_v2 = vmax.f32 %v3513_v61, 0.0  ;;  %v4530_v3 = vmax.f32 %v3833_v62, 0.0 }
  0xc8   : > { %v4147_v4 = vmax.f32 %v2875_v1, 0.0 }
  0xc9   : > { %v5334_v6 = vsel %vm4654_vm3, %v4402_v2, 0.0  ;;  %v5670_v7 = vsel %vm4654_vm3, %v4530_v3, 0.0  ;;  %v8082_v2 = vld [vmem:[%s8552_s19 + $0x60] sm:$0xff]  ;;  %v8147_v3 = vld [vmem:[%s8552_s19 + $0x268] sm:$0xff] }
  0xca   : > { %v5335_v8 = vadd.f32 %v5334_v6, %v5333_v55  ;;  %v5671_v9 = vadd.f32 %v5670_v7, %v5669_v56  ;;  %v4664_v10 = vsel %vm4654_vm3, %v4147_v4, 0.0 }
  0xcb   : > { %v4665_v11 = vadd.f32 %v4664_v10, %v4663_v58  ;;  %v8274_v10 = vld [vmem:[%s8552_s19 + $0x660] sm:$0xff] }
  0xcc   : > { %v3514_v12 = vpop.f32.mrf.mxu2  ;;  %v3834_v13 = vpop.f32.mrf.mxu3 }
  0xcd   : > { %v3515_v16 = vadd.f32 %v8627_v46, %v3514_v12  ;;  %v3835_v17 = vadd.f32 %v8627_v46, %v3834_v13  ;;  %v2877_v18 = vpop.f32.mrf.mxu0  ;;  %v3202_v19 = vpop.f32.mrf.mxu1 }
  0xce   : > { %v2878_v22 = vadd.f32 %v8627_v46, %v2877_v18  ;;  %v3203_v29 = vadd.f32 %v8627_v46, %v3202_v19 }
  0xcf   : > { %v4403_v23 = vmax.f32 %v3515_v16, 0.0  ;;  %v4531_v24 = vmax.f32 %v3835_v17, 0.0 }
  0xd0   : > { %v4148_v28 = vmax.f32 %v2878_v22, 0.0  ;;  %7799 = vmatmul.msk.bf16.gmra.mxu0 %vm2077_vm2, %v8081_v14  ;;  %7864 = vmatmul.msk.bf16.gmra.mxu1 %vm2077_vm2, %v8146_v15  ;;  %v4278_v36 = vmax.f32 %v3203_v29, 0.0 }
  0xd1   : > { %v5336_v30 = vsel %vm4654_vm3, %v4403_v23, 0.0  ;;  %v5672_v31 = vsel %vm4654_vm3, %v4531_v24, 0.0  ;;  %7927 = vmatmul.msk.bf16.gmra.mxu2 %vm2077_vm2, %v8209_v20  ;;  %7991 = vmatmul.msk.bf16.gmra.mxu3 %vm2077_vm2, %v8273_v21 }
  0xd2   : > { %v5337_v32 = vadd.f32 %v5336_v30, %v5335_v8  ;;  %v5673_v33 = vadd.f32 %v5672_v31, %v5671_v9  ;;  %v4666_v34 = vsel %vm4654_vm3, %v4148_v28, 0.0  ;;  %v5012_v52 = vsel %vm4654_vm3, %v4278_v36, 0.0  ;;  %v8210_v9 = vld [vmem:[%s8552_s19 + $0x460] sm:$0xff] }
  0xd3   : > { %v4667_v35 = vadd.f32 %v4666_v34, %v4665_v11 }
  0xd4   : > { %v3517_v37 = vpop.f32.mrf.mxu2  ;;  %v3837_v38 = vpop.f32.mrf.mxu3 }
  0xd5   : > { %v3518_v39 = vadd.f32 %v8627_v46, %v3517_v37  ;;  %v3838_v40 = vadd.f32 %v8627_v46, %v3837_v38  ;;  %v2879_v41 = vpop.f32.mrf.mxu0  ;;  %v3204_v42 = vpop.f32.mrf.mxu1 }
  0xd6   : > { %v2880_v45 = vadd.f32 %v8627_v46, %v2879_v41  ;;  %v3205_v47 = vadd.f32 %v8627_v46, %v3204_v42 }
  0xd7   : > { %v4404_v49 = vmax.f32 %v3518_v39, 0.0  ;;  %v4532_v50 = vmax.f32 %v3838_v40, 0.0 }
  0xd8   : > { %v4149_v53 = vmax.f32 %v2880_v45, 0.0  ;;  %v4279_v54 = vmax.f32 %v3205_v47, 0.0  ;;  %v8083_v45 = vld [vmem:[%s8552_s19 + $0x68] sm:$0xff]  ;;  %v8148_v47 = vld [vmem:[%s8552_s19 + $0x270] sm:$0xff] }
  0xd9   : > { %v5338_v55 = vsel %vm4654_vm3, %v4404_v49, 0.0  ;;  %v5674_v56 = vsel %vm4654_vm3, %v4532_v50, 0.0 }
  0xda   : > { %v5339_v57 = vadd.f32 %v5338_v55, %v5337_v32  ;;  %v5675_v58 = vadd.f32 %v5674_v56, %v5673_v33  ;;  %v4668_v59 = vsel %vm4654_vm3, %v4149_v53, 0.0  ;;  %v5013_v60 = vsel %vm4654_vm3, %v4279_v54, 0.0  ;;  %v8211_v53 = vld [vmem:[%s8552_s19 + $0x468] sm:$0xff] }
  0xdb   : > { %v8724_v61 = vadd.f32 %v4668_v59, %v4667_v35  ;;  %v5014_v62 = vadd.f32 %v5013_v60, %v5012_v52  ;;  %v8275_v54 = vld [vmem:[%s8552_s19 + $0x668] sm:$0xff] }
  0xdc   : > { %v3519_v63 = vpop.f32.mrf.mxu2  ;;  %v3839_v1 = vpop.f32.mrf.mxu3 }
  0xdd   : > { %v3520_v4 = vadd.f32 %v8627_v46, %v3519_v63  ;;  %v3840_v6 = vadd.f32 %v8627_v46, %v3839_v1  ;;  %v2882_v7 = vpop.f32.mrf.mxu0  ;;  %v3207_v8 = vpop.f32.mrf.mxu1 }
  0xde   : > { %v3208_v11 = vadd.f32 %v8627_v46, %v3207_v8  ;;  %v2883_v19 = vadd.f32 %v8627_v46, %v2882_v7 }
  0xdf   : > { %v4405_v12 = vmax.f32 %v3520_v4, 0.0  ;;  %v4533_v13 = vmax.f32 %v3840_v6, 0.0 }
  0xe0   : > { %v4280_v14 = vmax.f32 %v3208_v11, 0.0  ;;  %7800 = vmatmul.msk.bf16.gmra.mxu0 %vm2077_vm2, %v8082_v2  ;;  %7865 = vmatmul.msk.bf16.gmra.mxu1 %vm2077_vm2, %v8147_v3  ;;  %v4150_v27 = vmax.f32 %v2883_v19, 0.0 }
  0xe1   : > { %v5340_v15 = vsel %vm4654_vm3, %v4405_v12, 0.0  ;;  %v5676_v16 = vsel %vm4654_vm3, %v4533_v13, 0.0  ;;  %7928 = vmatmul.msk.bf16.gmra.mxu2 %vm2077_vm2, %v8210_v9  ;;  %7992 = vmatmul.msk.bf16.gmra.mxu3 %vm2077_vm2, %v8274_v10 }
  0xe2   : > { %v8739_v17 = vadd.f32 %v5340_v15, %v5339_v57  ;;  %v8741_v18 = vadd.f32 %v5676_v16, %v5675_v58  ;;  %v5015_v20 = vsel %vm4654_vm3, %v4280_v14, 0.0  ;;  %v4676_v34 = vsel %vm4654_vm3, %v4150_v27, 0.0 }
  0xe3   : > { %v5016_v21 = vadd.f32 %v5015_v20, %v5014_v62 }
  0xe4   : > { %v3522_v22 = vpop.f32.mrf.mxu2  ;;  %v3842_v23 = vpop.f32.mrf.mxu3 }
  0xe5   : > { %v2884_v24 = vpop.f32.mrf.mxu0  ;;  %v3209_v26 = vpop.f32.mrf.mxu1  ;;  %v3523_v30 = vadd.f32 %v8627_v46, %v3522_v22  ;;  %v3843_v31 = vadd.f32 %v8627_v46, %v3842_v23 }
  0xe6   : > { %v2885_v28 = vadd.f32 %v8627_v46, %v2884_v24  ;;  %v3210_v29 = vadd.f32 %v8627_v46, %v3209_v26 }
  0xe7   : > { %v4406_v37 = vmax.f32 %v3523_v30, 0.0  ;;  %v4534_v38 = vmax.f32 %v3843_v31, 0.0 }
  0xe8   : > { %v4151_v32 = vmax.f32 %v2885_v28, 0.0  ;;  %v4281_v33 = vmax.f32 %v3210_v29, 0.0 }
  0xe9   : > { %v5348_v57 = vsel %vm4654_vm3, %v4406_v37, 0.0  ;;  %v5684_v58 = vsel %vm4654_vm3, %v4534_v38, 0.0 }
  0xea   : > { %v4677_v35 = vsel %vm4654_vm3, %v4151_v32, 0.0  ;;  %v5017_v36 = vsel %vm4654_vm3, %v4281_v33, 0.0 }
  0xeb   : > { %v4678_v39 = vadd.f32 %v4677_v35, %v4676_v34  ;;  %v5018_v40 = vadd.f32 %v5017_v36, %v5016_v21  ;;  %v8084_v35 = vld [vmem:[%s8552_s19 + $0x70] sm:$0xff]  ;;  %v8149_v36 = vld [vmem:[%s8552_s19 + $0x278] sm:$0xff] }
  0xec   : > { %v3524_v41 = vpop.f32.mrf.mxu2  ;;  %v3844_v42 = vpop.f32.mrf.mxu3 }
  0xed   : > { %v3525_v48 = vadd.f32 %v8627_v46, %v3524_v41  ;;  %v3845_v49 = vadd.f32 %v8627_v46, %v3844_v42  ;;  %v2887_v50 = vpop.f32.mrf.mxu0  ;;  %v3212_v52 = vpop.f32.mrf.mxu1  ;;  %v8212_v41 = vld [vmem:[%s8552_s19 + $0x470] sm:$0xff] }
  0xee   : > { %v2888_v55 = vadd.f32 %v8627_v46, %v2887_v50  ;;  %v3213_v56 = vadd.f32 %v8627_v46, %v3212_v52  ;;  %v8276_v42 = vld [vmem:[%s8552_s19 + $0x670] sm:$0xff]  ;;  %v4670_v50 = vrot.slane %v8724_v61, 4 }
  0xef   : > { %v4407_v59 = vmax.f32 %v3525_v48, 0.0  ;;  %v4535_v60 = vmax.f32 %v3845_v49, 0.0 }
  0xf0   : > { %v4152_v62 = vmax.f32 %v2888_v55, 0.0  ;;  %v4282_v63 = vmax.f32 %v3213_v56, 0.0  ;;  %7801 = vmatmul.msk.bf16.gmra.mxu0 %vm2077_vm2, %v8083_v45  ;;  %7866 = vmatmul.msk.bf16.gmra.mxu1 %vm2077_vm2, %v8148_v47 }
  0xf1   : > { %v5349_v1 = vsel %vm4654_vm3, %v4407_v59, 0.0  ;;  %v5685_v2 = vsel %vm4654_vm3, %v4535_v60, 0.0  ;;  %7929 = vmatmul.msk.bf16.gmra.mxu2 %vm2077_vm2, %v8211_v53  ;;  %7993 = vmatmul.msk.bf16.gmra.mxu3 %vm2077_vm2, %v8275_v54 }
  0xf2   : > { %v5350_v3 = vadd.f32 %v5349_v1, %v5348_v57  ;;  %v5686_v4 = vadd.f32 %v5685_v2, %v5684_v58  ;;  %v4679_v6 = vsel %vm4654_vm3, %v4152_v62, 0.0  ;;  %v5019_v7 = vsel %vm4654_vm3, %v4282_v63, 0.0 }
  0xf3   : > { %v4680_v8 = vadd.f32 %v4679_v6, %v4678_v39  ;;  %v5020_v9 = vadd.f32 %v5019_v7, %v5018_v40  ;;  %v4671_v63 = vadd.f32 %v4670_v50, %v8724_v61 }
  0xf4   : > { %v3527_v10 = vpop.f32.mrf.mxu2  ;;  %v3847_v11 = vpop.f32.mrf.mxu3 }
  0xf5   : > { %v3528_v12 = vadd.f32 %v8627_v46, %v3527_v10  ;;  %v3848_v13 = vadd.f32 %v8627_v46, %v3847_v11  ;;  %v2889_v14 = vpop.f32.mrf.mxu0  ;;  %v3214_v15 = vpop.f32.mrf.mxu1 }
  0xf6   : > { %v2890_v16 = vadd.f32 %v8627_v46, %v2889_v14  ;;  %v3215_v19 = vadd.f32 %v8627_v46, %v3214_v15 }
  0xf7   : > { %v4408_v20 = vmax.f32 %v3528_v12, 0.0  ;;  %v4536_v21 = vmax.f32 %v3848_v13, 0.0  ;;  %v4672_v12 = vrot.slane %v4671_v63, 2 }
  0xf8   : > { %v4153_v22 = vmax.f32 %v2890_v16, 0.0  ;;  %v4283_v23 = vmax.f32 %v3215_v19, 0.0 }
  0xf9   : > { %v5351_v24 = vsel %vm4654_vm3, %v4408_v20, 0.0  ;;  %v5687_v26 = vsel %vm4654_vm3, %v4536_v21, 0.0 }
  0xfa   : > { %v5352_v27 = vadd.f32 %v5351_v24, %v5350_v3  ;;  %v5688_v28 = vadd.f32 %v5687_v26, %v5686_v4  ;;  %v4681_v29 = vsel %vm4654_vm3, %v4153_v22, 0.0  ;;  %v5021_v30 = vsel %vm4654_vm3, %v4283_v23, 0.0 }
  0xfb   : > { %v4682_v31 = vadd.f32 %v4681_v29, %v4680_v8  ;;  %v5022_v32 = vadd.f32 %v5021_v30, %v5020_v9  ;;  %v5342_v22 = vrot.slane %v8739_v17, 4  ;;  %v4673_v26 = vadd.f32 %v4672_v12, %v4671_v63  ;;  %v8085_v29 = vld [vmem:[%s8552_s19 + $0x78] sm:$0xff]  ;;  %v8150_v30 = vld [vmem:[%s8552_s19 + $0x280] sm:$0xff] }
  0xfc   : > { %v3529_v33 = vpop.f32.mrf.mxu2  ;;  %v3849_v34 = vpop.f32.mrf.mxu3 }
  0xfd   : > { %v3530_v37 = vadd.f32 %v8627_v46, %v3529_v33  ;;  %v3850_v38 = vadd.f32 %v8627_v46, %v3849_v34  ;;  %v2892_v39 = vpop.f32.mrf.mxu0  ;;  %v3217_v40 = vpop.f32.mrf.mxu1 }
  0xfe   : > { %v2893_v45 = vadd.f32 %v8627_v46, %v2892_v39  ;;  %v3218_v47 = vadd.f32 %v8627_v46, %v3217_v40  ;;  %v5343_v39 = vadd.f32 %v5342_v22, %v8739_v17 }
  0xff   : > { %v4409_v48 = vmax.f32 %v3530_v37, 0.0  ;;  %v4537_v49 = vmax.f32 %v3850_v38, 0.0  ;;  %v8277_v37 = vld [vmem:[%s8552_s19 + $0x678] sm:$0xff] }
 0x100   : > { %v4154_v52 = vmax.f32 %v2893_v45, 0.0  ;;  %v4284_v53 = vmax.f32 %v3218_v47, 0.0  ;;  %7802 = vmatmul.msk.bf16.gmra.mxu0 %vm2077_vm2, %v8084_v35  ;;  %7867 = vmatmul.msk.bf16.gmra.mxu1 %vm2077_vm2, %v8149_v36  ;;  %v8213_v36 = vld [vmem:[%s8552_s19 + $0x478] sm:$0xff] }
 0x101   : > { %v5353_v54 = vsel %vm4654_vm3, %v4409_v48, 0.0  ;;  %v5689_v55 = vsel %vm4654_vm3, %v4537_v49, 0.0  ;;  %7930 = vmatmul.msk.bf16.gmra.mxu2 %vm2077_vm2, %v8212_v41  ;;  %7994 = vmatmul.msk.bf16.gmra.mxu3 %vm2077_vm2, %v8276_v42  ;;  %v4674_v42 = vrot.slane %v4673_v26, 1 }
 0x102   : > { %v5354_v56 = vadd.f32 %v5353_v54, %v5352_v27  ;;  %v5690_v57 = vadd.f32 %v5689_v55, %v5688_v28  ;;  %v4683_v58 = vsel %vm4654_vm3, %v4154_v52, 0.0  ;;  %v5023_v59 = vsel %vm4654_vm3, %v4284_v53, 0.0 }
 0x103   : > { %v4684_v60 = vadd.f32 %v4683_v58, %v4682_v31  ;;  %v5024_v62 = vadd.f32 %v5023_v59, %v5022_v32  ;;  %v5678_v31 = vrot.slane %v8741_v18, 4  ;;  %v5344_v54 = vrot.slane %v5343_v39, 2 }
 0x104   : > { %v3532_v1 = vpop.f32.mrf.mxu2  ;;  %v3852_v2 = vpop.f32.mrf.mxu3 }
 0x105   : > { %v3533_v3 = vadd.f32 %v8627_v46, %v3532_v1  ;;  %v3853_v4 = vadd.f32 %v8627_v46, %v3852_v2  ;;  %v2894_v6 = vpop.f32.mrf.mxu0  ;;  %v3219_v7 = vpop.f32.mrf.mxu1  ;;  %v5679_v48 = vadd.f32 %v5678_v31, %v8741_v18 }
 0x106   : > { %v2895_v8 = vadd.f32 %v8627_v46, %v2894_v6  ;;  %v3220_v9 = vadd.f32 %v8627_v46, %v3219_v7 }
 0x107   : > { %v4410_v10 = vmax.f32 %v3533_v3, 0.0  ;;  %v4538_v11 = vmax.f32 %v3853_v4, 0.0  ;;  %v5345_v4 = vadd.f32 %v5344_v54, %v5343_v39 }
 0x108   : > { %v4155_v13 = vmax.f32 %v2895_v8, 0.0  ;;  %v4285_v14 = vmax.f32 %v3220_v9, 0.0 }
 0x109   : > { %v5355_v61 = vsel %vm4654_vm3, %v4410_v10, 0.0  ;;  %v5691_v15 = vsel %vm4654_vm3, %v4538_v11, 0.0 }
 0x10a   : > { %v5356_v16 = vadd.f32 %v5355_v61, %v5354_v56  ;;  %v5692_v19 = vadd.f32 %v5691_v15, %v5690_v57  ;;  %v4685_v20 = vsel %vm4654_vm3, %v4155_v13, 0.0  ;;  %v5025_v21 = vsel %vm4654_vm3, %v4285_v14, 0.0 }
 0x10b   : > { %v4686_v23 = vadd.f32 %v4685_v20, %v4684_v60  ;;  %v8805_v24 = vadd.f32 %v5025_v21, %v5024_v62  ;;  %v4675_v56 = vadd.f32 %v4674_v42, %v4673_v26  ;;  %v5680_v60 = vrot.slane %v5679_v48, 2 }
 0x10c   : > { %v3534_v27 = vpop.f32.mrf.mxu2  ;;  %v3854_v28 = vpop.f32.mrf.mxu3  ;;  %v5346_v20 = vrot.slane %v5345_v4, 1 }
 0x10d   : > { %v3535_v32 = vadd.f32 %v8627_v46, %v3534_v27  ;;  %v3855_v33 = vadd.f32 %v8627_v46, %v3854_v28  ;;  %v2897_v34 = vpop.f32.mrf.mxu0  ;;  %v3222_v35 = vpop.f32.mrf.mxu1  ;;  %v8829_v8 = vmul.f32 0.015625, %v4675_v56  ;;  %v5681_v12 = vadd.f32 %v5680_v60, %v5679_v48  ;;  %v8086_v28 = vld [vmem:[%s8552_s19 + $0x80] sm:$0xff] }
 0x10e   : > { %v2898_v38 = vadd.f32 %v8627_v46, %v2897_v34  ;;  %v3223_v47 = vadd.f32 %v8627_v46, %v3222_v35  ;;  %v8214_v35 = vld [vmem:[%s8552_s19 + $0x480] sm:$0xff]  ;;  %v5347_v39 = vadd.f32 %v5346_v20, %v5345_v4 }
 0x10f   : > { %v4411_v40 = vmax.f32 %v3535_v32, 0.0  ;;  %v4539_v41 = vmax.f32 %v3855_v33, 0.0 }
 0x110   : > { %v4156_v45 = vmax.f32 %v2898_v38, 0.0  ;;  %7803 = vmatmul.msk.bf16.gmra.mxu0 %vm2077_vm2, %v8085_v29  ;;  %7868 = vmatmul.msk.bf16.gmra.mxu1 %vm2077_vm2, %v8150_v30  ;;  %v4286_v57 = vmax.f32 %v3223_v47, 0.0  ;;  %v8151_v29 = vld [vmem:[%s8552_s19 + $0x288] sm:$0xff] }
 0x111   : > { %v5357_v49 = vsel %vm4654_vm3, %v4411_v40, 0.0  ;;  %v5693_v50 = vsel %vm4654_vm3, %v4539_v41, 0.0  ;;  %7931 = vmatmul.msk.bf16.gmra.mxu2 %vm2077_vm2, %v8213_v36  ;;  %7995 = vmatmul.msk.bf16.gmra.mxu3 %vm2077_vm2, %v8277_v37  ;;  %v8278_v36 = vld [vmem:[%s8552_s19 + $0x680] sm:$0xff]  ;;  %v5682_v37 = vrot.slane %v5681_v12, 1 }
 0x112   : > { %v5358_v17 = vadd.f32 %v5357_v49, %v5356_v16  ;;  %v5694_v52 = vadd.f32 %v5693_v50, %v5692_v19  ;;  %v4687_v53 = vsel %vm4654_vm3, %v4156_v45, 0.0  ;;  %v5033_v9 = vsel %vm4654_vm3, %v4286_v57, 0.0 }
 0x113   : > { %v4688_v55 = vadd.f32 %v4687_v53, %v4686_v23  ;;  %v6206_v23 = vpack.c.bf16 %v8829_v8, %v8829_v8  ;;  %v5683_v56 = vadd.f32 %v5682_v37, %v5681_v12 }
 0x114   : > { %v3537_v58 = vpop.f32.mrf.mxu2  ;;  %v3857_v59 = vpop.f32.mrf.mxu3 }
 0x115   : > { %v3538_v18 = vadd.f32 %v8627_v46, %v3537_v58  ;;  %v3858_v62 = vadd.f32 %v8627_v46, %v3857_v59  ;;  %v2899_v63 = vpop.f32.mrf.mxu0  ;;  %v3224_v1 = vpop.f32.mrf.mxu1  ;;  %v8845_v45 = vperm.slane %v6206_v23, 0 }
 0x116   : > { %v2900_v2 = vadd.f32 %v8627_v46, %v2899_v63  ;;  %v3225_v3 = vadd.f32 %v8627_v46, %v3224_v1 }
 0x117   : > { %v4412_v6 = vmax.f32 %v3538_v18, 0.0  ;;  %v4540_v7 = vmax.f32 %v3858_v62, 0.0  ;;  %v6310_v59 = vunpack.c.l.b16 %v8845_v45 }
 0x118   : > { %v4157_v10 = vmax.f32 %v2900_v2, 0.0  ;;  %v4287_v11 = vmax.f32 %v3225_v3, 0.0 }
 0x119   : > { %v5359_v13 = vsel %vm4654_vm3, %v4412_v6, 0.0  ;;  %v5695_v14 = vsel %vm4654_vm3, %v4540_v7, 0.0 }
 0x11a   : > { %v5360_v61 = vadd.f32 %v5359_v13, %v5358_v17  ;;  %v5696_v15 = vadd.f32 %v5695_v14, %v5694_v52  ;;  %v4689_v16 = vsel %vm4654_vm3, %v4157_v10, 0.0  ;;  %v5034_v19 = vsel %vm4654_vm3, %v4287_v11, 0.0 }
 0x11b   : > { %v4690_v21 = vadd.f32 %v4689_v16, %v4688_v55  ;;  %v5035_v22 = vadd.f32 %v5034_v19, %v5033_v9  ;;  %v8855_v55 = vmul.f32 0.015625, %v5347_v39  ;;  %v6047_v14 = vmul.f32 0.015625, %v5683_v56 }
 0x11c   : > { %v3539_v26 = vpop.f32.mrf.mxu2  ;;  %v3859_v27 = vpop.f32.mrf.mxu3 }
 0x11d   : > { %v4691_v30 = vrot.slane %v4690_v21, 4  ;;  %v3540_v31 = vadd.f32 %v8627_v46, %v3539_v26  ;;  %v3860_v32 = vadd.f32 %v8627_v46, %v3859_v27  ;;  %v2902_v33 = vpop.f32.mrf.mxu0  ;;  %v3227_v34 = vpop.f32.mrf.mxu1  ;;  %v6238_v13 = vpack.c.bf16 %v8855_v55, %v8855_v55 }
 0x11e   : > { %v3228_v38 = vadd.f32 %v8627_v46, %v3227_v34  ;;  %v2903_v17 = vadd.f32 %v8627_v46, %v2902_v33 }
 0x11f   : > { %v4692_v40 = vadd.f32 %v4691_v30, %v4690_v21  ;;  %v4413_v41 = vmax.f32 %v3540_v31, 0.0  ;;  %v4541_v42 = vmax.f32 %v3860_v32, 0.0 }
 0x120   : > { %v4288_v47 = vmax.f32 %v3228_v38, 0.0  ;;  %7804 = vmatmul.msk.bf16.gmra.mxu0 %vm2077_vm2, %v8086_v28  ;;  %7869 = vmatmul.msk.bf16.gmra.mxu1 %vm2077_vm2, %v8151_v29  ;;  %v4158_v2 = vmax.f32 %v2903_v17, 0.0 }
 0x121   : > { %v4693_v48 = vrot.slane %v4692_v40, 2  ;;  %v5361_v49 = vsel %vm4654_vm3, %v4413_v41, 0.0  ;;  %v5697_v50 = vsel %vm4654_vm3, %v4541_v42, 0.0  ;;  %7932 = vmatmul.msk.bf16.gmra.mxu2 %vm2077_vm2, %v8214_v35  ;;  %7996 = vmatmul.msk.bf16.gmra.mxu3 %vm2077_vm2, %v8278_v36  ;;  %v8871_v35 = vperm.slane %v6238_v13, 0  ;;  %v8087_v41 = vld [vmem:[%s8552_s19 + $0x88] sm:$0xff]  ;;  %v8152_v42 = vld [vmem:[%s8552_s19 + $0x290] sm:$0xff] }
 0x122   : > { %v5362_v52 = vadd.f32 %v5361_v49, %v5360_v61  ;;  %v5698_v53 = vadd.f32 %v5697_v50, %v5696_v15  ;;  %v5036_v54 = vsel %vm4654_vm3, %v4288_v47, 0.0  ;;  %v6254_v36 = vpack.c.bf16 %v6047_v14, %v6047_v14 }
 0x123   : > { %v4694_v57 = vadd.f32 %v4693_v48, %v4692_v40  ;;  %v5037_v58 = vadd.f32 %v5036_v54, %v5035_v22  ;;  %v4697_v22 = vsel %vm4654_vm3, %v4158_v2, 0.0 }
 0x124   : > { %v5363_v60 = vrot.slane %v5362_v52, 4  ;;  %v5699_v18 = vrot.slane %v5698_v53, 4  ;;  %v3542_v62 = vpop.f32.mrf.mxu2  ;;  %v3862_v63 = vpop.f32.mrf.mxu3 }
 0x125   : > { %v4695_v1 = vrot.slane %v4694_v57, 1  ;;  %v3543_v3 = vadd.f32 %v8627_v46, %v3542_v62  ;;  %v3863_v4 = vadd.f32 %v8627_v46, %v3862_v63  ;;  %v2904_v6 = vpop.f32.mrf.mxu0  ;;  %v3229_v7 = vpop.f32.mrf.mxu1 }
 0x126   : > { %v5364_v9 = vadd.f32 %v5363_v60, %v5362_v52  ;;  %v5700_v10 = vadd.f32 %v5699_v18, %v5698_v53  ;;  %v2905_v11 = vadd.f32 %v8627_v46, %v2904_v6  ;;  %v3230_v12 = vadd.f32 %v8627_v46, %v3229_v7  ;;  %v8215_v52 = vld [vmem:[%s8552_s19 + $0x488] sm:$0xff] }
 0x127   : > { %v4696_v61 = vadd.f32 %v4695_v1, %v4694_v57  ;;  %v4414_v23 = vmax.f32 %v3543_v3, 0.0  ;;  %v4542_v26 = vmax.f32 %v3863_v4, 0.0  ;;  %v8279_v53 = vld [vmem:[%s8552_s19 + $0x688] sm:$0xff]  ;;  %v6552_v6 = vperm.slane %v6254_v36, 0 }
 0x128   : > { %v5365_v15 = vrot.slane %v5364_v9, 2  ;;  %v5701_v16 = vrot.slane %v5700_v10, 2  ;;  %v4159_v19 = vmax.f32 %v2905_v11, 0.0  ;;  %v4289_v20 = vmax.f32 %v3230_v12, 0.0 }
 0x129   : > { %v6000_v21 = vmul.f32 0.015625, %v4696_v61  ;;  %v5369_v48 = vsel %vm4654_vm3, %v4414_v23, 0.0  ;;  %v5705_v18 = vsel %vm4654_vm3, %v4542_v26, 0.0 }
 0x12a   : > { %v5366_v27 = vadd.f32 %v5365_v15, %v5364_v9  ;;  %v5702_v28 = vadd.f32 %v5701_v16, %v5700_v10  ;;  %v4698_v29 = vsel %vm4654_vm3, %v4159_v19, 0.0  ;;  %v5038_v30 = vsel %vm4654_vm3, %v4289_v20, 0.0 }
 0x12b   : > { %v8869_v31 = vsel %vm6127_vm4, %v6000_v21, %v8829_v8  ;;  %v6207_v32 = vpack.c.bf16 %v6000_v21, %v6000_v21  ;;  %v4699_v33 = vadd.f32 %v4698_v29, %v4697_v22  ;;  %v5039_v34 = vadd.f32 %v5038_v30, %v5037_v58 }
 0x12c   : > { %v5367_v37 = vrot.slane %v5366_v27, 1  ;;  %v5703_v38 = vrot.slane %v5702_v28, 1  ;;  %v3544_v39 = vpop.f32.mrf.mxu2  ;;  %v3864_v40 = vpop.f32.mrf.mxu3 }
 0x12d   : > { %v6295_v47 = vperm.slane %v6207_v32, 0  ;;  %v3545_v8 = vadd.f32 %v8627_v46, %v3544_v39  ;;  %v3865_v49 = vadd.f32 %v8627_v46, %v3864_v40  ;;  %v2907_v50 = vpop.f32.mrf.mxu0  ;;  %v3232_v17 = vpop.f32.mrf.mxu1 }
 0x12e   : > { %v5368_v54 = vadd.f32 %v5367_v37, %v5366_v27  ;;  %v5704_v56 = vadd.f32 %v5703_v38, %v5702_v28  ;;  %v2908_v57 = vadd.f32 %v8627_v46, %v2907_v50  ;;  %v3233_v58 = vadd.f32 %v8627_v46, %v3232_v17 }
 0x12f   : > { %v6311_v60 = vunpack.c.l.b16 %v6295_v47  ;;  %v4415_v62 = vmax.f32 %v3545_v8, 0.0  ;;  %v4543_v63 = vmax.f32 %v3865_v49, 0.0  ;;  %v6568_v27 = vunpack.c.l.b16 %v6552_v6 }
 0x130   : > { %v6032_v1 = vmul.f32 0.015625, %v5368_v54  ;;  %v6048_v2 = vmul.f32 0.015625, %v5704_v56  ;;  %v4160_v3 = vmax.f32 %v2908_v57, 0.0  ;;  %v4290_v4 = vmax.f32 %v3233_v58, 0.0  ;;  %7805 = vmatmul.msk.bf16.gmra.mxu0 %vm2077_vm2, %v8087_v41  ;;  %7870 = vmatmul.msk.bf16.gmra.mxu1 %vm2077_vm2, %v8152_v42  ;;  %v8088_v56 = vld [vmem:[%s8552_s19 + $0x90] sm:$0xff]  ;;  %v8153_v57 = vld [vmem:[%s8552_s19 + $0x298] sm:$0xff] }
 0x131   : > { %v8888_v7 = vsel %vm6127_vm4, %v6311_v60, %v6310_v59  ;;  %v5370_v9 = vsel %vm4654_vm3, %v4415_v62, 0.0  ;;  %v5706_v10 = vsel %vm4654_vm3, %v4543_v63, 0.0  ;;  %7933 = vmatmul.msk.bf16.gmra.mxu2 %vm2077_vm2, %v8215_v52  ;;  %7997 = vmatmul.msk.bf16.gmra.mxu3 %vm2077_vm2, %v8279_v53  ;;  %v8216_v63 = vld [vmem:[%s8552_s19 + $0x490] sm:$0xff] }
 0x132   : > { %v8896_v11 = vsel %vm6127_vm4, %v6032_v1, %v8855_v55  ;;  %v6239_v12 = vpack.c.bf16 %v6032_v1, %v6032_v1  ;;  %v8899_v13 = vsel %vm6127_vm4, %v6048_v2, %v6047_v14  ;;  %v6255_v45 = vpack.c.bf16 %v6048_v2, %v6048_v2  ;;  %v8280_v1 = vld [vmem:[%s8552_s19 + $0x690] sm:$0xff]  ;;  %v8927_v2 = vld [vmem:[%s10716_s2] ss:$0 sm:$0xff] }
 0x133   : > { %v5371_v61 = vadd.f32 %v5370_v9, %v5369_v48  ;;  %v5707_v59 = vadd.f32 %v5706_v10, %v5705_v18  ;;  %v4700_v15 = vsel %vm4654_vm3, %v4160_v3, 0.0  ;;  %v5040_v16 = vsel %vm4654_vm3, %v4290_v4, 0.0 }
 0x134   : > { %v6467_v19 = vperm.slane %v6239_v12, 0  ;;  %v6553_v20 = vperm.slane %v6255_v45, 0  ;;  %v4701_v21 = vadd.f32 %v4700_v15, %v4699_v33  ;;  %v5041_v22 = vadd.f32 %v5040_v16, %v5039_v34  ;;  %v3547_v23 = vpop.f32.mrf.mxu2  ;;  %v3867_v26 = vpop.f32.mrf.mxu3 }
 0x135   : > { %v6482_v55 = vunpack.c.l.b16 %v8871_v35  ;;  %v3548_v28 = vadd.f32 %v8627_v46, %v3547_v23  ;;  %v3868_v14 = vadd.f32 %v8627_v46, %v3867_v26  ;;  %v2909_v29 = vpop.f32.mrf.mxu0  ;;  %v3234_v30 = vpop.f32.mrf.mxu1 }
 0x136   : > { %v6483_v32 = vunpack.c.l.b16 %v6467_v19  ;;  %v6569_v36 = vunpack.c.l.b16 %v6553_v20  ;;  %v2910_v37 = vadd.f32 %v8627_v46, %v2909_v29  ;;  %v3235_v38 = vadd.f32 %v8627_v46, %v3234_v30 }
 0x137   : > { %v4416_v39 = vmax.f32 %v3548_v28, 0.0  ;;  %v4544_v33 = vmax.f32 %v3868_v14, 0.0 }
 0x138   : > { %v8909_v34 = vsel %vm6127_vm4, %v6483_v32, %v6482_v55  ;;  %v8912_v35 = vsel %vm6127_vm4, %v6569_v36, %v6568_v27  ;;  %v4161_v40 = vmax.f32 %v2910_v37, 0.0  ;;  %v4291_v41 = vmax.f32 %v3235_v38, 0.0 }
 0x139   : > { %v5372_v42 = vsel %vm4654_vm3, %v4416_v39, 0.0  ;;  %v5708_v47 = vsel %vm4654_vm3, %v4544_v33, 0.0 }
 0x13a   : > { %v5373_v48 = vadd.f32 %v5372_v42, %v5371_v61  ;;  %v5709_v8 = vadd.f32 %v5708_v47, %v5707_v59  ;;  %v4702_v49 = vsel %vm4654_vm3, %v4161_v40, 0.0  ;;  %v5042_v50 = vsel %vm4654_vm3, %v4291_v41, 0.0 }
 0x13b   : > { %v4703_v17 = vadd.f32 %v4702_v49, %v4701_v21  ;;  %v5043_v52 = vadd.f32 %v5042_v50, %v5041_v22  ;;  %v8089_v49 = vld [vmem:[%s8552_s19 + $0x98] sm:$0xff]  ;;  %v8154_v50 = vld [vmem:[%s8552_s19 + $0x2a0] sm:$0xff] }
 0x13c   : > { %v3549_v53 = vpop.f32.mrf.mxu2  ;;  %v3869_v54 = vpop.f32.mrf.mxu3 }
 0x13d   : > { %v3550_v58 = vadd.f32 %v8627_v46, %v3549_v53  ;;  %v3870_v60 = vadd.f32 %v8627_v46, %v3869_v54  ;;  %v2912_v18 = vpop.f32.mrf.mxu0  ;;  %v3237_v62 = vpop.f32.mrf.mxu1 }
 0x13e   : > { %v2913_v3 = vadd.f32 %v8927_v2, %v2912_v18  ;;  %v3238_v4 = vadd.f32 %v8927_v2, %v3237_v62 }
 0x13f   : > { %v4417_v6 = vmax.f32 %v3550_v58, 0.0  ;;  %v4545_v9 = vmax.f32 %v3870_v60, 0.0 }
 0x140   : > { %v4162_v10 = vmax.f32 %v2913_v3, 0.0  ;;  %v4292_v12 = vmax.f32 %v3238_v4, 0.0  ;;  %7806 = vmatmul.msk.bf16.gmra.mxu0 %vm2077_vm2, %v8088_v56  ;;  %7871 = vmatmul.msk.bf16.gmra.mxu1 %vm2077_vm2, %v8153_v57  ;;  %v8217_v56 = vld [vmem:[%s8552_s19 + $0x498] sm:$0xff] }
 0x141   : > { %v5374_v46 = vsel %vm4654_vm3, %v4417_v6, 0.0  ;;  %v5710_v45 = vsel %vm4654_vm3, %v4545_v9, 0.0  ;;  %7934 = vmatmul.msk.bf16.gmra.mxu2 %vm2077_vm2, %v8216_v63  ;;  %7998 = vmatmul.msk.bf16.gmra.mxu3 %vm2077_vm2, %v8280_v1  ;;  %v8281_v57 = vld [vmem:[%s8552_s19 + $0x698] sm:$0xff] }
 0x142   : > { %v5375_v61 = vadd.f32 %v5374_v46, %v5373_v48  ;;  %v5711_v59 = vadd.f32 %v5710_v45, %v5709_v8  ;;  %v4704_v15 = vsel %vm4654_vm3, %v4162_v10, 0.0  ;;  %v5044_v16 = vsel %vm4654_vm3, %v4292_v12, 0.0 }
 0x143   : > { %v4705_v19 = vadd.f32 %v4704_v15, %v4703_v17  ;;  %v5045_v20 = vadd.f32 %v5044_v16, %v5043_v52 }
 0x144   : > { %v3552_v21 = vpop.f32.mrf.mxu2  ;;  %v3872_v22 = vpop.f32.mrf.mxu3 }
 0x145   : > { %v3553_v23 = vadd.f32 %v8927_v2, %v3552_v21  ;;  %v3873_v26 = vadd.f32 %v8927_v2, %v3872_v22  ;;  %v2914_v55 = vpop.f32.mrf.mxu0  ;;  %v3239_v27 = vpop.f32.mrf.mxu1 }
 0x146   : > { %v2915_v28 = vadd.f32 %v8927_v2, %v2914_v55  ;;  %v3240_v14 = vadd.f32 %v8927_v2, %v3239_v27 }
 0x147   : > { %v4418_v29 = vmax.f32 %v3553_v23, 0.0  ;;  %v4546_v30 = vmax.f32 %v3873_v26, 0.0 }
 0x148   : > { %v4163_v32 = vmax.f32 %v2915_v28, 0.0  ;;  %v4293_v36 = vmax.f32 %v3240_v14, 0.0 }
 0x149   : > { %v5376_v37 = vsel %vm4654_vm3, %v4418_v29, 0.0  ;;  %v5712_v38 = vsel %vm4654_vm3, %v4546_v30, 0.0 }
 0x14a   : > { %v5377_v39 = vadd.f32 %v5376_v37, %v5375_v61  ;;  %v5713_v33 = vadd.f32 %v5712_v38, %v5711_v59  ;;  %v4706_v40 = vsel %vm4654_vm3, %v4163_v32, 0.0  ;;  %v5046_v41 = vsel %vm4654_vm3, %v4293_v36, 0.0 }
 0x14b   : > { %v4707_v42 = vadd.f32 %v4706_v40, %v4705_v19  ;;  %v8947_v47 = vadd.f32 %v5046_v41, %v5045_v20  ;;  %v8155_v40 = vld [vmem:[%s8552_s19 + $0x2a8] sm:$0xff] }
 0x14c   : > { %v3554_v48 = vpop.f32.mrf.mxu2  ;;  %v3874_v8 = vpop.f32.mrf.mxu3 }
 0x14d   : > { %v3555_v17 = vadd.f32 %v8927_v2, %v3554_v48  ;;  %v3875_v52 = vadd.f32 %v8927_v2, %v3874_v8  ;;  %v2917_v53 = vpop.f32.mrf.mxu0  ;;  %v3242_v54 = vpop.f32.mrf.mxu1 }
 0x14e   : > { %v2918_v58 = vadd.f32 %v8927_v2, %v2917_v53  ;;  %v3243_v63 = vadd.f32 %v8927_v2, %v3242_v54 }
 0x14f   : > { %v4419_v60 = vmax.f32 %v3555_v17, 0.0  ;;  %v4547_v18 = vmax.f32 %v3875_v52, 0.0  ;;  %v8282_v17 = vld [vmem:[%s8552_s19 + $0x6a0] sm:$0xff] }
 0x150   : > { %v4164_v62 = vmax.f32 %v2918_v58, 0.0  ;;  %7807 = vmatmul.msk.bf16.gmra.mxu0 %vm2077_vm2, %v8089_v49  ;;  %7872 = vmatmul.msk.bf16.gmra.mxu1 %vm2077_vm2, %v8154_v50  ;;  %v4294_v12 = vmax.f32 %v3243_v63, 0.0  ;;  %v8218_v50 = vld [vmem:[%s8552_s19 + $0x4a0] sm:$0xff] }
 0x151   : > { %v5378_v1 = vsel %vm4654_vm3, %v4419_v60, 0.0  ;;  %v5714_v3 = vsel %vm4654_vm3, %v4547_v18, 0.0  ;;  %7935 = vmatmul.msk.bf16.gmra.mxu2 %vm2077_vm2, %v8217_v56  ;;  %7999 = vmatmul.msk.bf16.gmra.mxu3 %vm2077_vm2, %v8281_v57 }
 0x152   : > { %v5379_v4 = vadd.f32 %v5378_v1, %v5377_v39  ;;  %v5715_v6 = vadd.f32 %v5714_v3, %v5713_v33  ;;  %v4708_v9 = vsel %vm4654_vm3, %v4164_v62, 0.0  ;;  %v5054_v23 = vsel %vm4654_vm3, %v4294_v12, 0.0  ;;  %v8090_v33 = vld [vmem:[%s8552_s19 + $0xa0] sm:$0xff] }
 0x153   : > { %v4709_v10 = vadd.f32 %v4708_v9, %v4707_v42 }
 0x154   : > { %v3557_v46 = vpop.f32.mrf.mxu2  ;;  %v3877_v45 = vpop.f32.mrf.mxu3 }
 0x155   : > { %v3558_v61 = vadd.f32 %v8927_v2, %v3557_v46  ;;  %v3878_v59 = vadd.f32 %v8927_v2, %v3877_v45  ;;  %v2919_v15 = vpop.f32.mrf.mxu0  ;;  %v3244_v16 = vpop.f32.mrf.mxu1 }
 0x156   : > { %v2920_v19 = vadd.f32 %v8927_v2, %v2919_v15  ;;  %v3245_v20 = vadd.f32 %v8927_v2, %v3244_v16 }
 0x157   : > { %v4420_v21 = vmax.f32 %v3558_v61, 0.0  ;;  %v4548_v22 = vmax.f32 %v3878_v59, 0.0 }
 0x158   : > { %v4165_v26 = vmax.f32 %v2920_v19, 0.0  ;;  %v4295_v55 = vmax.f32 %v3245_v20, 0.0 }
 0x159   : > { %v5380_v27 = vsel %vm4654_vm3, %v4420_v21, 0.0  ;;  %v5716_v28 = vsel %vm4654_vm3, %v4548_v22, 0.0 }
 0x15a   : > { %v5381_v14 = vadd.f32 %v5380_v27, %v5379_v4  ;;  %v5717_v29 = vadd.f32 %v5716_v28, %v5715_v6  ;;  %v4710_v30 = vsel %vm4654_vm3, %v4165_v26, 0.0  ;;  %v5055_v32 = vsel %vm4654_vm3, %v4295_v55, 0.0 }
 0x15b   : > { %v4711_v36 = vadd.f32 %v4710_v30, %v4709_v10  ;;  %v5056_v37 = vadd.f32 %v5055_v32, %v5054_v23 }
 0x15c   : > { %v3559_v38 = vpop.f32.mrf.mxu2  ;;  %v3879_v39 = vpop.f32.mrf.mxu3 }
 0x15d   : > { %v4712_v41 = vrot.slane %v4711_v36, 4  ;;  %v3560_v42 = vadd.f32 %v8927_v2, %v3559_v38  ;;  %v3880_v48 = vadd.f32 %v8927_v2, %v3879_v39  ;;  %v2922_v8 = vpop.f32.mrf.mxu0  ;;  %v3247_v49 = vpop.f32.mrf.mxu1 }
 0x15e   : > { %v3248_v52 = vadd.f32 %v8927_v2, %v3247_v49  ;;  %v2923_v62 = vadd.f32 %v8927_v2, %v2922_v8 }
 0x15f   : > { %v4713_v53 = vadd.f32 %v4712_v41, %v4711_v36  ;;  %v4421_v54 = vmax.f32 %v3560_v42, 0.0  ;;  %v4549_v56 = vmax.f32 %v3880_v48, 0.0 }
 0x160   : > { %v4296_v57 = vmax.f32 %v3248_v52, 0.0  ;;  %7808 = vmatmul.msk.bf16.gmra.mxu0 %vm2077_vm2, %v8090_v33  ;;  %7873 = vmatmul.msk.bf16.gmra.mxu1 %vm2077_vm2, %v8155_v40  ;;  %v4166_v61 = vmax.f32 %v2923_v62, 0.0  ;;  %v8091_v52 = vld [vmem:[%s8552_s19 + $0xa8] sm:$0xff] }
 0x161   : > { %v4714_v58 = vrot.slane %v4713_v53, 2  ;;  %v5382_v60 = vsel %vm4654_vm3, %v4421_v54, 0.0  ;;  %v5718_v18 = vsel %vm4654_vm3, %v4549_v56, 0.0  ;;  %7936 = vmatmul.msk.bf16.gmra.mxu2 %vm2077_vm2, %v8218_v50  ;;  %8000 = vmatmul.msk.bf16.gmra.mxu3 %vm2077_vm2, %v8282_v17  ;;  %v8283_v62 = vld [vmem:[%s8552_s19 + $0x6a8] sm:$0xff] }
 0x162   : > { %v5383_v63 = vadd.f32 %v5382_v60, %v5381_v14  ;;  %v5719_v1 = vadd.f32 %v5718_v18, %v5717_v29  ;;  %v5057_v3 = vsel %vm4654_vm3, %v4296_v57, 0.0  ;;  %v4718_v30 = vsel %vm4654_vm3, %v4166_v61, 0.0  ;;  %v8219_v18 = vld [vmem:[%s8552_s19 + $0x4a8] sm:$0xff] }
 0x163   : > { %v4715_v4 = vadd.f32 %v4714_v58, %v4713_v53  ;;  %v5058_v6 = vadd.f32 %v5057_v3, %v5056_v37  ;;  %v8156_v53 = vld [vmem:[%s8552_s19 + $0x2b0] sm:$0xff] }
 0x164   : > { %v5384_v9 = vrot.slane %v5383_v63, 4  ;;  %v5720_v10 = vrot.slane %v5719_v1, 4  ;;  %v3562_v12 = vpop.f32.mrf.mxu2  ;;  %v3882_v46 = vpop.f32.mrf.mxu3 }
 0x165   : > { %v4716_v45 = vrot.slane %v4715_v4, 1  ;;  %v3563_v59 = vadd.f32 %v8927_v2, %v3562_v12  ;;  %v3883_v15 = vadd.f32 %v8927_v2, %v3882_v46  ;;  %v2924_v16 = vpop.f32.mrf.mxu0  ;;  %v3249_v19 = vpop.f32.mrf.mxu1 }
 0x166   : > { %v5385_v20 = vadd.f32 %v5384_v9, %v5383_v63  ;;  %v5721_v21 = vadd.f32 %v5720_v10, %v5719_v1  ;;  %v2925_v22 = vadd.f32 %v8927_v2, %v2924_v16  ;;  %v3250_v23 = vadd.f32 %v8927_v2, %v3249_v19 }
 0x167   : > { %v4717_v26 = vadd.f32 %v4716_v45, %v4715_v4  ;;  %v4422_v32 = vmax.f32 %v3563_v59, 0.0  ;;  %v4550_v36 = vmax.f32 %v3883_v15, 0.0 }
 0x168   : > { %v5386_v55 = vrot.slane %v5385_v20, 2  ;;  %v5722_v27 = vrot.slane %v5721_v21, 2  ;;  %v4167_v28 = vmax.f32 %v2925_v22, 0.0  ;;  %v4297_v14 = vmax.f32 %v3250_v23, 0.0 }
 0x169   : > { %v6001_v29 = vmul.f32 0.015625, %v4717_v26  ;;  %v5390_v56 = vsel %vm4654_vm3, %v4422_v32, 0.0  ;;  %v5726_v9 = vsel %vm4654_vm3, %v4550_v36, 0.0 }
 0x16a   : > { %v5387_v37 = vadd.f32 %v5386_v55, %v5385_v20  ;;  %v5723_v38 = vadd.f32 %v5722_v27, %v5721_v21  ;;  %v4719_v39 = vsel %vm4654_vm3, %v4167_v28, 0.0  ;;  %v5059_v33 = vsel %vm4654_vm3, %v4297_v14, 0.0 }
 0x16b   : > { %v8997_v40 = vsel %vm6129_vm5, %v6001_v29, %v8869_v31  ;;  %v6208_v41 = vpack.c.bf16 %v6001_v29, %v6001_v29  ;;  %v4720_v42 = vadd.f32 %v4719_v39, %v4718_v30  ;;  %v5060_v48 = vadd.f32 %v5059_v33, %v5058_v6 }
 0x16c   : > { %v5388_v8 = vrot.slane %v5387_v37, 1  ;;  %v5724_v49 = vrot.slane %v5723_v38, 1  ;;  %v3564_v50 = vpop.f32.mrf.mxu2  ;;  %v3884_v17 = vpop.f32.mrf.mxu3 }
 0x16d   : > { %v6296_v54 = vperm.slane %v6208_v41, 0  ;;  %v3565_v57 = vadd.f32 %v8927_v2, %v3564_v50  ;;  %v3885_v58 = vadd.f32 %v8927_v2, %v3884_v17  ;;  %v2927_v31 = vpop.f32.mrf.mxu0  ;;  %v3252_v60 = vpop.f32.mrf.mxu1 }
 0x16e   : > { %v5389_v63 = vadd.f32 %v5388_v8, %v5387_v37  ;;  %v5725_v1 = vadd.f32 %v5724_v49, %v5723_v38  ;;  %v2928_v3 = vadd.f32 %v8927_v2, %v2927_v31  ;;  %v3253_v4 = vadd.f32 %v8927_v2, %v3252_v60 }
 0x16f   : > { %v6312_v6 = vunpack.c.l.b16 %v6296_v54  ;;  %v4423_v10 = vmax.f32 %v3565_v57, 0.0  ;;  %v4551_v12 = vmax.f32 %v3885_v58, 0.0 }
 0x170   : > { %v6033_v46 = vmul.f32 0.015625, %v5389_v63  ;;  %v6049_v45 = vmul.f32 0.015625, %v5725_v1  ;;  %v4168_v61 = vmax.f32 %v2928_v3, 0.0  ;;  %v4298_v59 = vmax.f32 %v3253_v4, 0.0  ;;  %7809 = vmatmul.msk.bf16.gmra.mxu0 %vm2077_vm2, %v8091_v52  ;;  %7874 = vmatmul.msk.bf16.gmra.mxu1 %vm2077_vm2, %v8156_v53  ;;  %v8157_v63 = vld [vmem:[%s8552_s19 + $0x2b8] sm:$0xff] }
 0x171   : > { %v9013_v15 = vsel %vm6129_vm5, %v6312_v6, %v8888_v7  ;;  %v5391_v16 = vsel %vm4654_vm3, %v4423_v10, 0.0  ;;  %v5727_v19 = vsel %vm4654_vm3, %v4551_v12, 0.0  ;;  %7937 = vmatmul.msk.bf16.gmra.mxu2 %vm2077_vm2, %v8219_v18  ;;  %8001 = vmatmul.msk.bf16.gmra.mxu3 %vm2077_vm2, %v8283_v62  ;;  %v8284_v10 = vld [vmem:[%s8552_s19 + $0x6b0] sm:$0xff] }
 0x172   : > { %v9021_v20 = vsel %vm6129_vm5, %v6033_v46, %v8896_v11  ;;  %v6240_v21 = vpack.c.bf16 %v6033_v46, %v6033_v46  ;;  %v9025_v22 = vsel %vm6129_vm5, %v6049_v45, %v8899_v13  ;;  %v6256_v23 = vpack.c.bf16 %v6049_v45, %v6049_v45 }
 0x173   : > { %v5392_v7 = vadd.f32 %v5391_v16, %v5390_v56  ;;  %v5728_v26 = vadd.f32 %v5727_v19, %v5726_v9  ;;  %v4721_v55 = vsel %vm4654_vm3, %v4168_v61, 0.0  ;;  %v5061_v27 = vsel %vm4654_vm3, %v4298_v59, 0.0  ;;  %v8220_v9 = vld [vmem:[%s8552_s19 + $0x4b0] sm:$0xff] }
 0x174   : > { %v6468_v28 = vperm.slane %v6240_v21, 0  ;;  %v6554_v14 = vperm.slane %v6256_v23, 0  ;;  %v4722_v29 = vadd.f32 %v4721_v55, %v4720_v42  ;;  %v5062_v30 = vadd.f32 %v5061_v27, %v5060_v48  ;;  %v3567_v32 = vpop.f32.mrf.mxu2  ;;  %v3887_v36 = vpop.f32.mrf.mxu3 }
 0x175   : > { %v3568_v11 = vadd.f32 %v8927_v2, %v3567_v32  ;;  %v3888_v37 = vadd.f32 %v8927_v2, %v3887_v36  ;;  %v2929_v38 = vpop.f32.mrf.mxu0  ;;  %v3254_v13 = vpop.f32.mrf.mxu1 }
 0x176   : > { %v6484_v39 = vunpack.c.l.b16 %v6468_v28  ;;  %v6570_v33 = vunpack.c.l.b16 %v6554_v14  ;;  %v2930_v41 = vadd.f32 %v8927_v2, %v2929_v38  ;;  %v3255_v8 = vadd.f32 %v8927_v2, %v3254_v13 }
 0x177   : > { %v4424_v49 = vmax.f32 %v3568_v11, 0.0  ;;  %v4552_v50 = vmax.f32 %v3888_v37, 0.0 }
 0x178   : > { %v9035_v42 = vsel %vm6129_vm5, %v6484_v39, %v8909_v34  ;;  %v9039_v48 = vsel %vm6129_vm5, %v6570_v33, %v8912_v35  ;;  %v4169_v17 = vmax.f32 %v2930_v41, 0.0  ;;  %v4299_v52 = vmax.f32 %v3255_v8, 0.0  ;;  %v8092_v35 = vld [vmem:[%s8552_s19 + $0xb0] sm:$0xff] }
 0x179   : > { %v5393_v53 = vsel %vm4654_vm3, %v4424_v49, 0.0  ;;  %v5729_v54 = vsel %vm4654_vm3, %v4552_v50, 0.0 }
 0x17a   : > { %v5394_v56 = vadd.f32 %v5393_v53, %v5392_v7  ;;  %v5730_v57 = vadd.f32 %v5729_v54, %v5728_v26  ;;  %v4723_v58 = vsel %vm4654_vm3, %v4169_v17, 0.0  ;;  %v5063_v31 = vsel %vm4654_vm3, %v4299_v52, 0.0 }
 0x17b   : > { %v4724_v34 = vadd.f32 %v4723_v58, %v4722_v29  ;;  %v5064_v60 = vadd.f32 %v5063_v31, %v5062_v30  ;;  %v8093_v31 = vld [vmem:[%s8552_s19 + $0xb8] sm:$0xff] }
 0x17c   : > { %v3569_v18 = vpop.f32.mrf.mxu2  ;;  %v3889_v62 = vpop.f32.mrf.mxu3 }
 0x17d   : > { %v3570_v1 = vadd.f32 %v8927_v2, %v3569_v18  ;;  %v3890_v3 = vadd.f32 %v8927_v2, %v3889_v62  ;;  %v2932_v4 = vpop.f32.mrf.mxu0  ;;  %v3257_v6 = vpop.f32.mrf.mxu1 }
 0x17e   : > { %v2933_v12 = vadd.f32 %v8927_v2, %v2932_v4  ;;  %v3258_v46 = vadd.f32 %v8927_v2, %v3257_v6 }
 0x17f   : > { %v4425_v45 = vmax.f32 %v3570_v1, 0.0  ;;  %v4553_v61 = vmax.f32 %v3890_v3, 0.0  ;;  %v8285_v1 = vld [vmem:[%s8552_s19 + $0x6b8] sm:$0xff] }
 0x180   : > { %v4170_v59 = vmax.f32 %v2933_v12, 0.0  ;;  %v4300_v16 = vmax.f32 %v3258_v46, 0.0  ;;  %7810 = vmatmul.msk.bf16.gmra.mxu0 %vm2077_vm2, %v8092_v35  ;;  %7875 = vmatmul.msk.bf16.gmra.mxu1 %vm2077_vm2, %v8157_v63  ;;  %v8221_v63 = vld [vmem:[%s8552_s19 + $0x4b8] sm:$0xff] }
 0x181   : > { %v5395_v19 = vsel %vm4654_vm3, %v4425_v45, 0.0  ;;  %v5731_v21 = vsel %vm4654_vm3, %v4553_v61, 0.0  ;;  %7938 = vmatmul.msk.bf16.gmra.mxu2 %vm2077_vm2, %v8220_v9  ;;  %8002 = vmatmul.msk.bf16.gmra.mxu3 %vm2077_vm2, %v8284_v10 }
 0x182   : > { %v5396_v23 = vadd.f32 %v5395_v19, %v5394_v56  ;;  %v5732_v7 = vadd.f32 %v5731_v21, %v5730_v57  ;;  %v4725_v26 = vsel %vm4654_vm3, %v4170_v59, 0.0  ;;  %v5065_v55 = vsel %vm4654_vm3, %v4300_v16, 0.0 }
 0x183   : > { %v4726_v27 = vadd.f32 %v4725_v26, %v4724_v34  ;;  %v5066_v28 = vadd.f32 %v5065_v55, %v5064_v60  ;;  %v8158_v34 = vld [vmem:[%s8552_s19 + $0x2c0] sm:$0xff] }
 0x184   : > { %v3572_v14 = vpop.f32.mrf.mxu2  ;;  %v3892_v29 = vpop.f32.mrf.mxu3 }
 0x185   : > { %v3573_v30 = vadd.f32 %v8927_v2, %v3572_v14  ;;  %v3893_v32 = vadd.f32 %v8927_v2, %v3892_v29  ;;  %v2934_v36 = vpop.f32.mrf.mxu0  ;;  %v3259_v11 = vpop.f32.mrf.mxu1 }
 0x186   : > { %v2935_v37 = vadd.f32 %v8927_v2, %v2934_v36  ;;  %v3260_v38 = vadd.f32 %v8927_v2, %v3259_v11 }
 0x187   : > { %v4426_v13 = vmax.f32 %v3573_v30, 0.0  ;;  %v4554_v39 = vmax.f32 %v3893_v32, 0.0 }
 0x188   : > { %v4171_v33 = vmax.f32 %v2935_v37, 0.0  ;;  %v4301_v41 = vmax.f32 %v3260_v38, 0.0 }
 0x189   : > { %v5397_v8 = vsel %vm4654_vm3, %v4426_v13, 0.0  ;;  %v5733_v49 = vsel %vm4654_vm3, %v4554_v39, 0.0 }
 0x18a   : > { %v5398_v50 = vadd.f32 %v5397_v8, %v5396_v23  ;;  %v5734_v17 = vadd.f32 %v5733_v49, %v5732_v7  ;;  %v4727_v52 = vsel %vm4654_vm3, %v4171_v33, 0.0  ;;  %v5067_v53 = vsel %vm4654_vm3, %v4301_v41, 0.0 }
 0x18b   : > { %v4728_v54 = vadd.f32 %v4727_v52, %v4726_v27  ;;  %v9069_v56 = vadd.f32 %v5067_v53, %v5066_v28  ;;  %v8094_v52 = vld [vmem:[%s8552_s19 + $0xc0] sm:$0xff]  ;;  %v8159_v53 = vld [vmem:[%s8552_s19 + $0x2c8] sm:$0xff] }
 0x18c   : > { %v3574_v57 = vpop.f32.mrf.mxu2  ;;  %v3894_v58 = vpop.f32.mrf.mxu3 }
 0x18d   : > { %v3575_v60 = vadd.f32 %v8927_v2, %v3574_v57  ;;  %v3895_v18 = vadd.f32 %v8927_v2, %v3894_v58  ;;  %v2937_v62 = vpop.f32.mrf.mxu0  ;;  %v3262_v35 = vpop.f32.mrf.mxu1 }
 0x18e   : > { %v2938_v3 = vadd.f32 %v8927_v2, %v2937_v62  ;;  %v3263_v10 = vadd.f32 %v8927_v2, %v3262_v35 }
 0x18f   : > { %v4427_v4 = vmax.f32 %v3575_v60, 0.0  ;;  %v4555_v6 = vmax.f32 %v3895_v18, 0.0  ;;  %v8222_v60 = vld [vmem:[%s8552_s19 + $0x4c0] sm:$0xff] }
 0x190   : > { %v4172_v9 = vmax.f32 %v2938_v3, 0.0  ;;  %7811 = vmatmul.msk.bf16.gmra.mxu0 %vm2077_vm2, %v8093_v31  ;;  %7876 = vmatmul.msk.bf16.gmra.mxu1 %vm2077_vm2, %v8158_v34  ;;  %v4302_v19 = vmax.f32 %v3263_v10, 0.0  ;;  %v8286_v18 = vld [vmem:[%s8552_s19 + $0x6c0] sm:$0xff] }
 0x191   : > { %v5399_v12 = vsel %vm4654_vm3, %v4427_v4, 0.0  ;;  %v5735_v46 = vsel %vm4654_vm3, %v4555_v6, 0.0  ;;  %7939 = vmatmul.msk.bf16.gmra.mxu2 %vm2077_vm2, %v8221_v63  ;;  %8003 = vmatmul.msk.bf16.gmra.mxu3 %vm2077_vm2, %v8285_v1 }
 0x192   : > { %v5400_v45 = vadd.f32 %v5399_v12, %v5398_v50  ;;  %v5736_v61 = vadd.f32 %v5735_v46, %v5734_v17  ;;  %v4729_v59 = vsel %vm4654_vm3, %v4172_v9, 0.0  ;;  %v5075_v32 = vsel %vm4654_vm3, %v4302_v19, 0.0 }
 0x193   : > { %v4730_v16 = vadd.f32 %v4729_v59, %v4728_v54 }
 0x194   : > { %v3577_v21 = vpop.f32.mrf.mxu2  ;;  %v3897_v23 = vpop.f32.mrf.mxu3 }
 0x195   : > { %v3578_v7 = vadd.f32 %v8927_v2, %v3577_v21  ;;  %v3898_v26 = vadd.f32 %v8927_v2, %v3897_v23  ;;  %v2939_v55 = vpop.f32.mrf.mxu0  ;;  %v3264_v27 = vpop.f32.mrf.mxu1 }
 0x196   : > { %v2940_v28 = vadd.f32 %v8927_v2, %v2939_v55  ;;  %v3265_v14 = vadd.f32 %v8927_v2, %v3264_v27 }
 0x197   : > { %v4428_v29 = vmax.f32 %v3578_v7, 0.0  ;;  %v4556_v30 = vmax.f32 %v3898_v26, 0.0 }
 0x198   : > { %v4173_v36 = vmax.f32 %v2940_v28, 0.0  ;;  %v4303_v11 = vmax.f32 %v3265_v14, 0.0 }
 0x199   : > { %v5401_v37 = vsel %vm4654_vm3, %v4428_v29, 0.0  ;;  %v5737_v38 = vsel %vm4654_vm3, %v4556_v30, 0.0 }
 0x19a   : > { %v5402_v13 = vadd.f32 %v5401_v37, %v5400_v45  ;;  %v5738_v39 = vadd.f32 %v5737_v38, %v5736_v61  ;;  %v4731_v33 = vsel %vm4654_vm3, %v4173_v36, 0.0  ;;  %v5076_v41 = vsel %vm4654_vm3, %v4303_v11, 0.0 }
 0x19b   : > { %v4732_v8 = vadd.f32 %v4731_v33, %v4730_v16  ;;  %v5077_v49 = vadd.f32 %v5076_v41, %v5075_v32 }
 0x19c   : > { %v3579_v50 = vpop.f32.mrf.mxu2  ;;  %v3899_v17 = vpop.f32.mrf.mxu3 }
 0x19d   : > { %v4733_v54 = vrot.slane %v4732_v8, 4  ;;  %v3580_v57 = vadd.f32 %v8927_v2, %v3579_v50  ;;  %v3900_v58 = vadd.f32 %v8927_v2, %v3899_v17  ;;  %v2942_v31 = vpop.f32.mrf.mxu0  ;;  %v3267_v34 = vpop.f32.mrf.mxu1 }
 0x19e   : > { %v3268_v62 = vadd.f32 %v8927_v2, %v3267_v34  ;;  %v2943_v10 = vadd.f32 %v8927_v2, %v2942_v31 }
 0x19f   : > { %v4734_v35 = vadd.f32 %v4733_v54, %v4732_v8  ;;  %v4429_v63 = vmax.f32 %v3580_v57, 0.0  ;;  %v4557_v1 = vmax.f32 %v3900_v58, 0.0 }
 0x1a0   : > { %v4304_v3 = vmax.f32 %v3268_v62, 0.0  ;;  %7812 = vmatmul.msk.bf16.gmra.mxu0 %vm2077_vm2, %v8094_v52  ;;  %7877 = vmatmul.msk.bf16.gmra.mxu1 %vm2077_vm2, %v8159_v53  ;;  %v4174_v26 = vmax.f32 %v2943_v10, 0.0  ;;  %v8223_v10 = vld [vmem:[%s8552_s19 + $0x4c8] sm:$0xff] }
 0x1a1   : > { %v4735_v4 = vrot.slane %v4734_v35, 2  ;;  %v5403_v6 = vsel %vm4654_vm3, %v4429_v63, 0.0  ;;  %v5739_v9 = vsel %vm4654_vm3, %v4557_v1, 0.0  ;;  %7940 = vmatmul.msk.bf16.gmra.mxu2 %vm2077_vm2, %v8222_v60  ;;  %8004 = vmatmul.msk.bf16.gmra.mxu3 %vm2077_vm2, %v8286_v18  ;;  %v8160_v63 = vld [vmem:[%s8552_s19 + $0x2d0] sm:$0xff] }
 0x1a2   : > { %v5404_v12 = vadd.f32 %v5403_v6, %v5402_v13  ;;  %v5740_v46 = vadd.f32 %v5739_v9, %v5738_v39  ;;  %v5078_v45 = vsel %vm4654_vm3, %v4304_v3, 0.0  ;;  %v4739_v41 = vsel %vm4654_vm3, %v4174_v26, 0.0 }
 0x1a3   : > { %v4736_v61 = vadd.f32 %v4735_v4, %v4734_v35  ;;  %v5079_v59 = vadd.f32 %v5078_v45, %v5077_v49  ;;  %v8095_v35 = vld [vmem:[%s8552_s19 + $0xc8] sm:$0xff] }
 0x1a4   : > { %v5405_v16 = vrot.slane %v5404_v12, 4  ;;  %v5741_v19 = vrot.slane %v5740_v46, 4  ;;  %v3582_v21 = vpop.f32.mrf.mxu2  ;;  %v3902_v23 = vpop.f32.mrf.mxu3 }
 0x1a5   : > { %v4737_v7 = vrot.slane %v4736_v61, 1  ;;  %v3583_v55 = vadd.f32 %v8927_v2, %v3582_v21  ;;  %v3903_v27 = vadd.f32 %v8927_v2, %v3902_v23  ;;  %v2944_v28 = vpop.f32.mrf.mxu0  ;;  %v3269_v14 = vpop.f32.mrf.mxu1 }
 0x1a6   : > { %v5406_v29 = vadd.f32 %v5405_v16, %v5404_v12  ;;  %v5742_v30 = vadd.f32 %v5741_v19, %v5740_v46  ;;  %v2945_v32 = vadd.f32 %v8927_v2, %v2944_v28  ;;  %v3270_v36 = vadd.f32 %v8927_v2, %v3269_v14  ;;  %v8287_v12 = vld [vmem:[%s8552_s19 + $0x6c8] sm:$0xff] }
 0x1a7   : > { %v4738_v11 = vadd.f32 %v4737_v7, %v4736_v61  ;;  %v4430_v8 = vmax.f32 %v3583_v55, 0.0  ;;  %v4558_v49 = vmax.f32 %v3903_v27, 0.0 }
 0x1a8   : > { %v5407_v37 = vrot.slane %v5406_v29, 2  ;;  %v5743_v38 = vrot.slane %v5742_v30, 2  ;;  %v4175_v13 = vmax.f32 %v2945_v32, 0.0  ;;  %v4305_v39 = vmax.f32 %v3270_v36, 0.0 }
 0x1a9   : > { %v6002_v33 = vmul.f32 0.015625, %v4738_v11  ;;  %v5411_v3 = vsel %vm4654_vm3, %v4430_v8, 0.0  ;;  %v5747_v19 = vsel %vm4654_vm3, %v4558_v49, 0.0 }
 0x1aa   : > { %v5408_v50 = vadd.f32 %v5407_v37, %v5406_v29  ;;  %v5744_v17 = vadd.f32 %v5743_v38, %v5742_v30  ;;  %v4740_v52 = vsel %vm4654_vm3, %v4175_v13, 0.0  ;;  %v5080_v53 = vsel %vm4654_vm3, %v4305_v39, 0.0 }
 0x1ab   : > { %v9119_v54 = vsel %vm6131_vm6, %v6002_v33, %v8997_v40  ;;  %v6209_v57 = vpack.c.bf16 %v6002_v33, %v6002_v33  ;;  %v4741_v58 = vadd.f32 %v4740_v52, %v4739_v41  ;;  %v5081_v31 = vadd.f32 %v5080_v53, %v5079_v59 }
 0x1ac   : > { %v5409_v34 = vrot.slane %v5408_v50, 1  ;;  %v5745_v60 = vrot.slane %v5744_v17, 1  ;;  %v3584_v18 = vpop.f32.mrf.mxu2  ;;  %v3904_v62 = vpop.f32.mrf.mxu3 }
 0x1ad   : > { %v6297_v1 = vperm.slane %v6209_v57, 0  ;;  %v3585_v4 = vadd.f32 %v8927_v2, %v3584_v18  ;;  %v3905_v6 = vadd.f32 %v8927_v2, %v3904_v62  ;;  %v2947_v40 = vpop.f32.mrf.mxu0  ;;  %v3272_v9 = vpop.f32.mrf.mxu1 }
 0x1ae   : > { %v5410_v46 = vadd.f32 %v5409_v34, %v5408_v50  ;;  %v5746_v45 = vadd.f32 %v5745_v60, %v5744_v17  ;;  %v2948_v61 = vadd.f32 %v8927_v2, %v2947_v40  ;;  %v3273_v59 = vadd.f32 %v8927_v2, %v3272_v9 }
 0x1af   : > { %v6313_v16 = vunpack.c.l.b16 %v6297_v1  ;;  %v4431_v21 = vmax.f32 %v3585_v4, 0.0  ;;  %v4559_v23 = vmax.f32 %v3905_v6, 0.0 }
 0x1b0   : > { %v6034_v7 = vmul.f32 0.015625, %v5410_v46  ;;  %v6050_v26 = vmul.f32 0.015625, %v5746_v45  ;;  %v4176_v55 = vmax.f32 %v2948_v61, 0.0  ;;  %v4306_v27 = vmax.f32 %v3273_v59, 0.0  ;;  %7813 = vmatmul.msk.bf16.gmra.mxu0 %vm2077_vm2, %v8095_v35  ;;  %7878 = vmatmul.msk.bf16.gmra.mxu1 %vm2077_vm2, %v8160_v63  ;;  %v8161_v45 = vld [vmem:[%s8552_s19 + $0x2d8] sm:$0xff] }
 0x1b1   : > { %v9135_v28 = vsel %vm6131_vm6, %v6313_v16, %v9013_v15  ;;  %v5412_v14 = vsel %vm4654_vm3, %v4431_v21, 0.0  ;;  %v5748_v29 = vsel %vm4654_vm3, %v4559_v23, 0.0  ;;  %7941 = vmatmul.msk.bf16.gmra.mxu2 %vm2077_vm2, %v8223_v10  ;;  %8005 = vmatmul.msk.bf16.gmra.mxu3 %vm2077_vm2, %v8287_v12  ;;  %v8224_v21 = vld [vmem:[%s8552_s19 + $0x4d0] sm:$0xff] }
 0x1b2   : > { %v9143_v30 = vsel %vm6131_vm6, %v6034_v7, %v9021_v20  ;;  %v6241_v32 = vpack.c.bf16 %v6034_v7, %v6034_v7  ;;  %v9147_v36 = vsel %vm6131_vm6, %v6050_v26, %v9025_v22  ;;  %v6257_v11 = vpack.c.bf16 %v6050_v26, %v6050_v26  ;;  %v8288_v23 = vld [vmem:[%s8552_s19 + $0x6d0] sm:$0xff] }
 0x1b3   : > { %v5413_v15 = vadd.f32 %v5412_v14, %v5411_v3  ;;  %v5749_v37 = vadd.f32 %v5748_v29, %v5747_v19  ;;  %v4742_v38 = vsel %vm4654_vm3, %v4176_v55, 0.0  ;;  %v5082_v13 = vsel %vm4654_vm3, %v4306_v27, 0.0 }
 0x1b4   : > { %v6469_v39 = vperm.slane %v6241_v32, 0  ;;  %v6555_v33 = vperm.slane %v6257_v11, 0  ;;  %v4743_v41 = vadd.f32 %v4742_v38, %v4741_v58  ;;  %v5083_v8 = vadd.f32 %v5082_v13, %v5081_v31  ;;  %v3587_v49 = vpop.f32.mrf.mxu2  ;;  %v3907_v50 = vpop.f32.mrf.mxu3 }
 0x1b5   : > { %v3588_v20 = vadd.f32 %v8927_v2, %v3587_v49  ;;  %v3908_v17 = vadd.f32 %v8927_v2, %v3907_v50  ;;  %v2949_v52 = vpop.f32.mrf.mxu0  ;;  %v3274_v22 = vpop.f32.mrf.mxu1 }
 0x1b6   : > { %v6485_v53 = vunpack.c.l.b16 %v6469_v39  ;;  %v6571_v57 = vunpack.c.l.b16 %v6555_v33  ;;  %v2950_v34 = vadd.f32 %v8927_v2, %v2949_v52  ;;  %v3275_v60 = vadd.f32 %v8927_v2, %v3274_v22 }
 0x1b7   : > { %v4432_v18 = vmax.f32 %v3588_v20, 0.0  ;;  %v4560_v62 = vmax.f32 %v3908_v17, 0.0 }
 0x1b8   : > { %v9157_v58 = vsel %vm6131_vm6, %v6485_v53, %v9035_v42  ;;  %v9161_v31 = vsel %vm6131_vm6, %v6571_v57, %v9039_v48  ;;  %v4177_v35 = vmax.f32 %v2950_v34, 0.0  ;;  %v4307_v63 = vmax.f32 %v3275_v60, 0.0  ;;  %v8096_v48 = vld [vmem:[%s8552_s19 + $0xd0] sm:$0xff] }
 0x1b9   : > { %v5414_v1 = vsel %vm4654_vm3, %v4432_v18, 0.0  ;;  %v5750_v3 = vsel %vm4654_vm3, %v4560_v62, 0.0 }
 0x1ba   : > { %v5415_v4 = vadd.f32 %v5414_v1, %v5413_v15  ;;  %v5751_v6 = vadd.f32 %v5750_v3, %v5749_v37  ;;  %v4744_v40 = vsel %vm4654_vm3, %v4177_v35, 0.0  ;;  %v5084_v9 = vsel %vm4654_vm3, %v4307_v63, 0.0 }
 0x1bb   : > { %v4745_v42 = vadd.f32 %v4744_v40, %v4743_v41  ;;  %v5085_v10 = vadd.f32 %v5084_v9, %v5083_v8 }
 0x1bc   : > { %v3589_v12 = vpop.f32.mrf.mxu2  ;;  %v3909_v46 = vpop.f32.mrf.mxu3 }
 0x1bd   : > { %v3590_v61 = vadd.f32 %v8927_v2, %v3589_v12  ;;  %v3910_v59 = vadd.f32 %v8927_v2, %v3909_v46  ;;  %v2952_v16 = vpop.f32.mrf.mxu0  ;;  %v3277_v19 = vpop.f32.mrf.mxu1 }
 0x1be   : > { %v2953_v7 = vadd.f32 %v8927_v2, %v2952_v16  ;;  %v3278_v26 = vadd.f32 %v8927_v2, %v3277_v19 }
 0x1bf   : > { %v4433_v55 = vmax.f32 %v3590_v61, 0.0  ;;  %v4561_v27 = vmax.f32 %v3910_v59, 0.0  ;;  %v8225_v61 = vld [vmem:[%s8552_s19 + $0x4d8] sm:$0xff] }
 0x1c0   : > { %v4178_v14 = vmax.f32 %v2953_v7, 0.0  ;;  %v4308_v29 = vmax.f32 %v3278_v26, 0.0  ;;  %7814 = vmatmul.msk.bf16.gmra.mxu0 %vm2077_vm2, %v8096_v48  ;;  %7879 = vmatmul.msk.bf16.gmra.mxu1 %vm2077_vm2, %v8161_v45  ;;  %v8289_v59 = vld [vmem:[%s8552_s19 + $0x6d8] sm:$0xff] }
 0x1c1   : > { %v5416_v32 = vsel %vm4654_vm3, %v4433_v55, 0.0  ;;  %v5752_v11 = vsel %vm4654_vm3, %v4561_v27, 0.0  ;;  %7942 = vmatmul.msk.bf16.gmra.mxu2 %vm2077_vm2, %v8224_v21  ;;  %8006 = vmatmul.msk.bf16.gmra.mxu3 %vm2077_vm2, %v8288_v23 }
 0x1c2   : > { %v5417_v15 = vadd.f32 %v5416_v32, %v5415_v4  ;;  %v5753_v37 = vadd.f32 %v5752_v11, %v5751_v6  ;;  %v4746_v38 = vsel %vm4654_vm3, %v4178_v14, 0.0  ;;  %v5086_v13 = vsel %vm4654_vm3, %v4308_v29, 0.0 }
 0x1c3   : > { %v4747_v39 = vadd.f32 %v4746_v38, %v4745_v42  ;;  %v5087_v33 = vadd.f32 %v5086_v13, %v5085_v10  ;;  %v8097_v42 = vld [vmem:[%s8552_s19 + $0xd8] sm:$0xff]  ;;  %v8162_v10 = vld [vmem:[%s8552_s19 + $0x2e0] sm:$0xff] }
 0x1c4   : > { %v3592_v41 = vpop.f32.mrf.mxu2  ;;  %v3912_v8 = vpop.f32.mrf.mxu3 }
 0x1c5   : > { %v3593_v49 = vadd.f32 %v8927_v2, %v3592_v41  ;;  %v3913_v50 = vadd.f32 %v8927_v2, %v3912_v8  ;;  %v2954_v20 = vpop.f32.mrf.mxu0  ;;  %v3279_v17 = vpop.f32.mrf.mxu1 }
 0x1c6   : > { %v2955_v52 = vadd.f32 %v8927_v2, %v2954_v20  ;;  %v3280_v22 = vadd.f32 %v8927_v2, %v3279_v17 }
 0x1c7   : > { %v4434_v53 = vmax.f32 %v3593_v49, 0.0  ;;  %v4562_v57 = vmax.f32 %v3913_v50, 0.0 }
 0x1c8   : > { %v4179_v34 = vmax.f32 %v2955_v52, 0.0  ;;  %v4309_v60 = vmax.f32 %v3280_v22, 0.0 }
 0x1c9   : > { %v5418_v18 = vsel %vm4654_vm3, %v4434_v53, 0.0  ;;  %v5754_v62 = vsel %vm4654_vm3, %v4562_v57, 0.0 }
 0x1ca   : > { %v5419_v35 = vadd.f32 %v5418_v18, %v5417_v15  ;;  %v5755_v63 = vadd.f32 %v5754_v62, %v5753_v37  ;;  %v4748_v1 = vsel %vm4654_vm3, %v4179_v34, 0.0  ;;  %v5088_v3 = vsel %vm4654_vm3, %v4309_v60, 0.0  ;;  %v9211_v37 = vld [vmem:[%s10716_s2] ss:$0 sm:$0xff] }
 0x1cb   : > { %v4749_v4 = vadd.f32 %v4748_v1, %v4747_v39  ;;  %v9191_v6 = vadd.f32 %v5088_v3, %v5087_v33  ;;  %v8098_v3 = vld [vmem:[%s8552_s19 + $0xe0] sm:$0xff] }
 0x1cc   : > { %v3594_v40 = vpop.f32.mrf.mxu2  ;;  %v3914_v9 = vpop.f32.mrf.mxu3 }
 0x1cd   : > { %v3595_v12 = vadd.f32 %v8927_v2, %v3594_v40  ;;  %v3915_v46 = vadd.f32 %v8927_v2, %v3914_v9  ;;  %v2957_v48 = vpop.f32.mrf.mxu0  ;;  %v3282_v45 = vpop.f32.mrf.mxu1 }
 0x1ce   : > { %v2958_v16 = vadd.f32 %v8927_v2, %v2957_v48  ;;  %v3283_v7 = vadd.f32 %v8927_v2, %v3282_v45  ;;  %v8290_v48 = vld [vmem:[%s8552_s19 + $0x6e0] sm:$0xff] }
 0x1cf   : > { %v4435_v19 = vmax.f32 %v3595_v12, 0.0  ;;  %v4563_v21 = vmax.f32 %v3915_v46, 0.0  ;;  %v8226_v46 = vld [vmem:[%s8552_s19 + $0x4e0] sm:$0xff] }
 0x1d0   : > { %v4180_v23 = vmax.f32 %v2958_v16, 0.0  ;;  %7815 = vmatmul.msk.bf16.gmra.mxu0 %vm2077_vm2, %v8097_v42  ;;  %7880 = vmatmul.msk.bf16.gmra.mxu1 %vm2077_vm2, %v8162_v10  ;;  %v4310_v11 = vmax.f32 %v3283_v7, 0.0 }
 0x1d1   : > { %v5420_v26 = vsel %vm4654_vm3, %v4435_v19, 0.0  ;;  %v5756_v55 = vsel %vm4654_vm3, %v4563_v21, 0.0  ;;  %7943 = vmatmul.msk.bf16.gmra.mxu2 %vm2077_vm2, %v8225_v61  ;;  %8007 = vmatmul.msk.bf16.gmra.mxu3 %vm2077_vm2, %v8289_v59 }
 0x1d2   : > { %v5421_v27 = vadd.f32 %v5420_v26, %v5419_v35  ;;  %v5757_v14 = vadd.f32 %v5756_v55, %v5755_v63  ;;  %v4750_v29 = vsel %vm4654_vm3, %v4180_v23, 0.0  ;;  %v5096_v20 = vsel %vm4654_vm3, %v4310_v11, 0.0 }
 0x1d3   : > { %v4751_v32 = vadd.f32 %v4750_v29, %v4749_v4  ;;  %v8163_v4 = vld [vmem:[%s8552_s19 + $0x2e8] sm:$0xff] }
 0x1d4   : > { %v3597_v15 = vpop.f32.mrf.mxu2  ;;  %v3917_v2 = vpop.f32.mrf.mxu3 }
 0x1d5   : > { %v3598_v38 = vadd.f32 %v9211_v37, %v3597_v15  ;;  %v3918_v13 = vadd.f32 %v9211_v37, %v3917_v2  ;;  %v2959_v39 = vpop.f32.mrf.mxu0  ;;  %v3284_v33 = vpop.f32.mrf.mxu1 }
 0x1d6   : > { %v2960_v41 = vadd.f32 %v9211_v37, %v2959_v39  ;;  %v3285_v8 = vadd.f32 %v9211_v37, %v3284_v33 }
 0x1d7   : > { %v4436_v49 = vmax.f32 %v3598_v38, 0.0  ;;  %v4564_v50 = vmax.f32 %v3918_v13, 0.0 }
 0x1d8   : > { %v4181_v17 = vmax.f32 %v2960_v41, 0.0  ;;  %v4311_v52 = vmax.f32 %v3285_v8, 0.0 }
 0x1d9   : > { %v5422_v22 = vsel %vm4654_vm3, %v4436_v49, 0.0  ;;  %v5758_v53 = vsel %vm4654_vm3, %v4564_v50, 0.0 }
 0x1da   : > { %v5423_v57 = vadd.f32 %v5422_v22, %v5421_v27  ;;  %v5759_v34 = vadd.f32 %v5758_v53, %v5757_v14  ;;  %v4752_v60 = vsel %vm4654_vm3, %v4181_v17, 0.0  ;;  %v5097_v18 = vsel %vm4654_vm3, %v4311_v52, 0.0 }
 0x1db   : > { %v4753_v62 = vadd.f32 %v4752_v60, %v4751_v32  ;;  %v5098_v35 = vadd.f32 %v5097_v18, %v5096_v20 }
 0x1dc   : > { %v3599_v63 = vpop.f32.mrf.mxu2  ;;  %v3919_v1 = vpop.f32.mrf.mxu3 }
 0x1dd   : > { %v4754_v40 = vrot.slane %v4753_v62, 4  ;;  %v3600_v9 = vadd.f32 %v9211_v37, %v3599_v63  ;;  %v3920_v42 = vadd.f32 %v9211_v37, %v3919_v1  ;;  %v2962_v10 = vpop.f32.mrf.mxu0  ;;  %v3287_v12 = vpop.f32.mrf.mxu1 }
 0x1de   : > { %v3288_v45 = vadd.f32 %v9211_v37, %v3287_v12  ;;  %v2963_v26 = vadd.f32 %v9211_v37, %v2962_v10 }
 0x1df   : > { %v4755_v61 = vadd.f32 %v4754_v40, %v4753_v62  ;;  %v4437_v59 = vmax.f32 %v3600_v9, 0.0  ;;  %v4565_v16 = vmax.f32 %v3920_v42, 0.0 }
 0x1e0   : > { %v4312_v19 = vmax.f32 %v3288_v45, 0.0  ;;  %7816 = vmatmul.msk.bf16.gmra.mxu0 %vm2077_vm2, %v8098_v3  ;;  %7881 = vmatmul.msk.bf16.gmra.mxu1 %vm2077_vm2, %v8163_v4  ;;  %v4182_v39 = vmax.f32 %v2963_v26, 0.0 }
 0x1e1   : > { %v4756_v21 = vrot.slane %v4755_v61, 2  ;;  %v5424_v23 = vsel %vm4654_vm3, %v4437_v59, 0.0  ;;  %v5760_v7 = vsel %vm4654_vm3, %v4565_v16, 0.0  ;;  %7944 = vmatmul.msk.bf16.gmra.mxu2 %vm2077_vm2, %v8226_v46  ;;  %8008 = vmatmul.msk.bf16.gmra.mxu3 %vm2077_vm2, %v8290_v48  ;;  %v8099_v59 = vld [vmem:[%s8552_s19 + $0xe8] sm:$0xff]  ;;  %v8164_v16 = vld [vmem:[%s8552_s19 + $0x2f0] sm:$0xff] }
 0x1e2   : > { %v5425_v55 = vadd.f32 %v5424_v23, %v5423_v57  ;;  %v5761_v27 = vadd.f32 %v5760_v7, %v5759_v34  ;;  %v5099_v14 = vsel %vm4654_vm3, %v4312_v19, 0.0  ;;  %v4760_v62 = vsel %vm4654_vm3, %v4182_v39, 0.0 }
 0x1e3   : > { %v4757_v29 = vadd.f32 %v4756_v21, %v4755_v61  ;;  %v5100_v32 = vadd.f32 %v5099_v14, %v5098_v35 }
 0x1e4   : > { %v5426_v11 = vrot.slane %v5425_v55, 4  ;;  %v5762_v15 = vrot.slane %v5761_v27, 4  ;;  %v3602_v2 = vpop.f32.mrf.mxu2  ;;  %v3922_v38 = vpop.f32.mrf.mxu3 }
 0x1e5   : > { %v4758_v13 = vrot.slane %v4757_v29, 1  ;;  %v3603_v33 = vadd.f32 %v9211_v37, %v3602_v2  ;;  %v3923_v41 = vadd.f32 %v9211_v37, %v3922_v38  ;;  %v2964_v8 = vpop.f32.mrf.mxu0  ;;  %v3289_v49 = vpop.f32.mrf.mxu1 }
 0x1e6   : > { %v5427_v50 = vadd.f32 %v5426_v11, %v5425_v55  ;;  %v5763_v20 = vadd.f32 %v5762_v15, %v5761_v27  ;;  %v2965_v17 = vadd.f32 %v9211_v37, %v2964_v8  ;;  %v3290_v52 = vadd.f32 %v9211_v37, %v3289_v49  ;;  %v8227_v55 = vld [vmem:[%s8552_s19 + $0x4e8] sm:$0xff] }
 0x1e7   : > { %v4759_v22 = vadd.f32 %v4758_v13, %v4757_v29  ;;  %v4438_v35 = vmax.f32 %v3603_v33, 0.0  ;;  %v4566_v63 = vmax.f32 %v3923_v41, 0.0  ;;  %v8291_v27 = vld [vmem:[%s8552_s19 + $0x6e8] sm:$0xff] }
 0x1e8   : > { %v5428_v53 = vrot.slane %v5427_v50, 2  ;;  %v5764_v57 = vrot.slane %v5763_v20, 2  ;;  %v4183_v34 = vmax.f32 %v2965_v17, 0.0  ;;  %v4313_v60 = vmax.f32 %v3290_v52, 0.0 }
 0x1e9   : > { %v6003_v18 = vmul.f32 0.015625, %v4759_v22  ;;  %v5432_v21 = vsel %vm4654_vm3, %v4438_v35, 0.0  ;;  %v5768_v2 = vsel %vm4654_vm3, %v4566_v63, 0.0 }
 0x1ea   : > { %v5429_v1 = vadd.f32 %v5428_v53, %v5427_v50  ;;  %v5765_v3 = vadd.f32 %v5764_v57, %v5763_v20  ;;  %v4761_v4 = vsel %vm4654_vm3, %v4183_v34, 0.0  ;;  %v5101_v40 = vsel %vm4654_vm3, %v4313_v60, 0.0 }
 0x1eb   : > { %v9246_v9 = vsel %vm6133_vm7, %v6003_v18, %v9119_v54  ;;  %v6210_v42 = vpack.c.bf16 %v6003_v18, %v6003_v18  ;;  %v4762_v10 = vadd.f32 %v4761_v4, %v4760_v62  ;;  %v5102_v12 = vadd.f32 %v5101_v40, %v5100_v32 }
 0x1ec   : > { %v5430_v46 = vrot.slane %v5429_v1, 1  ;;  %v5766_v48 = vrot.slane %v5765_v3, 1  ;;  %v3604_v45 = vpop.f32.mrf.mxu2  ;;  %v3924_v61 = vpop.f32.mrf.mxu3 }
 0x1ed   : > { %v6298_v19 = vperm.slane %v6210_v42, 0  ;;  %v3605_v23 = vadd.f32 %v9211_v37, %v3604_v45  ;;  %v3925_v7 = vadd.f32 %v9211_v37, %v3924_v61  ;;  %v2967_v54 = vpop.f32.mrf.mxu0  ;;  %v3292_v26 = vpop.f32.mrf.mxu1 }
 0x1ee   : > { %v5431_v14 = vadd.f32 %v5430_v46, %v5429_v1  ;;  %v5767_v29 = vadd.f32 %v5766_v48, %v5765_v3  ;;  %v2968_v32 = vadd.f32 %v9211_v37, %v2967_v54  ;;  %v3293_v11 = vadd.f32 %v9211_v37, %v3292_v26 }
 0x1ef   : > { %v6314_v15 = vunpack.c.l.b16 %v6298_v19  ;;  %v4439_v38 = vmax.f32 %v3605_v23, 0.0  ;;  %v4567_v13 = vmax.f32 %v3925_v7, 0.0 }
 0x1f0   : > { %v6035_v39 = vmul.f32 0.015625, %v5431_v14  ;;  %v6051_v33 = vmul.f32 0.015625, %v5767_v29  ;;  %v4184_v41 = vmax.f32 %v2968_v32, 0.0  ;;  %v4314_v8 = vmax.f32 %v3293_v11, 0.0  ;;  %7817 = vmatmul.msk.bf16.gmra.mxu0 %vm2077_vm2, %v8099_v59  ;;  %7882 = vmatmul.msk.bf16.gmra.mxu1 %vm2077_vm2, %v8164_v16  ;;  %v8165_v32 = vld [vmem:[%s8552_s19 + $0x2f8] sm:$0xff] }
 0x1f1   : > { %v9262_v49 = vsel %vm6133_vm7, %v6314_v15, %v9135_v28  ;;  %v5433_v50 = vsel %vm4654_vm3, %v4439_v38, 0.0  ;;  %v5769_v20 = vsel %vm4654_vm3, %v4567_v13, 0.0  ;;  %7945 = vmatmul.msk.bf16.gmra.mxu2 %vm2077_vm2, %v8227_v55  ;;  %8009 = vmatmul.msk.bf16.gmra.mxu3 %vm2077_vm2, %v8291_v27  ;;  %v8228_v13 = vld [vmem:[%s8552_s19 + $0x4f0] sm:$0xff] }
 0x1f2   : > { %v9270_v17 = vsel %vm6133_vm7, %v6035_v39, %v9143_v30  ;;  %v6242_v52 = vpack.c.bf16 %v6035_v39, %v6035_v39  ;;  %v9274_v22 = vsel %vm6133_vm7, %v6051_v33, %v9147_v36  ;;  %v6258_v53 = vpack.c.bf16 %v6051_v33, %v6051_v33  ;;  %v8292_v39 = vld [vmem:[%s8552_s19 + $0x6f0] sm:$0xff] }
 0x1f3   : > { %v5434_v28 = vadd.f32 %v5433_v50, %v5432_v21  ;;  %v5770_v57 = vadd.f32 %v5769_v20, %v5768_v2  ;;  %v4763_v34 = vsel %vm4654_vm3, %v4184_v41, 0.0  ;;  %v5103_v60 = vsel %vm4654_vm3, %v4314_v8, 0.0 }
 0x1f4   : > { %v6470_v18 = vperm.slane %v6242_v52, 0  ;;  %v6556_v62 = vperm.slane %v6258_v53, 0  ;;  %v4764_v35 = vadd.f32 %v4763_v34, %v4762_v10  ;;  %v5104_v63 = vadd.f32 %v5103_v60, %v5102_v12  ;;  %v3607_v1 = vpop.f32.mrf.mxu2  ;;  %v3927_v3 = vpop.f32.mrf.mxu3 }
 0x1f5   : > { %v3608_v30 = vadd.f32 %v9211_v37, %v3607_v1  ;;  %v3928_v4 = vadd.f32 %v9211_v37, %v3927_v3  ;;  %v2969_v40 = vpop.f32.mrf.mxu0  ;;  %v3294_v36 = vpop.f32.mrf.mxu1 }
 0x1f6   : > { %v6486_v42 = vunpack.c.l.b16 %v6470_v18  ;;  %v6572_v46 = vunpack.c.l.b16 %v6556_v62  ;;  %v2970_v48 = vadd.f32 %v9211_v37, %v2969_v40  ;;  %v3295_v45 = vadd.f32 %v9211_v37, %v3294_v36 }
 0x1f7   : > { %v4440_v61 = vmax.f32 %v3608_v30, 0.0  ;;  %v4568_v59 = vmax.f32 %v3928_v4, 0.0 }
 0x1f8   : > { %v9284_v10 = vsel %vm6133_vm7, %v6486_v42, %v9157_v58  ;;  %v9288_v12 = vsel %vm6133_vm7, %v6572_v46, %v9161_v31  ;;  %v4185_v16 = vmax.f32 %v2970_v48, 0.0  ;;  %v4315_v19 = vmax.f32 %v3295_v45, 0.0  ;;  %v8100_v31 = vld [vmem:[%s8552_s19 + $0xf0] sm:$0xff] }
 0x1f9   : > { %v5435_v21 = vsel %vm4654_vm3, %v4440_v61, 0.0  ;;  %v5771_v23 = vsel %vm4654_vm3, %v4568_v59, 0.0 }
 0x1fa   : > { %v5436_v7 = vadd.f32 %v5435_v21, %v5434_v28  ;;  %v5772_v54 = vadd.f32 %v5771_v23, %v5770_v57  ;;  %v4765_v26 = vsel %vm4654_vm3, %v4185_v16, 0.0  ;;  %v5105_v55 = vsel %vm4654_vm3, %v4315_v19, 0.0 }
 0x1fb   : > { %v4766_v58 = vadd.f32 %v4765_v26, %v4764_v35  ;;  %v5106_v27 = vadd.f32 %v5105_v55, %v5104_v63 }
 0x1fc   : > { %v3609_v14 = vpop.f32.mrf.mxu2  ;;  %v3929_v29 = vpop.f32.mrf.mxu3 }
 0x1fd   : > { %v3610_v11 = vadd.f32 %v9211_v37, %v3609_v14  ;;  %v3930_v15 = vadd.f32 %v9211_v37, %v3929_v29  ;;  %v2972_v2 = vpop.f32.mrf.mxu0  ;;  %v3297_v38 = vpop.f32.mrf.mxu1  ;;  %v8166_v14 = vld [vmem:[%s8552_s19 + $0x300] sm:$0xff] }
 0x1fe   : > { %v2973_v33 = vadd.f32 %v9211_v37, %v2972_v2  ;;  %v3298_v41 = vadd.f32 %v9211_v37, %v3297_v38  ;;  %v8293_v2 = vld [vmem:[%s8552_s19 + $0x6f8] sm:$0xff] }
 0x1ff   : > { %v4441_v8 = vmax.f32 %v3610_v11, 0.0  ;;  %v4569_v50 = vmax.f32 %v3930_v15, 0.0  ;;  %v8229_v15 = vld [vmem:[%s8552_s19 + $0x4f8] sm:$0xff] }
 0x200   : > { %v4186_v20 = vmax.f32 %v2973_v33, 0.0  ;;  %v4316_v52 = vmax.f32 %v3298_v41, 0.0  ;;  %7818 = vmatmul.msk.bf16.gmra.mxu0 %vm2077_vm2, %v8100_v31  ;;  %7883 = vmatmul.msk.bf16.gmra.mxu1 %vm2077_vm2, %v8165_v32 }
 0x201   : > { %v5437_v53 = vsel %vm4654_vm3, %v4441_v8, 0.0  ;;  %v5773_v28 = vsel %vm4654_vm3, %v4569_v50, 0.0  ;;  %7946 = vmatmul.msk.bf16.gmra.mxu2 %vm2077_vm2, %v8228_v13  ;;  %8010 = vmatmul.msk.bf16.gmra.mxu3 %vm2077_vm2, %v8292_v39 }
 0x202   : > { %v5438_v57 = vadd.f32 %v5437_v53, %v5436_v7  ;;  %v5774_v34 = vadd.f32 %v5773_v28, %v5772_v54  ;;  %v4767_v60 = vsel %vm4654_vm3, %v4186_v20, 0.0  ;;  %v5107_v18 = vsel %vm4654_vm3, %v4316_v52, 0.0 }
 0x203   : > { %v4768_v62 = vadd.f32 %v4767_v60, %v4766_v58  ;;  %v5108_v35 = vadd.f32 %v5107_v18, %v5106_v27  ;;  %v8101_v27 = vld [vmem:[%s8552_s19 + $0xf8] sm:$0xff] }
 0x204   : > { %v3612_v63 = vpop.f32.mrf.mxu2  ;;  %v3932_v1 = vpop.f32.mrf.mxu3 }
 0x205   : > { %v3613_v3 = vadd.f32 %v9211_v37, %v3612_v63  ;;  %v3933_v30 = vadd.f32 %v9211_v37, %v3932_v1  ;;  %v2974_v4 = vpop.f32.mrf.mxu0  ;;  %v3299_v40 = vpop.f32.mrf.mxu1 }
 0x206   : > { %v2975_v36 = vadd.f32 %v9211_v37, %v2974_v4  ;;  %v3300_v42 = vadd.f32 %v9211_v37, %v3299_v40 }
 0x207   : > { %v4442_v46 = vmax.f32 %v3613_v3, 0.0  ;;  %v4570_v48 = vmax.f32 %v3933_v30, 0.0 }
 0x208   : > { %v4187_v45 = vmax.f32 %v2975_v36, 0.0  ;;  %v4317_v61 = vmax.f32 %v3300_v42, 0.0 }
 0x209   : > { %v5439_v59 = vsel %vm4654_vm3, %v4442_v46, 0.0  ;;  %v5775_v16 = vsel %vm4654_vm3, %v4570_v48, 0.0 }
 0x20a   : > { %v5440_v19 = vadd.f32 %v5439_v59, %v5438_v57  ;;  %v5776_v21 = vadd.f32 %v5775_v16, %v5774_v34  ;;  %v4769_v23 = vsel %vm4654_vm3, %v4187_v45, 0.0  ;;  %v5109_v7 = vsel %vm4654_vm3, %v4317_v61, 0.0 }
 0x20b   : > { %v4770_v54 = vadd.f32 %v4769_v23, %v4768_v62  ;;  %v9318_v26 = vadd.f32 %v5109_v7, %v5108_v35 }
 0x20c   : > { %v3614_v55 = vpop.f32.mrf.mxu2  ;;  %v3934_v58 = vpop.f32.mrf.mxu3 }
 0x20d   : > { %v3615_v29 = vadd.f32 %v9211_v37, %v3614_v55  ;;  %v3935_v31 = vadd.f32 %v9211_v37, %v3934_v58  ;;  %v2977_v32 = vpop.f32.mrf.mxu0  ;;  %v3302_v11 = vpop.f32.mrf.mxu1  ;;  %v8167_v55 = vld [vmem:[%s8552_s19 + $0x308] sm:$0xff] }
 0x20e   : > { %v2978_v38 = vadd.f32 %v9211_v37, %v2977_v32  ;;  %v3303_v41 = vadd.f32 %v9211_v37, %v3302_v11  ;;  %v8230_v32 = vld [vmem:[%s8552_s19 + $0x500] sm:$0xff] }
 0x20f   : > { %v4443_v13 = vmax.f32 %v3615_v29, 0.0  ;;  %v4571_v39 = vmax.f32 %v3935_v31, 0.0  ;;  %v8294_v11 = vld [vmem:[%s8552_s19 + $0x700] sm:$0xff] }
 0x210   : > { %v4188_v33 = vmax.f32 %v2978_v38, 0.0  ;;  %7819 = vmatmul.msk.bf16.gmra.mxu0 %vm2077_vm2, %v8101_v27  ;;  %7884 = vmatmul.msk.bf16.gmra.mxu1 %vm2077_vm2, %v8166_v14  ;;  %v4318_v57 = vmax.f32 %v3303_v41, 0.0 }
 0x211   : > { %v5441_v8 = vsel %vm4654_vm3, %v4443_v13, 0.0  ;;  %v5777_v50 = vsel %vm4654_vm3, %v4571_v39, 0.0  ;;  %7947 = vmatmul.msk.bf16.gmra.mxu2 %vm2077_vm2, %v8229_v15  ;;  %8011 = vmatmul.msk.bf16.gmra.mxu3 %vm2077_vm2, %v8293_v2 }
 0x212   : > { %v5442_v20 = vadd.f32 %v5441_v8, %v5440_v19  ;;  %v5778_v52 = vadd.f32 %v5777_v50, %v5776_v21  ;;  %v4771_v53 = vsel %vm4654_vm3, %v4188_v33, 0.0  ;;  %v5117_v40 = vsel %vm4654_vm3, %v4318_v57, 0.0 }
 0x213   : > { %v4772_v28 = vadd.f32 %v4771_v53, %v4770_v54  ;;  %v8102_v54 = vld [vmem:[%s8552_s19 + $0x100] sm:$0xff] }
 0x214   : > { %v3617_v34 = vpop.f32.mrf.mxu2  ;;  %v3937_v60 = vpop.f32.mrf.mxu3 }
 0x215   : > { %v3618_v18 = vadd.f32 %v9211_v37, %v3617_v34  ;;  %v3938_v62 = vadd.f32 %v9211_v37, %v3937_v60  ;;  %v2979_v35 = vpop.f32.mrf.mxu0  ;;  %v3304_v63 = vpop.f32.mrf.mxu1 }
 0x216   : > { %v2980_v1 = vadd.f32 %v9211_v37, %v2979_v35  ;;  %v3305_v3 = vadd.f32 %v9211_v37, %v3304_v63 }
 0x217   : > { %v4444_v30 = vmax.f32 %v3618_v18, 0.0  ;;  %v4572_v4 = vmax.f32 %v3938_v62, 0.0 }
 0x218   : > { %v4189_v36 = vmax.f32 %v2980_v1, 0.0  ;;  %v4319_v42 = vmax.f32 %v3305_v3, 0.0 }
 0x219   : > { %v5443_v46 = vsel %vm4654_vm3, %v4444_v30, 0.0  ;;  %v5779_v48 = vsel %vm4654_vm3, %v4572_v4, 0.0 }
 0x21a   : > { %v5444_v45 = vadd.f32 %v5443_v46, %v5442_v20  ;;  %v5780_v61 = vadd.f32 %v5779_v48, %v5778_v52  ;;  %v4773_v59 = vsel %vm4654_vm3, %v4189_v36, 0.0  ;;  %v5118_v16 = vsel %vm4654_vm3, %v4319_v42, 0.0 }
 0x21b   : > { %v4774_v19 = vadd.f32 %v4773_v59, %v4772_v28  ;;  %v5119_v21 = vadd.f32 %v5118_v16, %v5117_v40 }
 0x21c   : > { %v3619_v23 = vpop.f32.mrf.mxu2  ;;  %v3939_v7 = vpop.f32.mrf.mxu3 }
 0x21d   : > { %v4775_v58 = vrot.slane %v4774_v19, 4  ;;  %v3620_v27 = vadd.f32 %v9211_v37, %v3619_v23  ;;  %v3940_v14 = vadd.f32 %v9211_v37, %v3939_v7  ;;  %v2982_v29 = vpop.f32.mrf.mxu0  ;;  %v3307_v31 = vpop.f32.mrf.mxu1 }
 0x21e   : > { %v3308_v15 = vadd.f32 %v9211_v37, %v3307_v31  ;;  %v2983_v50 = vadd.f32 %v9211_v37, %v2982_v29 }
 0x21f   : > { %v4776_v2 = vadd.f32 %v4775_v58, %v4774_v19  ;;  %v4445_v38 = vmax.f32 %v3620_v27, 0.0  ;;  %v4573_v13 = vmax.f32 %v3940_v14, 0.0 }
 0x220   : > { %v4320_v39 = vmax.f32 %v3308_v15, 0.0  ;;  %7820 = vmatmul.msk.bf16.gmra.mxu0 %vm2077_vm2, %v8102_v54  ;;  %7885 = vmatmul.msk.bf16.gmra.mxu1 %vm2077_vm2, %v8167_v55  ;;  %v4190_v63 = vmax.f32 %v2983_v50, 0.0 }
 0x221   : > { %v4777_v33 = vrot.slane %v4776_v2, 2  ;;  %v5445_v41 = vsel %vm4654_vm3, %v4445_v38, 0.0  ;;  %v5781_v8 = vsel %vm4654_vm3, %v4573_v13, 0.0  ;;  %7948 = vmatmul.msk.bf16.gmra.mxu2 %vm2077_vm2, %v8230_v32  ;;  %8012 = vmatmul.msk.bf16.gmra.mxu3 %vm2077_vm2, %v8294_v11  ;;  %v8103_v13 = vld [vmem:[%s8552_s19 + $0x108] sm:$0xff] }
 0x222   : > { %v5446_v20 = vadd.f32 %v5445_v41, %v5444_v45  ;;  %v5782_v52 = vadd.f32 %v5781_v8, %v5780_v61  ;;  %v5120_v53 = vsel %vm4654_vm3, %v4320_v39, 0.0  ;;  %v8168_v39 = vld [vmem:[%s8552_s19 + $0x310] sm:$0xff] }
 0x223   : > { %v4778_v28 = vadd.f32 %v4777_v33, %v4776_v2  ;;  %v5121_v57 = vadd.f32 %v5120_v53, %v5119_v21  ;;  %v4781_v21 = vsel %vm4654_vm3, %v4190_v63, 0.0  ;;  %v8295_v53 = vld [vmem:[%s8552_s19 + $0x708] sm:$0xff] }
 0x224   : > { %v5447_v34 = vrot.slane %v5446_v20, 4  ;;  %v5783_v60 = vrot.slane %v5782_v52, 4  ;;  %v3622_v18 = vpop.f32.mrf.mxu2  ;;  %v3942_v62 = vpop.f32.mrf.mxu3 }
 0x225   : > { %v4779_v35 = vrot.slane %v4778_v28, 1  ;;  %v3623_v1 = vadd.f32 %v9211_v37, %v3622_v18  ;;  %v3943_v3 = vadd.f32 %v9211_v37, %v3942_v62  ;;  %v2984_v30 = vpop.f32.mrf.mxu0  ;;  %v3309_v4 = vpop.f32.mrf.mxu1 }
 0x226   : > { %v5448_v40 = vadd.f32 %v5447_v34, %v5446_v20  ;;  %v5784_v36 = vadd.f32 %v5783_v60, %v5782_v52  ;;  %v2985_v42 = vadd.f32 %v9211_v37, %v2984_v30  ;;  %v3310_v46 = vadd.f32 %v9211_v37, %v3309_v4  ;;  %v8231_v52 = vld [vmem:[%s8552_s19 + $0x508] sm:$0xff] }
 0x227   : > { %v4780_v48 = vadd.f32 %v4779_v35, %v4778_v28  ;;  %v4446_v23 = vmax.f32 %v3623_v1, 0.0  ;;  %v4574_v7 = vmax.f32 %v3943_v3, 0.0 }
 0x228   : > { %v5449_v45 = vrot.slane %v5448_v40, 2  ;;  %v5785_v61 = vrot.slane %v5784_v36, 2  ;;  %v4191_v59 = vmax.f32 %v2985_v42, 0.0  ;;  %v4321_v16 = vmax.f32 %v3310_v46, 0.0 }
 0x229   : > { %v6004_v19 = vmul.f32 0.015625, %v4780_v48  ;;  %v5453_v41 = vsel %vm4654_vm3, %v4446_v23, 0.0  ;;  %v5789_v62 = vsel %vm4654_vm3, %v4574_v7, 0.0 }
 0x22a   : > { %v5450_v54 = vadd.f32 %v5449_v45, %v5448_v40  ;;  %v5786_v55 = vadd.f32 %v5785_v61, %v5784_v36  ;;  %v4782_v58 = vsel %vm4654_vm3, %v4191_v59, 0.0  ;;  %v5122_v27 = vsel %vm4654_vm3, %v4321_v16, 0.0 }
 0x22b   : > { %v9368_v14 = vsel %vm6135_vm8, %v6004_v19, %v9246_v9  ;;  %v6211_v29 = vpack.c.bf16 %v6004_v19, %v6004_v19  ;;  %v4783_v31 = vadd.f32 %v4782_v58, %v4781_v21  ;;  %v5123_v32 = vadd.f32 %v5122_v27, %v5121_v57 }
 0x22c   : > { %v5451_v11 = vrot.slane %v5450_v54, 1  ;;  %v5787_v15 = vrot.slane %v5786_v55, 1  ;;  %v3624_v2 = vpop.f32.mrf.mxu2  ;;  %v3944_v38 = vpop.f32.mrf.mxu3 }
 0x22d   : > { %v6299_v33 = vperm.slane %v6211_v29, 0  ;;  %v3625_v8 = vadd.f32 %v9211_v37, %v3624_v2  ;;  %v3945_v50 = vadd.f32 %v9211_v37, %v3944_v38  ;;  %v2987_v9 = vpop.f32.mrf.mxu0  ;;  %v3312_v20 = vpop.f32.mrf.mxu1 }
 0x22e   : > { %v5452_v28 = vadd.f32 %v5451_v11, %v5450_v54  ;;  %v5788_v34 = vadd.f32 %v5787_v15, %v5786_v55  ;;  %v2988_v57 = vadd.f32 %v9211_v37, %v2987_v9  ;;  %v3313_v60 = vadd.f32 %v9211_v37, %v3312_v20 }
 0x22f   : > { %v6315_v18 = vunpack.c.l.b16 %v6299_v33  ;;  %v4447_v35 = vmax.f32 %v3625_v8, 0.0  ;;  %v4575_v63 = vmax.f32 %v3945_v50, 0.0 }
 0x230   : > { %v6036_v1 = vmul.f32 0.015625, %v5452_v28  ;;  %v6052_v3 = vmul.f32 0.015625, %v5788_v34  ;;  %v4192_v30 = vmax.f32 %v2988_v57, 0.0  ;;  %v4322_v4 = vmax.f32 %v3313_v60, 0.0  ;;  %7821 = vmatmul.msk.bf16.gmra.mxu0 %vm2077_vm2, %v8103_v13  ;;  %7886 = vmatmul.msk.bf16.gmra.mxu1 %vm2077_vm2, %v8168_v39  ;;  %v8104_v60 = vld [vmem:[%s8552_s19 + $0x110] sm:$0xff] }
 0x231   : > { %v5454_v40 = vsel %vm4654_vm3, %v4447_v35, 0.0  ;;  %v5790_v36 = vsel %vm4654_vm3, %v4575_v63, 0.0  ;;  %7949 = vmatmul.msk.bf16.gmra.mxu2 %vm2077_vm2, %v8231_v52  ;;  %8013 = vmatmul.msk.bf16.gmra.mxu3 %vm2077_vm2, %v8295_v53  ;;  %v9388_v42 = vsel %vm6135_vm8, %v6315_v18, %v9262_v49  ;;  %v8169_v18 = vld [vmem:[%s8552_s19 + $0x318] sm:$0xff] }
 0x232   : > { %v9392_v46 = vsel %vm6135_vm8, %v6036_v1, %v9270_v17  ;;  %v6243_v48 = vpack.c.bf16 %v6036_v1, %v6036_v1  ;;  %v9396_v45 = vsel %vm6135_vm8, %v6052_v3, %v9274_v22  ;;  %v6259_v61 = vpack.c.bf16 %v6052_v3, %v6052_v3  ;;  %v8232_v1 = vld [vmem:[%s8552_s19 + $0x510] sm:$0xff] }
 0x233   : > { %v5455_v59 = vadd.f32 %v5454_v40, %v5453_v41  ;;  %v5791_v16 = vadd.f32 %v5790_v36, %v5789_v62  ;;  %v4784_v19 = vsel %vm4654_vm3, %v4192_v30, 0.0  ;;  %v5124_v21 = vsel %vm4654_vm3, %v4322_v4, 0.0  ;;  %v8296_v3 = vld [vmem:[%s8552_s19 + $0x710] sm:$0xff] }
 0x234   : > { %v6471_v23 = vperm.slane %v6243_v48, 0  ;;  %v6557_v7 = vperm.slane %v6259_v61, 0  ;;  %v4785_v49 = vadd.f32 %v4784_v19, %v4783_v31  ;;  %v5125_v54 = vadd.f32 %v5124_v21, %v5123_v32  ;;  %v3627_v55 = vpop.f32.mrf.mxu2  ;;  %v3947_v58 = vpop.f32.mrf.mxu3 }
 0x235   : > { %v3628_v17 = vadd.f32 %v9211_v37, %v3627_v55  ;;  %v3948_v27 = vadd.f32 %v9211_v37, %v3947_v58  ;;  %v2989_v29 = vpop.f32.mrf.mxu0  ;;  %v3314_v22 = vpop.f32.mrf.mxu1 }
 0x236   : > { %v6487_v11 = vunpack.c.l.b16 %v6471_v23  ;;  %v6573_v15 = vunpack.c.l.b16 %v6557_v7  ;;  %v2990_v2 = vadd.f32 %v9211_v37, %v2989_v29  ;;  %v3315_v38 = vadd.f32 %v9211_v37, %v3314_v22 }
 0x237   : > { %v4448_v13 = vmax.f32 %v3628_v17, 0.0  ;;  %v4576_v39 = vmax.f32 %v3948_v27, 0.0 }
 0x238   : > { %v9406_v31 = vsel %vm6135_vm8, %v6573_v15, %v9288_v12  ;;  %v4193_v32 = vmax.f32 %v2990_v2, 0.0  ;;  %v4323_v33 = vmax.f32 %v3315_v38, 0.0  ;;  %v9410_v41 = vsel %vm6135_vm8, %v6487_v11, %v9284_v10 }
 0x239   : > { %v5456_v8 = vsel %vm4654_vm3, %v4448_v13, 0.0  ;;  %v5792_v50 = vsel %vm4654_vm3, %v4576_v39, 0.0 }
 0x23a   : > { %v5457_v9 = vadd.f32 %v5456_v8, %v5455_v59  ;;  %v5793_v20 = vadd.f32 %v5792_v50, %v5791_v16  ;;  %v4786_v52 = vsel %vm4654_vm3, %v4193_v32, 0.0  ;;  %v5126_v53 = vsel %vm4654_vm3, %v4323_v33, 0.0 }
 0x23b   : > { %v4787_v12 = vadd.f32 %v4786_v52, %v4785_v49  ;;  %v5127_v28 = vadd.f32 %v5126_v53, %v5125_v54 }
 0x23c   : > { %v3629_v34 = vpop.f32.mrf.mxu2  ;;  %v3949_v57 = vpop.f32.mrf.mxu3 }
 0x23d   : > { %v3630_v10 = vadd.f32 %v9211_v37, %v3629_v34  ;;  %v3950_v62 = vadd.f32 %v9211_v37, %v3949_v57  ;;  %v2992_v35 = vpop.f32.mrf.mxu0  ;;  %v3317_v63 = vpop.f32.mrf.mxu1  ;;  %v8105_v34 = vld [vmem:[%s8552_s19 + $0x118] sm:$0xff]  ;;  %v8170_v57 = vld [vmem:[%s8552_s19 + $0x320] sm:$0xff] }
 0x23e   : > { %v2993_v30 = vadd.f32 %v9211_v37, %v2992_v35  ;;  %v3318_v4 = vadd.f32 %v9211_v37, %v3317_v63  ;;  %v8233_v35 = vld [vmem:[%s8552_s19 + $0x518] sm:$0xff] }
 0x23f   : > { %v4449_v40 = vmax.f32 %v3630_v10, 0.0  ;;  %v4577_v36 = vmax.f32 %v3950_v62, 0.0  ;;  %v8297_v63 = vld [vmem:[%s8552_s19 + $0x718] sm:$0xff] }
 0x240   : > { %v4194_v48 = vmax.f32 %v2993_v30, 0.0  ;;  %v4324_v61 = vmax.f32 %v3318_v4, 0.0  ;;  %7822 = vmatmul.msk.bf16.gmra.mxu0 %vm2077_vm2, %v8104_v60  ;;  %7887 = vmatmul.msk.bf16.gmra.mxu1 %vm2077_vm2, %v8169_v18 }
 0x241   : > { %v5458_v59 = vsel %vm4654_vm3, %v4449_v40, 0.0  ;;  %v5794_v16 = vsel %vm4654_vm3, %v4577_v36, 0.0  ;;  %7950 = vmatmul.msk.bf16.gmra.mxu2 %vm2077_vm2, %v8232_v1  ;;  %8014 = vmatmul.msk.bf16.gmra.mxu3 %vm2077_vm2, %v8296_v3 }
 0x242   : > { %v5459_v19 = vadd.f32 %v5458_v59, %v5457_v9  ;;  %v5795_v21 = vadd.f32 %v5794_v16, %v5793_v20  ;;  %v4788_v23 = vsel %vm4654_vm3, %v4194_v48, 0.0  ;;  %v5128_v7 = vsel %vm4654_vm3, %v4324_v61, 0.0 }
 0x243   : > { %v4789_v49 = vadd.f32 %v4788_v23, %v4787_v12  ;;  %v5129_v54 = vadd.f32 %v5128_v7, %v5127_v28 }
 0x244   : > { %v3632_v55 = vpop.f32.mrf.mxu2  ;;  %v3952_v58 = vpop.f32.mrf.mxu3 }
 0x245   : > { %v3633_v17 = vadd.f32 %v9211_v37, %v3632_v55  ;;  %v3953_v27 = vadd.f32 %v9211_v37, %v3952_v58  ;;  %v2994_v29 = vpop.f32.mrf.mxu0  ;;  %v3319_v22 = vpop.f32.mrf.mxu1 }
 0x246   : > { %v2995_v11 = vadd.f32 %v9211_v37, %v2994_v29  ;;  %v3320_v15 = vadd.f32 %v9211_v37, %v3319_v22 }
 0x247   : > { %v4450_v2 = vmax.f32 %v3633_v17, 0.0  ;;  %v4578_v38 = vmax.f32 %v3953_v27, 0.0 }
 0x248   : > { %v4195_v13 = vmax.f32 %v2995_v11, 0.0  ;;  %v4325_v39 = vmax.f32 %v3320_v15, 0.0 }
 0x249   : > { %v5460_v32 = vsel %vm4654_vm3, %v4450_v2, 0.0  ;;  %v5796_v33 = vsel %vm4654_vm3, %v4578_v38, 0.0 }
 0x24a   : > { %v5461_v8 = vadd.f32 %v5460_v32, %v5459_v19  ;;  %v5797_v50 = vadd.f32 %v5796_v33, %v5795_v21  ;;  %v4790_v9 = vsel %vm4654_vm3, %v4195_v13, 0.0  ;;  %v5130_v20 = vsel %vm4654_vm3, %v4325_v39, 0.0 }
 0x24b   : > { %v4791_v52 = vadd.f32 %v4790_v9, %v4789_v49  ;;  %v9440_v53 = vadd.f32 %v5130_v20, %v5129_v54 }
 0x24c   : > { %v3634_v12 = vpop.f32.mrf.mxu2  ;;  %v3954_v28 = vpop.f32.mrf.mxu3 }
 0x24d   : > { %v3635_v60 = vadd.f32 %v9211_v37, %v3634_v12  ;;  %v3955_v18 = vadd.f32 %v9211_v37, %v3954_v28  ;;  %v2997_v10 = vpop.f32.mrf.mxu0  ;;  %v3322_v62 = vpop.f32.mrf.mxu1  ;;  %v8106_v12 = vld [vmem:[%s8552_s19 + $0x120] sm:$0xff]  ;;  %v8171_v28 = vld [vmem:[%s8552_s19 + $0x328] sm:$0xff] }
 0x24e   : > { %v2998_v1 = vadd.f32 %v9211_v37, %v2997_v10  ;;  %v3323_v40 = vadd.f32 %v9211_v37, %v3322_v62  ;;  %v8234_v62 = vld [vmem:[%s8552_s19 + $0x520] sm:$0xff] }
 0x24f   : > { %v4451_v3 = vmax.f32 %v3635_v60, 0.0  ;;  %v4579_v30 = vmax.f32 %v3955_v18, 0.0 }
 0x250   : > { %v4196_v4 = vmax.f32 %v2998_v1, 0.0  ;;  %7823 = vmatmul.msk.bf16.gmra.mxu0 %vm2077_vm2, %v8105_v34  ;;  %7888 = vmatmul.msk.bf16.gmra.mxu1 %vm2077_vm2, %v8170_v57  ;;  %v4326_v21 = vmax.f32 %v3323_v40, 0.0 }
 0x251   : > { %v5462_v36 = vsel %vm4654_vm3, %v4451_v3, 0.0  ;;  %v5798_v48 = vsel %vm4654_vm3, %v4579_v30, 0.0  ;;  %7951 = vmatmul.msk.bf16.gmra.mxu2 %vm2077_vm2, %v8233_v35  ;;  %8015 = vmatmul.msk.bf16.gmra.mxu3 %vm2077_vm2, %v8297_v63  ;;  %v8298_v35 = vld [vmem:[%s8552_s19 + $0x720] sm:$0xff] }
 0x252   : > { %v5463_v61 = vadd.f32 %v5462_v36, %v5461_v8  ;;  %v5799_v59 = vadd.f32 %v5798_v48, %v5797_v50  ;;  %v4792_v16 = vsel %vm4654_vm3, %v4196_v4, 0.0  ;;  %v5138_v11 = vsel %vm4654_vm3, %v4326_v21, 0.0 }
 0x253   : > { %v4793_v19 = vadd.f32 %v4792_v16, %v4791_v52 }
 0x254   : > { %v3637_v23 = vpop.f32.mrf.mxu2  ;;  %v3957_v7 = vpop.f32.mrf.mxu3 }
 0x255   : > { %v3638_v49 = vadd.f32 %v9211_v37, %v3637_v23  ;;  %v3958_v54 = vadd.f32 %v9211_v37, %v3957_v7  ;;  %v2999_v55 = vpop.f32.mrf.mxu0  ;;  %v3324_v58 = vpop.f32.mrf.mxu1 }
 0x256   : > { %v3000_v17 = vadd.f32 %v9211_v37, %v2999_v55  ;;  %v3325_v27 = vadd.f32 %v9211_v37, %v3324_v58 }
 0x257   : > { %v4452_v29 = vmax.f32 %v3638_v49, 0.0  ;;  %v4580_v22 = vmax.f32 %v3958_v54, 0.0 }
 0x258   : > { %v4197_v15 = vmax.f32 %v3000_v17, 0.0  ;;  %v4327_v2 = vmax.f32 %v3325_v27, 0.0 }
 0x259   : > { %v5464_v38 = vsel %vm4654_vm3, %v4452_v29, 0.0  ;;  %v5800_v13 = vsel %vm4654_vm3, %v4580_v22, 0.0 }
 0x25a   : > { %v5465_v39 = vadd.f32 %v5464_v38, %v5463_v61  ;;  %v5801_v32 = vadd.f32 %v5800_v13, %v5799_v59  ;;  %v4794_v33 = vsel %vm4654_vm3, %v4197_v15, 0.0  ;;  %v5139_v8 = vsel %vm4654_vm3, %v4327_v2, 0.0 }
 0x25b   : > { %v4795_v50 = vadd.f32 %v4794_v33, %v4793_v19  ;;  %v5140_v9 = vadd.f32 %v5139_v8, %v5138_v11 }
 0x25c   : > { %v3639_v20 = vpop.f32.mrf.mxu2  ;;  %v3959_v52 = vpop.f32.mrf.mxu3 }
 0x25d   : > { %v4796_v34 = vrot.slane %v4795_v50, 4  ;;  %v3640_v57 = vadd.f32 %v9211_v37, %v3639_v20  ;;  %v3960_v60 = vadd.f32 %v9211_v37, %v3959_v52  ;;  %v9470_v18 = vpop.f32.mrf.mxu0  ;;  %v3327_v10 = vpop.f32.mrf.mxu1 }
 0x25e   : > { %v3328_v63 = vadd.f32 %v9211_v37, %v3327_v10 }
 0x25f   : > { %v4797_v1 = vadd.f32 %v4796_v34, %v4795_v50  ;;  %v4453_v3 = vmax.f32 %v3640_v57, 0.0  ;;  %v4581_v30 = vmax.f32 %v3960_v60, 0.0  ;;  %v8172_v34 = vld [vmem:[%s8552_s19 + $0x330] sm:$0xff] }
 0x260   : > { %v4328_v4 = vmax.f32 %v3328_v63, 0.0  ;;  %7824 = vmatmul.msk.bf16.gmra.mxu0 %vm2077_vm2, %v8106_v12  ;;  %7889 = vmatmul.msk.bf16.gmra.mxu1 %vm2077_vm2, %v8171_v28  ;;  %v8107_v28 = vld [vmem:[%s8552_s19 + $0x128] sm:$0xff] }
 0x261   : > { %v4798_v40 = vrot.slane %v4797_v1, 2  ;;  %v5466_v36 = vsel %vm4654_vm3, %v4453_v3, 0.0  ;;  %v5802_v48 = vsel %vm4654_vm3, %v4581_v30, 0.0  ;;  %7952 = vmatmul.msk.bf16.gmra.mxu2 %vm2077_vm2, %v8234_v62  ;;  %8016 = vmatmul.msk.bf16.gmra.mxu3 %vm2077_vm2, %v8298_v35  ;;  %v8235_v62 = vld [vmem:[%s8552_s19 + $0x528] sm:$0xff] }
 0x262   : > { %v5467_v61 = vadd.f32 %v5466_v36, %v5465_v39  ;;  %v5803_v59 = vadd.f32 %v5802_v48, %v5801_v32  ;;  %v5141_v16 = vsel %vm4654_vm3, %v4328_v4, 0.0  ;;  %v8299_v35 = vld [vmem:[%s8552_s19 + $0x728] sm:$0xff] }
 0x263   : > { %v4799_v19 = vadd.f32 %v4798_v40, %v4797_v1  ;;  %v5142_v21 = vadd.f32 %v5141_v16, %v5140_v9 }
 0x264   : > { %v5468_v23 = vrot.slane %v5467_v61, 4  ;;  %v5804_v7 = vrot.slane %v5803_v59, 4  ;;  %v9482_v49 = vpop.f32.mrf.mxu2  ;;  %v9484_v54 = vpop.f32.mrf.mxu3 }
 0x265   : > { %v4800_v55 = vrot.slane %v4799_v19, 1  ;;  %v9486_v58 = vpop.f32.mrf.mxu0  ;;  %v3329_v17 = vpop.f32.mrf.mxu1 }
 0x266   : > { %v5469_v27 = vadd.f32 %v5468_v23, %v5467_v61  ;;  %v5805_v29 = vadd.f32 %v5804_v7, %v5803_v59  ;;  %v3330_v22 = vadd.f32 %v9211_v37, %v3329_v17 }
 0x267   : > { %v4801_v11 = vadd.f32 %v4800_v55, %v4799_v19 }
 0x268   : > { %v5470_v15 = vrot.slane %v5469_v27, 2  ;;  %v5806_v2 = vrot.slane %v5805_v29, 2  ;;  %v4329_v38 = vmax.f32 %v3330_v22, 0.0 }
 0x269   : > { %v6005_v13 = vmul.f32 0.015625, %v4801_v11 }
 0x26a   : > { %v5471_v39 = vadd.f32 %v5470_v15, %v5469_v27  ;;  %v5807_v32 = vadd.f32 %v5806_v2, %v5805_v29  ;;  %v5143_v33 = vsel %vm4654_vm3, %v4329_v38, 0.0 }
 0x26b   : > { %v9492_v8 = vsel %vm6137_vm9, %v6005_v13, %v9368_v14  ;;  %v6212_v50 = vpack.c.bf16 %v6005_v13, %v6005_v13  ;;  %v5144_v37 = vadd.f32 %v5143_v33, %v5142_v21  ;;  %v9501_v14 = vld [vmem:[%s10716_s2] ss:$0 sm:$0xff]  ;;  %v8108_v33 = vld [vmem:[%s8552_s19 + $0x130] sm:$0xff] }
 0x26c   : > { %v5472_v9 = vrot.slane %v5471_v39, 1  ;;  %v5808_v20 = vrot.slane %v5807_v32, 1  ;;  %v3644_v52 = vpop.f32.mrf.mxu2  ;;  %v3964_v12 = vpop.f32.mrf.mxu3 }
 0x26d   : > { %v6300_v57 = vperm.slane %v6212_v50, 0  ;;  %v3007_v60 = vpop.f32.mrf.mxu0  ;;  %v3332_v10 = vpop.f32.mrf.mxu1  ;;  %v8173_v50 = vld [vmem:[%s8552_s19 + $0x338] sm:$0xff] }
 0x26e   : > { %v5473_v63 = vadd.f32 %v5472_v9, %v5471_v39  ;;  %v5809_v1 = vadd.f32 %v5808_v20, %v5807_v32  ;;  %v3333_v3 = vadd.f32 %v9501_v14, %v3332_v10  ;;  %v8236_v20 = vld [vmem:[%s8552_s19 + $0x530] sm:$0xff]  ;;  %v3003_v10 = vadd.f32 %v9501_v14, %v9470_v18 }
 0x26f   : > { %v6316_v30 = vunpack.c.l.b16 %v6300_v57  ;;  %v3965_v57 = vadd.f32 %v9501_v14, %v3964_v12  ;;  %v3008_v12 = vadd.f32 %v9501_v14, %v3007_v60 }
 0x270   : > { %v6037_v4 = vmul.f32 0.015625, %v5473_v63  ;;  %v6053_v40 = vmul.f32 0.015625, %v5809_v1  ;;  %v4330_v36 = vmax.f32 %v3333_v3, 0.0  ;;  %7825 = vmatmul.msk.bf16.gmra.mxu0 %vm2077_vm2, %v8107_v28  ;;  %7890 = vmatmul.msk.bf16.gmra.mxu1 %vm2077_vm2, %v8172_v34  ;;  %v8300_v28 = vld [vmem:[%s8552_s19 + $0x730] sm:$0xff] }
 0x271   : > { %7953 = vmatmul.msk.bf16.gmra.mxu2 %vm2077_vm2, %v8235_v62  ;;  %8017 = vmatmul.msk.bf16.gmra.mxu3 %vm2077_vm2, %v8299_v35  ;;  %v9510_v48 = vsel %vm6137_vm9, %v6316_v30, %v9388_v42  ;;  %v3643_v35 = vadd.f32 %v9501_v14, %v9482_v49  ;;  %v4583_v1 = vmax.f32 %v3965_v57, 0.0  ;;  %v4198_v30 = vmax.f32 %v3003_v10, 0.0 }
 0x272   : > { %v9514_v61 = vsel %vm6137_vm9, %v6037_v4, %v9392_v46  ;;  %v6244_v59 = vpack.c.bf16 %v6037_v4, %v6037_v4  ;;  %v9518_v16 = vsel %vm6137_vm9, %v6053_v40, %v9396_v45  ;;  %v6260_v19 = vpack.c.bf16 %v6053_v40, %v6053_v40 }
 0x273   : > { %v5145_v21 = vsel %vm4654_vm3, %v4330_v36, 0.0  ;;  %v4454_v49 = vmax.f32 %v3643_v35, 0.0  ;;  %v8109_v35 = vld [vmem:[%s8552_s19 + $0x138] sm:$0xff] }
 0x274   : > { %v6472_v23 = vperm.slane %v6244_v59, 0  ;;  %v6558_v7 = vperm.slane %v6260_v19, 0  ;;  %v5146_v55 = vadd.f32 %v5145_v21, %v5144_v37  ;;  %v3647_v17 = vpop.f32.mrf.mxu2  ;;  %v3967_v42 = vpop.f32.mrf.mxu3 }
 0x275   : > { %v3009_v27 = vpop.f32.mrf.mxu0  ;;  %v3334_v29 = vpop.f32.mrf.mxu1  ;;  %v3968_v4 = vadd.f32 %v9501_v14, %v3967_v42  ;;  %v4802_v42 = vsel %vm4654_vm3, %v4198_v30, 0.0 }
 0x276   : > { %v6488_v46 = vunpack.c.l.b16 %v6472_v23  ;;  %v6574_v22 = vunpack.c.l.b16 %v6558_v7  ;;  %v3335_v11 = vadd.f32 %v9501_v14, %v3334_v29  ;;  %v4200_v7 = vmax.f32 %v3008_v12, 0.0 }
 0x277   : > { %v3648_v29 = vadd.f32 %v9501_v14, %v3647_v17 }
 0x278   : > { %v9524_v45 = vsel %vm6137_vm9, %v6574_v22, %v9406_v31  ;;  %v4331_v15 = vmax.f32 %v3335_v11, 0.0  ;;  %v9528_v2 = vsel %vm6137_vm9, %v6488_v46, %v9410_v41  ;;  %v3005_v31 = vadd.f32 %v9501_v14, %v9486_v58 }
 0x279   : > { %v3963_v41 = vadd.f32 %v9501_v14, %v9484_v54  ;;  %v3645_v54 = vadd.f32 %v9501_v14, %v3644_v52  ;;  %v3010_v46 = vadd.f32 %v9501_v14, %v3009_v27  ;;  %v4584_v22 = vmax.f32 %v3968_v4, 0.0 }
 0x27a   : > { %v5147_v38 = vsel %vm4654_vm3, %v4331_v15, 0.0  ;;  %v4199_v58 = vmax.f32 %v3005_v31, 0.0  ;;  %v4805_v17 = vsel %vm4654_vm3, %v4200_v7, 0.0 }
 0x27b   : > { %v5148_v13 = vadd.f32 %v5147_v38, %v5146_v55  ;;  %v4582_v18 = vmax.f32 %v3963_v41, 0.0  ;;  %v4455_v23 = vmax.f32 %v3645_v54, 0.0  ;;  %v5811_v55 = vsel %vm4654_vm3, %v4583_v1, 0.0  ;;  %v8301_v1 = vld [vmem:[%s8552_s19 + $0x738] sm:$0xff] }
 0x27c   : > { %v3649_v39 = vpop.f32.mrf.mxu2  ;;  %v3969_v32 = vpop.f32.mrf.mxu3  ;;  %v4803_v21 = vsel %vm4654_vm3, %v4199_v58, 0.0  ;;  %v5474_v38 = vsel %vm4654_vm3, %v4454_v49, 0.0  ;;  %v8174_v58 = vld [vmem:[%s8552_s19 + $0x340] sm:$0xff] }
 0x27d   : > { %v3012_v37 = vpop.f32.mrf.mxu0  ;;  %v3337_v9 = vpop.f32.mrf.mxu1  ;;  %v5810_v60 = vsel %vm4654_vm3, %v4582_v18, 0.0  ;;  %v3970_v11 = vadd.f32 %v9501_v14, %v3969_v32  ;;  %v3650_v32 = vadd.f32 %v9501_v14, %v3649_v39  ;;  %v8237_v18 = vld [vmem:[%s8552_s19 + $0x538] sm:$0xff] }
 0x27e   : > { %v3338_v34 = vadd.f32 %v9501_v14, %v3337_v9  ;;  %v5812_v9 = vadd.f32 %v5811_v55, %v5810_v60 }
 0x27f   : > { %v4585_v41 = vmax.f32 %v3970_v11, 0.0 }
 0x280   : > { %v4332_v62 = vmax.f32 %v3338_v34, 0.0  ;;  %7826 = vmatmul.msk.bf16.gmra.mxu0 %vm2077_vm2, %v8108_v33  ;;  %7891 = vmatmul.msk.bf16.gmra.mxu1 %vm2077_vm2, %v8173_v50  ;;  %v3013_v33 = vadd.f32 %v9501_v14, %v3012_v37  ;;  %v5475_v50 = vsel %vm4654_vm3, %v4455_v23, 0.0  ;;  %v5813_v34 = vsel %vm4654_vm3, %v4584_v22, 0.0 }
 0x281   : > { %7954 = vmatmul.msk.bf16.gmra.mxu2 %vm2077_vm2, %v8236_v20  ;;  %8018 = vmatmul.msk.bf16.gmra.mxu3 %vm2077_vm2, %v8300_v28  ;;  %v4456_v20 = vmax.f32 %v3648_v29, 0.0  ;;  %v4201_v28 = vmax.f32 %v3010_v46, 0.0  ;;  %v5476_v30 = vadd.f32 %v5475_v50, %v5474_v38  ;;  %v5814_v49 = vadd.f32 %v5813_v34, %v5812_v9 }
 0x282   : > { %v5149_v63 = vsel %vm4654_vm3, %v4332_v62, 0.0  ;;  %v4202_v54 = vmax.f32 %v3013_v33, 0.0 }
 0x283   : > { %v5150_v3 = vadd.f32 %v5149_v63, %v5148_v13  ;;  %v4804_v13 = vadd.f32 %v4803_v21, %v4802_v42  ;;  %v5477_v4 = vsel %vm4654_vm3, %v4456_v20, 0.0 }
 0x284   : > { %v3652_v40 = vpop.f32.mrf.mxu2  ;;  %v3972_v36 = vpop.f32.mrf.mxu3  ;;  %v5478_v42 = vadd.f32 %v5477_v4, %v5476_v30 }
 0x285   : > { %v3014_v59 = vpop.f32.mrf.mxu0  ;;  %v3339_v19 = vpop.f32.mrf.mxu1  ;;  %v3973_v37 = vadd.f32 %v9501_v14, %v3972_v36  ;;  %v4806_v39 = vadd.f32 %v4805_v17, %v4804_v13  ;;  %v4807_v36 = vsel %vm4654_vm3, %v4201_v28, 0.0  ;;  %v3653_v60 = vadd.f32 %v9501_v14, %v3652_v40 }
 0x286   : > { %v3340_v52 = vadd.f32 %v9501_v14, %v3339_v19  ;;  %v3015_v57 = vadd.f32 %v9501_v14, %v3014_v59  ;;  %v4457_v19 = vmax.f32 %v3650_v32, 0.0  ;;  %v5815_v59 = vsel %vm4654_vm3, %v4585_v41, 0.0 }
 0x287   : > { %v4586_v21 = vmax.f32 %v3973_v37, 0.0  ;;  %v4808_v29 = vadd.f32 %v4807_v36, %v4806_v39  ;;  %v5816_v11 = vadd.f32 %v5815_v59, %v5814_v49  ;;  %v4458_v17 = vmax.f32 %v3653_v60, 0.0 }
 0x288   : > { %v4333_v15 = vmax.f32 %v3340_v52, 0.0  ;;  %v4203_v23 = vmax.f32 %v3015_v57, 0.0  ;;  %v4809_v52 = vsel %vm4654_vm3, %v4202_v54, 0.0  ;;  %v5479_v22 = vsel %vm4654_vm3, %v4457_v19, 0.0 }
 0x289   : > { %v4810_v38 = vadd.f32 %v4809_v52, %v4808_v29  ;;  %v5817_v13 = vsel %vm4654_vm3, %v4586_v21, 0.0  ;;  %v8175_v29 = vld [vmem:[%s8552_s19 + $0x348] sm:$0xff] }
 0x28a   : > { %v5151_v27 = vsel %vm4654_vm3, %v4333_v15, 0.0  ;;  %v4811_v33 = vsel %vm4654_vm3, %v4203_v23, 0.0 }
 0x28b   : > { %v9567_v31 = vadd.f32 %v5151_v27, %v5150_v3 }
 0x28c   : > { %v3654_v10 = vpop.f32.mrf.mxu2  ;;  %v3974_v62 = vpop.f32.mrf.mxu3 }
 0x28d   : > { %v3017_v12 = vpop.f32.mrf.mxu0  ;;  %v3342_v63 = vpop.f32.mrf.mxu1  ;;  %v3975_v55 = vadd.f32 %v9501_v14, %v3974_v62  ;;  %v3655_v15 = vadd.f32 %v9501_v14, %v3654_v10  ;;  %v5480_v10 = vadd.f32 %v5479_v22, %v5478_v42  ;;  %v5818_v62 = vadd.f32 %v5817_v13, %v5816_v11  ;;  %v8238_v13 = vld [vmem:[%s8552_s19 + $0x540] sm:$0xff] }
 0x28e   : > { %v3018_v3 = vadd.f32 %v9501_v14, %v3017_v12  ;;  %v3343_v7 = vadd.f32 %v9501_v14, %v3342_v63 }
 0x28f   : > { %v4587_v27 = vmax.f32 %v3975_v55, 0.0  ;;  %v8110_v55 = vld [vmem:[%s8552_s19 + $0x140] sm:$0xff] }
 0x290   : > { %7827 = vmatmul.msk.bf16.gmra.mxu0 %vm2077_vm2, %v8109_v35  ;;  %7892 = vmatmul.msk.bf16.gmra.mxu1 %vm2077_vm2, %v8174_v58  ;;  %v4204_v46 = vmax.f32 %v3018_v3, 0.0  ;;  %v4334_v40 = vmax.f32 %v3343_v7, 0.0  ;;  %v4812_v35 = vadd.f32 %v4811_v33, %v4810_v38  ;;  %v4459_v58 = vmax.f32 %v3655_v15, 0.0  ;;  %v8302_v33 = vld [vmem:[%s8552_s19 + $0x740] sm:$0xff] }
 0x291   : > { %7955 = vmatmul.msk.bf16.gmra.mxu2 %vm2077_vm2, %v8237_v18  ;;  %8019 = vmatmul.msk.bf16.gmra.mxu3 %vm2077_vm2, %v8301_v1  ;;  %v5481_v1 = vsel %vm4654_vm3, %v4458_v17, 0.0  ;;  %v5819_v30 = vsel %vm4654_vm3, %v4587_v27, 0.0 }
 0x292   : > { %v4813_v41 = vsel %vm4654_vm3, %v4204_v46, 0.0  ;;  %v5159_v54 = vsel %vm4654_vm3, %v4334_v40, 0.0  ;;  %v5483_v36 = vsel %vm4654_vm3, %v4459_v58, 0.0  ;;  %v5482_v21 = vadd.f32 %v5481_v1, %v5480_v10 }
 0x293   : > { %v4814_v39 = vadd.f32 %v4813_v41, %v4812_v35  ;;  %v5820_v23 = vadd.f32 %v5819_v30, %v5818_v62 }
 0x294   : > { %v3657_v50 = vpop.f32.mrf.mxu2  ;;  %v3977_v9 = vpop.f32.mrf.mxu3  ;;  %v5484_v40 = vadd.f32 %v5483_v36, %v5482_v21 }
 0x295   : > { %v3658_v20 = vadd.f32 %v9501_v14, %v3657_v50  ;;  %v3978_v28 = vadd.f32 %v9501_v14, %v3977_v9  ;;  %v3019_v32 = vpop.f32.mrf.mxu0  ;;  %v3344_v34 = vpop.f32.mrf.mxu1 }
 0x296   : > { %v3020_v37 = vadd.f32 %v9501_v14, %v3019_v32  ;;  %v3345_v57 = vadd.f32 %v9501_v14, %v3344_v34 }
 0x297   : > { %v4460_v12 = vmax.f32 %v3658_v20, 0.0  ;;  %v4588_v3 = vmax.f32 %v3978_v28, 0.0 }
 0x298   : > { %v4205_v63 = vmax.f32 %v3020_v37, 0.0  ;;  %v4335_v18 = vmax.f32 %v3345_v57, 0.0 }
 0x299   : > { %v5485_v7 = vsel %vm4654_vm3, %v4460_v12, 0.0  ;;  %v5821_v46 = vsel %vm4654_vm3, %v4588_v3, 0.0 }
 0x29a   : > { %v4815_v4 = vsel %vm4654_vm3, %v4205_v63, 0.0  ;;  %v5160_v49 = vsel %vm4654_vm3, %v4335_v18, 0.0  ;;  %v5486_v20 = vadd.f32 %v5485_v7, %v5484_v40  ;;  %v5822_v28 = vadd.f32 %v5821_v46, %v5820_v23 }
 0x29b   : > { %v4816_v19 = vadd.f32 %v4815_v4, %v4814_v39  ;;  %v5161_v59 = vadd.f32 %v5160_v49, %v5159_v54 }
 0x29c   : > { %v3659_v52 = vpop.f32.mrf.mxu2  ;;  %v3979_v60 = vpop.f32.mrf.mxu3 }
 0x29d   : > { %v4817_v42 = vrot.slane %v4816_v19, 4  ;;  %v3660_v22 = vadd.f32 %v9501_v14, %v3659_v52  ;;  %v3980_v11 = vadd.f32 %v9501_v14, %v3979_v60  ;;  %v3022_v15 = vpop.f32.mrf.mxu0  ;;  %v3347_v38 = vpop.f32.mrf.mxu1 }
 0x29e   : > { %v3348_v50 = vadd.f32 %v9501_v14, %v3347_v38  ;;  %v3023_v57 = vadd.f32 %v9501_v14, %v3022_v15 }
 0x29f   : > { %v4818_v9 = vadd.f32 %v4817_v42, %v4816_v19  ;;  %v4461_v17 = vmax.f32 %v3660_v22, 0.0  ;;  %v4589_v27 = vmax.f32 %v3980_v11, 0.0 }
 0x2a0   : > { %v4336_v32 = vmax.f32 %v3348_v50, 0.0  ;;  %7828 = vmatmul.msk.bf16.gmra.mxu0 %vm2077_vm2, %v8110_v55  ;;  %7893 = vmatmul.msk.bf16.gmra.mxu1 %vm2077_vm2, %v8175_v29  ;;  %v4206_v39 = vmax.f32 %v3023_v57, 0.0 }
 0x2a1   : > { %v4819_v34 = vrot.slane %v4818_v9, 2  ;;  %v5487_v41 = vsel %vm4654_vm3, %v4461_v17, 0.0  ;;  %v5823_v37 = vsel %vm4654_vm3, %v4589_v27, 0.0  ;;  %7956 = vmatmul.msk.bf16.gmra.mxu2 %vm2077_vm2, %v8238_v13  ;;  %8020 = vmatmul.msk.bf16.gmra.mxu3 %vm2077_vm2, %v8302_v33 }
 0x2a2   : > { %v5488_v10 = vadd.f32 %v5487_v41, %v5486_v20  ;;  %v5824_v62 = vadd.f32 %v5823_v37, %v5822_v28  ;;  %v5162_v35 = vsel %vm4654_vm3, %v4336_v32, 0.0  ;;  %v4823_v42 = vsel %vm4654_vm3, %v4206_v39, 0.0  ;;  %v8176_v41 = vld [vmem:[%s8552_s19 + $0x350] sm:$0xff] }
 0x2a3   : > { %v4820_v58 = vadd.f32 %v4819_v34, %v4818_v9  ;;  %v5163_v54 = vadd.f32 %v5162_v35, %v5161_v59  ;;  %v8111_v34 = vld [vmem:[%s8552_s19 + $0x148] sm:$0xff] }
 0x2a4   : > { %v5489_v12 = vrot.slane %v5488_v10, 4  ;;  %v5825_v63 = vrot.slane %v5824_v62, 4  ;;  %v3662_v18 = vpop.f32.mrf.mxu2  ;;  %v3982_v1 = vpop.f32.mrf.mxu3 }
 0x2a5   : > { %v4821_v30 = vrot.slane %v4820_v58, 1  ;;  %v3663_v3 = vadd.f32 %v9501_v14, %v3662_v18  ;;  %v3983_v4 = vadd.f32 %v9501_v14, %v3982_v1  ;;  %v3024_v49 = vpop.f32.mrf.mxu0  ;;  %v3349_v36 = vpop.f32.mrf.mxu1 }
 0x2a6   : > { %v5490_v19 = vadd.f32 %v5489_v12, %v5488_v10  ;;  %v5826_v21 = vadd.f32 %v5825_v63, %v5824_v62  ;;  %v3025_v23 = vadd.f32 %v9501_v14, %v3024_v49  ;;  %v3350_v7 = vadd.f32 %v9501_v14, %v3349_v36  ;;  %v8303_v12 = vld [vmem:[%s8552_s19 + $0x748] sm:$0xff] }
 0x2a7   : > { %v4822_v59 = vadd.f32 %v4821_v30, %v4820_v58  ;;  %v4462_v22 = vmax.f32 %v3663_v3, 0.0  ;;  %v4590_v11 = vmax.f32 %v3983_v4, 0.0  ;;  %v8239_v58 = vld [vmem:[%s8552_s19 + $0x548] sm:$0xff] }
 0x2a8   : > { %v5491_v52 = vrot.slane %v5490_v19, 2  ;;  %v5827_v60 = vrot.slane %v5826_v21, 2  ;;  %v4207_v55 = vmax.f32 %v3025_v23, 0.0  ;;  %v4337_v29 = vmax.f32 %v3350_v7, 0.0 }
 0x2a9   : > { %v6006_v46 = vmul.f32 0.015625, %v4822_v59  ;;  %v5495_v57 = vsel %vm4654_vm3, %v4462_v22, 0.0  ;;  %v5831_v39 = vsel %vm4654_vm3, %v4590_v11, 0.0 }
 0x2aa   : > { %v5492_v15 = vadd.f32 %v5491_v52, %v5490_v19  ;;  %v5828_v38 = vadd.f32 %v5827_v60, %v5826_v21  ;;  %v4824_v13 = vsel %vm4654_vm3, %v4207_v55, 0.0  ;;  %v5164_v33 = vsel %vm4654_vm3, %v4337_v29, 0.0 }
 0x2ab   : > { %v6140_v40 = vsel %vm6139_vm10, %v6006_v46, %v9492_v8  ;;  %v6213_v50 = vpack.c.bf16 %v6006_v46, %v6006_v46  ;;  %v4825_v9 = vadd.f32 %v4824_v13, %v4823_v42  ;;  %v5165_v17 = vadd.f32 %v5164_v33, %v5163_v54 }
 0x2ac   : > { %6198 = vst.msk [vmem:[%s9631_s9] sm:$0xff] %vm4654_vm3, %v6140_v40  ;;  %v5493_v27 = vrot.slane %v5492_v15, 1  ;;  %v5829_v20 = vrot.slane %v5828_v38, 1  ;;  %v3664_v28 = vpop.f32.mrf.mxu2  ;;  %v3984_v32 = vpop.f32.mrf.mxu3 }
 0x2ad   : > { %v6301_v37 = vperm.slane %v6213_v50, 0  ;;  %v3665_v10 = vadd.f32 %v9501_v14, %v3664_v28  ;;  %v3985_v8 = vadd.f32 %v9501_v14, %v3984_v32  ;;  %v3027_v62 = vpop.f32.mrf.mxu0  ;;  %v3352_v35 = vpop.f32.mrf.mxu1 }
 0x2ae   : > { %v5494_v54 = vadd.f32 %v5493_v27, %v5492_v15  ;;  %v5830_v63 = vadd.f32 %v5829_v20, %v5828_v38  ;;  %v3028_v18 = vadd.f32 %v9501_v14, %v3027_v62  ;;  %v3353_v1 = vadd.f32 %v9501_v14, %v3352_v35 }
 0x2af   : > { %v6317_v30 = vunpack.c.l.b16 %v6301_v37  ;;  %v4463_v3 = vmax.f32 %v3665_v10, 0.0  ;;  %v4591_v4 = vmax.f32 %v3985_v8, 0.0 }
 0x2b0   : > { %v6038_v49 = vmul.f32 0.015625, %v5494_v54  ;;  %v6054_v36 = vmul.f32 0.015625, %v5830_v63  ;;  %v4208_v19 = vmax.f32 %v3028_v18, 0.0  ;;  %v4338_v21 = vmax.f32 %v3353_v1, 0.0  ;;  %7829 = vmatmul.msk.bf16.gmra.mxu0 %vm2077_vm2, %v8111_v34  ;;  %7894 = vmatmul.msk.bf16.gmra.mxu1 %vm2077_vm2, %v8176_v41 }
 0x2b1   : > { %v5496_v23 = vsel %vm4654_vm3, %v4463_v3, 0.0  ;;  %v5832_v7 = vsel %vm4654_vm3, %v4591_v4, 0.0  ;;  %7957 = vmatmul.msk.bf16.gmra.mxu2 %vm2077_vm2, %v8239_v58  ;;  %8021 = vmatmul.msk.bf16.gmra.mxu3 %vm2077_vm2, %v8303_v12  ;;  %v9658_v59 = vsel %vm6139_vm10, %v6317_v30, %v9510_v48  ;;  %v8112_v30 = vld [vmem:[%s8552_s19 + $0x150] sm:$0xff] }
 0x2b2   : > { %v6168_v52 = vsel %vm6139_vm10, %v6038_v49, %v9514_v61  ;;  %v6245_v60 = vpack.c.bf16 %v6038_v49, %v6038_v49  ;;  %v6182_v55 = vsel %vm6139_vm10, %v6054_v36, %v9518_v16  ;;  %v6261_v29 = vpack.c.bf16 %v6054_v36, %v6054_v36  ;;  %v8240_v36 = vld [vmem:[%s8552_s19 + $0x550] sm:$0xff] }
 0x2b3   : > { %6202 = vst.msk [vmem:[%s9631_s9 + $0x20] sm:$0xff] %vm4654_vm3, %v6168_v52  ;;  %v5497_v46 = vadd.f32 %v5496_v23, %v5495_v57  ;;  %v5833_v42 = vadd.f32 %v5832_v7, %v5831_v39  ;;  %v4826_v22 = vsel %vm4654_vm3, %v4208_v19, 0.0  ;;  %v5166_v11 = vsel %vm4654_vm3, %v4338_v21, 0.0  ;;  %v8177_v39 = vld [vmem:[%s8552_s19 + $0x358] sm:$0xff]  ;;  %v8304_v19 = vld [vmem:[%s8552_s19 + $0x750] sm:$0xff] }
 0x2b4   : > { %v6473_v15 = vperm.slane %v6245_v60, 0  ;;  %6204 = vst.msk [vmem:[%s9631_s9 + $0x30] sm:$0xff] %vm4654_vm3, %v6182_v55  ;;  %v6559_v48 = vperm.slane %v6261_v29, 0  ;;  %v4827_v38 = vadd.f32 %v4826_v22, %v4825_v9  ;;  %v5167_v13 = vadd.f32 %v5166_v11, %v5165_v17  ;;  %v3667_v61 = vpop.f32.mrf.mxu2  ;;  %v3987_v33 = vpop.f32.mrf.mxu3 }
 0x2b5   : > { %v3668_v40 = vadd.f32 %v9501_v14, %v3667_v61  ;;  %v3988_v16 = vadd.f32 %v9501_v14, %v3987_v33  ;;  %v3029_v50 = vpop.f32.mrf.mxu0  ;;  %v3354_v27 = vpop.f32.mrf.mxu1 }
 0x2b6   : > { %v6489_v20 = vunpack.c.l.b16 %v6473_v15  ;;  %v6575_v28 = vunpack.c.l.b16 %v6559_v48  ;;  %v3030_v32 = vadd.f32 %v9501_v14, %v3029_v50  ;;  %v3355_v34 = vadd.f32 %v9501_v14, %v3354_v27 }
 0x2b7   : > { %v4464_v41 = vmax.f32 %v3668_v40, 0.0  ;;  %v4592_v37 = vmax.f32 %v3988_v16, 0.0 }
 0x2b8   : > { %v4209_v9 = vmax.f32 %v3030_v32, 0.0  ;;  %v4339_v17 = vmax.f32 %v3355_v34, 0.0  ;;  %v9676_v57 = vsel %vm6139_vm10, %v6489_v20, %v9528_v2  ;;  %v9680_v10 = vsel %vm6139_vm10, %v6575_v28, %v9524_v45 }
 0x2b9   : > { %v5498_v8 = vsel %vm4654_vm3, %v4464_v41, 0.0  ;;  %v5834_v62 = vsel %vm4654_vm3, %v4592_v37, 0.0 }
 0x2ba   : > { %v5499_v35 = vadd.f32 %v5498_v8, %v5497_v46  ;;  %v5835_v58 = vadd.f32 %v5834_v62, %v5833_v42  ;;  %v4828_v12 = vsel %vm4654_vm3, %v4209_v9, 0.0  ;;  %v5168_v54 = vsel %vm4654_vm3, %v4339_v17, 0.0 }
 0x2bb   : > { %v4829_v63 = vadd.f32 %v4828_v12, %v4827_v38  ;;  %v5169_v18 = vadd.f32 %v5168_v54, %v5167_v13 }
 0x2bc   : > { %v3669_v2 = vpop.f32.mrf.mxu2  ;;  %v3989_v1 = vpop.f32.mrf.mxu3 }
 0x2bd   : > { %v3670_v45 = vadd.f32 %v9501_v14, %v3669_v2  ;;  %v3990_v3 = vadd.f32 %v9501_v14, %v3989_v1  ;;  %v3032_v4 = vpop.f32.mrf.mxu0  ;;  %v3357_v49 = vpop.f32.mrf.mxu1  ;;  %v8178_v2 = vld [vmem:[%s8552_s19 + $0x360] sm:$0xff] }
 0x2be   : > { %v3033_v21 = vadd.f32 %v9501_v14, %v3032_v4  ;;  %v3358_v23 = vadd.f32 %v9501_v14, %v3357_v49  ;;  %v8305_v4 = vld [vmem:[%s8552_s19 + $0x758] sm:$0xff] }
 0x2bf   : > { %v4465_v7 = vmax.f32 %v3670_v45, 0.0  ;;  %v4593_v52 = vmax.f32 %v3990_v3, 0.0  ;;  %v8241_v3 = vld [vmem:[%s8552_s19 + $0x558] sm:$0xff] }
 0x2c0   : > { %v4210_v60 = vmax.f32 %v3033_v21, 0.0  ;;  %v4340_v55 = vmax.f32 %v3358_v23, 0.0  ;;  %7830 = vmatmul.msk.bf16.gmra.mxu0 %vm2077_vm2, %v8112_v30  ;;  %7895 = vmatmul.msk.bf16.gmra.mxu1 %vm2077_vm2, %v8177_v39 }
 0x2c1   : > { %v5500_v29 = vsel %vm4654_vm3, %v4465_v7, 0.0  ;;  %v5836_v46 = vsel %vm4654_vm3, %v4593_v52, 0.0  ;;  %7958 = vmatmul.msk.bf16.gmra.mxu2 %vm2077_vm2, %v8240_v36  ;;  %8022 = vmatmul.msk.bf16.gmra.mxu3 %vm2077_vm2, %v8304_v19 }
 0x2c2   : > { %v5501_v42 = vadd.f32 %v5500_v29, %v5499_v35  ;;  %v5837_v22 = vadd.f32 %v5836_v46, %v5835_v58  ;;  %v4830_v11 = vsel %vm4654_vm3, %v4210_v60, 0.0  ;;  %v5170_v15 = vsel %vm4654_vm3, %v4340_v55, 0.0 }
 0x2c3   : > { %v4831_v48 = vadd.f32 %v4830_v11, %v4829_v63  ;;  %v5171_v38 = vadd.f32 %v5170_v15, %v5169_v18  ;;  %v8113_v18 = vld [vmem:[%s8552_s19 + $0x158] sm:$0xff] }
 0x2c4   : > { %v3672_v13 = vpop.f32.mrf.mxu2  ;;  %v3992_v61 = vpop.f32.mrf.mxu3 }
 0x2c5   : > { %v3673_v33 = vadd.f32 %v9501_v14, %v3672_v13  ;;  %v3993_v40 = vadd.f32 %v9501_v14, %v3992_v61  ;;  %v3034_v16 = vpop.f32.mrf.mxu0  ;;  %v3359_v50 = vpop.f32.mrf.mxu1 }
 0x2c6   : > { %v3035_v27 = vadd.f32 %v9501_v14, %v3034_v16  ;;  %v3360_v20 = vadd.f32 %v9501_v14, %v3359_v50 }
 0x2c7   : > { %v4466_v28 = vmax.f32 %v3673_v33, 0.0  ;;  %v4594_v32 = vmax.f32 %v3993_v40, 0.0 }
 0x2c8   : > { %v4211_v34 = vmax.f32 %v3035_v27, 0.0  ;;  %v4341_v41 = vmax.f32 %v3360_v20, 0.0 }
 0x2c9   : > { %v5502_v37 = vsel %vm4654_vm3, %v4466_v28, 0.0  ;;  %v5838_v9 = vsel %vm4654_vm3, %v4594_v32, 0.0 }
 0x2ca   : > { %v5503_v17 = vadd.f32 %v5502_v37, %v5501_v42  ;;  %v5839_v8 = vadd.f32 %v5838_v9, %v5837_v22  ;;  %v4832_v62 = vsel %vm4654_vm3, %v4211_v34, 0.0  ;;  %v5172_v35 = vsel %vm4654_vm3, %v4341_v41, 0.0 }
 0x2cb   : > { %v4833_v58 = vadd.f32 %v4832_v62, %v4831_v48  ;;  %v9710_v12 = vadd.f32 %v5172_v35, %v5171_v38 }
 0x2cc   : > { %v3674_v54 = vpop.f32.mrf.mxu2  ;;  %v3994_v63 = vpop.f32.mrf.mxu3 }
 0x2cd   : > { %v3675_v1 = vadd.f32 %v9501_v14, %v3674_v54  ;;  %v3995_v30 = vadd.f32 %v9501_v14, %v3994_v63  ;;  %v3037_v39 = vpop.f32.mrf.mxu0  ;;  %v3362_v45 = vpop.f32.mrf.mxu1  ;;  %v8179_v54 = vld [vmem:[%s8552_s19 + $0x368] sm:$0xff] }
 0x2ce   : > { %v3038_v49 = vadd.f32 %v9501_v14, %v3037_v39  ;;  %v3363_v23 = vadd.f32 %v9501_v14, %v3362_v45  ;;  %v8306_v39 = vld [vmem:[%s8552_s19 + $0x760] sm:$0xff] }
 0x2cf   : > { %v4467_v36 = vmax.f32 %v3675_v1, 0.0  ;;  %v4595_v19 = vmax.f32 %v3995_v30, 0.0  ;;  %v8242_v30 = vld [vmem:[%s8552_s19 + $0x560] sm:$0xff] }
 0x2d0   : > { %v4212_v21 = vmax.f32 %v3038_v49, 0.0  ;;  %7831 = vmatmul.msk.bf16.gmra.mxu0 %vm2077_vm2, %v8113_v18  ;;  %7896 = vmatmul.msk.bf16.gmra.mxu1 %vm2077_vm2, %v8178_v2  ;;  %v4342_v42 = vmax.f32 %v3363_v23, 0.0 }
 0x2d1   : > { %v5504_v7 = vsel %vm4654_vm3, %v4467_v36, 0.0  ;;  %v5840_v52 = vsel %vm4654_vm3, %v4595_v19, 0.0  ;;  %7959 = vmatmul.msk.bf16.gmra.mxu2 %vm2077_vm2, %v8241_v3  ;;  %8023 = vmatmul.msk.bf16.gmra.mxu3 %vm2077_vm2, %v8305_v4 }
 0x2d2   : > { %v5505_v60 = vadd.f32 %v5504_v7, %v5503_v17  ;;  %v5841_v55 = vadd.f32 %v5840_v52, %v5839_v8  ;;  %v4834_v29 = vsel %vm4654_vm3, %v4212_v21, 0.0  ;;  %v5180_v50 = vsel %vm4654_vm3, %v4342_v42, 0.0 }
 0x2d3   : > { %v4835_v46 = vadd.f32 %v4834_v29, %v4833_v58  ;;  %v8114_v58 = vld [vmem:[%s8552_s19 + $0x160] sm:$0xff] }
 0x2d4   : > { %v3677_v22 = vpop.f32.mrf.mxu2  ;;  %v3997_v11 = vpop.f32.mrf.mxu3 }
 0x2d5   : > { %v3678_v15 = vadd.f32 %v9501_v14, %v3677_v22  ;;  %v3998_v48 = vadd.f32 %v9501_v14, %v3997_v11  ;;  %v3039_v38 = vpop.f32.mrf.mxu0  ;;  %v3364_v13 = vpop.f32.mrf.mxu1 }
 0x2d6   : > { %v3040_v61 = vadd.f32 %v9501_v14, %v3039_v38  ;;  %v3365_v33 = vadd.f32 %v9501_v14, %v3364_v13 }
 0x2d7   : > { %v4468_v40 = vmax.f32 %v3678_v15, 0.0  ;;  %v4596_v16 = vmax.f32 %v3998_v48, 0.0 }
 0x2d8   : > { %v4213_v27 = vmax.f32 %v3040_v61, 0.0  ;;  %v4343_v20 = vmax.f32 %v3365_v33, 0.0 }
 0x2d9   : > { %v5506_v28 = vsel %vm4654_vm3, %v4468_v40, 0.0  ;;  %v5842_v32 = vsel %vm4654_vm3, %v4596_v16, 0.0 }
 0x2da   : > { %v5507_v34 = vadd.f32 %v5506_v28, %v5505_v60  ;;  %v5843_v41 = vadd.f32 %v5842_v32, %v5841_v55  ;;  %v4836_v37 = vsel %vm4654_vm3, %v4213_v27, 0.0  ;;  %v5181_v9 = vsel %vm4654_vm3, %v4343_v20, 0.0 }
 0x2db   : > { %v9736_v17 = vadd.f32 %v4836_v37, %v4835_v46  ;;  %v5182_v8 = vadd.f32 %v5181_v9, %v5180_v50  ;;  %v8180_v37 = vld [vmem:[%s8552_s19 + $0x370] sm:$0xff] }
 0x2dc   : > { %v3679_v62 = vpop.f32.mrf.mxu2  ;;  %v3999_v35 = vpop.f32.mrf.mxu3 }
 0x2dd   : > { %v3680_v63 = vadd.f32 %v9501_v14, %v3679_v62  ;;  %v4000_v18 = vadd.f32 %v9501_v14, %v3999_v35  ;;  %v3042_v2 = vpop.f32.mrf.mxu0  ;;  %v3367_v1 = vpop.f32.mrf.mxu1 }
 0x2de   : > { %v3368_v45 = vadd.f32 %v9501_v14, %v3367_v1  ;;  %v3043_v7 = vadd.f32 %v9501_v14, %v3042_v2 }
 0x2df   : > { %v4469_v3 = vmax.f32 %v3680_v63, 0.0  ;;  %v4597_v4 = vmax.f32 %v4000_v18, 0.0 }
 0x2e0   : > { %v4344_v49 = vmax.f32 %v3368_v45, 0.0  ;;  %7832 = vmatmul.msk.bf16.gmra.mxu0 %vm2077_vm2, %v8114_v58  ;;  %7897 = vmatmul.msk.bf16.gmra.mxu1 %vm2077_vm2, %v8179_v54  ;;  %v4214_v22 = vmax.f32 %v3043_v7, 0.0  ;;  %v8243_v58 = vld [vmem:[%s8552_s19 + $0x568] sm:$0xff] }
 0x2e1   : > { %v5508_v36 = vsel %vm4654_vm3, %v4469_v3, 0.0  ;;  %v5844_v19 = vsel %vm4654_vm3, %v4597_v4, 0.0  ;;  %7960 = vmatmul.msk.bf16.gmra.mxu2 %vm2077_vm2, %v8242_v30  ;;  %8024 = vmatmul.msk.bf16.gmra.mxu3 %vm2077_vm2, %v8306_v39  ;;  %v8307_v54 = vld [vmem:[%s8552_s19 + $0x768] sm:$0xff] }
 0x2e2   : > { %v9751_v21 = vadd.f32 %v5508_v36, %v5507_v34  ;;  %v9753_v23 = vadd.f32 %v5844_v19, %v5843_v41  ;;  %v5183_v52 = vsel %vm4654_vm3, %v4344_v49, 0.0  ;;  %v4844_v33 = vsel %vm4654_vm3, %v4214_v22, 0.0  ;;  %v8115_v41 = vld [vmem:[%s8552_s19 + $0x168] sm:$0xff] }
 0x2e3   : > { %v5184_v60 = vadd.f32 %v5183_v52, %v5182_v8 }
 0x2e4   : > { %v3682_v55 = vpop.f32.mrf.mxu2  ;;  %v4002_v29 = vpop.f32.mrf.mxu3 }
 0x2e5   : > { %v3044_v46 = vpop.f32.mrf.mxu0  ;;  %v3369_v42 = vpop.f32.mrf.mxu1  ;;  %v3683_v48 = vadd.f32 %v9501_v14, %v3682_v55  ;;  %v4003_v38 = vadd.f32 %v9501_v14, %v4002_v29 }
 0x2e6   : > { %v3045_v11 = vadd.f32 %v9501_v14, %v3044_v46  ;;  %v3370_v15 = vadd.f32 %v9501_v14, %v3369_v42  ;;  %v5174_v42 = vrot.slane %v9710_v12, 4 }
 0x2e7   : > { %v4470_v50 = vmax.f32 %v3683_v48, 0.0  ;;  %v4598_v27 = vmax.f32 %v4003_v38, 0.0 }
 0x2e8   : > { %v4215_v13 = vmax.f32 %v3045_v11, 0.0  ;;  %v4345_v61 = vmax.f32 %v3370_v15, 0.0 }
 0x2e9   : > { %v5516_v2 = vsel %vm4654_vm3, %v4470_v50, 0.0  ;;  %v5852_v1 = vsel %vm4654_vm3, %v4598_v27, 0.0  ;;  %v5175_v50 = vadd.f32 %v5174_v42, %v9710_v12 }
 0x2ea   : > { %v4845_v40 = vsel %vm4654_vm3, %v4215_v13, 0.0  ;;  %v5185_v16 = vsel %vm4654_vm3, %v4345_v61, 0.0 }
 0x2eb   : > { %v4846_v20 = vadd.f32 %v4845_v40, %v4844_v33  ;;  %v5186_v28 = vadd.f32 %v5185_v16, %v5184_v60 }
 0x2ec   : > { %v3684_v32 = vpop.f32.mrf.mxu2  ;;  %v4004_v34 = vpop.f32.mrf.mxu3 }
 0x2ed   : > { %v3685_v9 = vadd.f32 %v9501_v14, %v3684_v32  ;;  %v4005_v8 = vadd.f32 %v9501_v14, %v4004_v34  ;;  %v3047_v62 = vpop.f32.mrf.mxu0  ;;  %v3372_v35 = vpop.f32.mrf.mxu1 }
 0x2ee   : > { %v3048_v63 = vadd.f32 %v9501_v14, %v3047_v62  ;;  %v3373_v18 = vadd.f32 %v9501_v14, %v3372_v35  ;;  %v8116_v35 = vld [vmem:[%s8552_s19 + $0x170] sm:$0xff] }
 0x2ef   : > { %v4471_v30 = vmax.f32 %v3685_v9, 0.0  ;;  %v4599_v39 = vmax.f32 %v4005_v8, 0.0 }
 0x2f0   : > { %v4216_v45 = vmax.f32 %v3048_v63, 0.0  ;;  %v4346_v3 = vmax.f32 %v3373_v18, 0.0  ;;  %7833 = vmatmul.msk.bf16.gmra.mxu0 %vm2077_vm2, %v8115_v41  ;;  %7898 = vmatmul.msk.bf16.gmra.mxu1 %vm2077_vm2, %v8180_v37 }
 0x2f1   : > { %v5517_v4 = vsel %vm4654_vm3, %v4471_v30, 0.0  ;;  %v5853_v49 = vsel %vm4654_vm3, %v4599_v39, 0.0  ;;  %7961 = vmatmul.msk.bf16.gmra.mxu2 %vm2077_vm2, %v8243_v58  ;;  %8025 = vmatmul.msk.bf16.gmra.mxu3 %vm2077_vm2, %v8307_v54  ;;  %v8181_v58 = vld [vmem:[%s8552_s19 + $0x378] sm:$0xff]  ;;  %v5176_v54 = vrot.slane %v5175_v50, 2  ;;  %v8308_v30 = vld [vmem:[%s8552_s19 + $0x770] sm:$0xff] }
 0x2f2   : > { %v5518_v36 = vadd.f32 %v5517_v4, %v5516_v2  ;;  %v5854_v19 = vadd.f32 %v5853_v49, %v5852_v1  ;;  %v4847_v7 = vsel %vm4654_vm3, %v4216_v45, 0.0  ;;  %v5187_v52 = vsel %vm4654_vm3, %v4346_v3, 0.0  ;;  %v8244_v1 = vld [vmem:[%s8552_s19 + $0x570] sm:$0xff] }
 0x2f3   : > { %v4848_v60 = vadd.f32 %v4847_v7, %v4846_v20  ;;  %v5188_v55 = vadd.f32 %v5187_v52, %v5186_v28  ;;  %v4838_v3 = vrot.slane %v9736_v17, 4  ;;  %v5177_v7 = vadd.f32 %v5176_v54, %v5175_v50 }
 0x2f4   : > { %v3687_v29 = vpop.f32.mrf.mxu2  ;;  %v4007_v46 = vpop.f32.mrf.mxu3 }
 0x2f5   : > { %v3688_v22 = vadd.f32 %v9501_v14, %v3687_v29  ;;  %v4008_v11 = vadd.f32 %v9501_v14, %v4007_v46  ;;  %v3049_v15 = vpop.f32.mrf.mxu0  ;;  %v3374_v48 = vpop.f32.mrf.mxu1  ;;  %v4839_v42 = vadd.f32 %v4838_v3, %v9736_v17 }
 0x2f6   : > { %v3050_v38 = vadd.f32 %v9501_v14, %v3049_v15  ;;  %v3375_v13 = vadd.f32 %v9501_v14, %v3374_v48 }
 0x2f7   : > { %v4472_v61 = vmax.f32 %v3688_v22, 0.0  ;;  %v4600_v33 = vmax.f32 %v4008_v11, 0.0 }
 0x2f8   : > { %v4217_v40 = vmax.f32 %v3050_v38, 0.0  ;;  %v4347_v16 = vmax.f32 %v3375_v13, 0.0  ;;  %v5178_v38 = vrot.slane %v5177_v7, 1  ;;  %v9813_v13 = vld [vmem:[%s10716_s2] ss:$0 sm:$0xff] }
 0x2f9   : > { %v5519_v27 = vsel %vm4654_vm3, %v4472_v61, 0.0  ;;  %v5855_v20 = vsel %vm4654_vm3, %v4600_v33, 0.0 }
 0x2fa   : > { %v5520_v28 = vadd.f32 %v5519_v27, %v5518_v36  ;;  %v5856_v32 = vadd.f32 %v5855_v20, %v5854_v19  ;;  %v4849_v34 = vsel %vm4654_vm3, %v4217_v40, 0.0  ;;  %v5189_v41 = vsel %vm4654_vm3, %v4347_v16, 0.0 }
 0x2fb   : > { %v4850_v37 = vadd.f32 %v4849_v34, %v4848_v60  ;;  %v5190_v9 = vadd.f32 %v5189_v41, %v5188_v55  ;;  %v4840_v27 = vrot.slane %v4839_v42, 2  ;;  %v5179_v41 = vadd.f32 %v5178_v38, %v5177_v7 }
 0x2fc   : > { %v3689_v8 = vpop.f32.mrf.mxu2  ;;  %v4009_v62 = vpop.f32.mrf.mxu3 }
 0x2fd   : > { %v3690_v12 = vadd.f32 %v9501_v14, %v3689_v8  ;;  %v4010_v63 = vadd.f32 %v9501_v14, %v4009_v62  ;;  %v3052_v18 = vpop.f32.mrf.mxu0  ;;  %v3377_v2 = vpop.f32.mrf.mxu1 }
 0x2fe   : > { %v3053_v39 = vadd.f32 %v9501_v14, %v3052_v18  ;;  %v3378_v45 = vadd.f32 %v9501_v14, %v3377_v2  ;;  %v5846_v2 = vrot.slane %v9753_v23, 4 }
 0x2ff   : > { %v4473_v4 = vmax.f32 %v3690_v12, 0.0  ;;  %v4601_v49 = vmax.f32 %v4010_v63, 0.0  ;;  %v4841_v12 = vadd.f32 %v4840_v27, %v4839_v42 }
 0x300   : > { %v4218_v36 = vmax.f32 %v3053_v39, 0.0  ;;  %v4348_v19 = vmax.f32 %v3378_v45, 0.0  ;;  %7834 = vmatmul.msk.bf16.gmra.mxu0 %vm2077_vm2, %v8116_v35  ;;  %7899 = vmatmul.msk.bf16.gmra.mxu1 %vm2077_vm2, %v8181_v58  ;;  %v8117_v39 = vld [vmem:[%s8552_s19 + $0x178] sm:$0xff]  ;;  %v8182_v45 = vld [vmem:[%s8552_s19 + $0x380] sm:$0xff] }
 0x301   : > { %v5521_v52 = vsel %vm4654_vm3, %v4473_v4, 0.0  ;;  %v5857_v60 = vsel %vm4654_vm3, %v4601_v49, 0.0  ;;  %7962 = vmatmul.msk.bf16.gmra.mxu2 %vm2077_vm2, %v8244_v1  ;;  %8026 = vmatmul.msk.bf16.gmra.mxu3 %vm2077_vm2, %v8308_v30 }
 0x302   : > { %v5522_v14 = vadd.f32 %v5521_v52, %v5520_v28  ;;  %v5858_v55 = vadd.f32 %v5857_v60, %v5856_v32  ;;  %v4851_v29 = vsel %vm4654_vm3, %v4218_v36, 0.0  ;;  %v5191_v46 = vsel %vm4654_vm3, %v4348_v19, 0.0  ;;  %v8245_v52 = vld [vmem:[%s8552_s19 + $0x578] sm:$0xff] }
 0x303   : > { %v4852_v22 = vadd.f32 %v4851_v29, %v4850_v37  ;;  %v5192_v11 = vadd.f32 %v5191_v46, %v5190_v9  ;;  %v5510_v37 = vrot.slane %v9751_v21, 4  ;;  %v8309_v60 = vld [vmem:[%s8552_s19 + $0x778] sm:$0xff]  ;;  %v4842_v29 = vrot.slane %v4841_v12, 1 }
 0x304   : > { %v3692_v15 = vpop.f32.mrf.mxu2  ;;  %v4012_v48 = vpop.f32.mrf.mxu3 }
 0x305   : > { %v3693_v61 = vadd.f32 %v9813_v13, %v3692_v15  ;;  %v4013_v33 = vadd.f32 %v9813_v13, %v4012_v48  ;;  %v3054_v40 = vpop.f32.mrf.mxu0  ;;  %v3379_v16 = vpop.f32.mrf.mxu1  ;;  %v5511_v3 = vadd.f32 %v5510_v37, %v9751_v21 }
 0x306   : > { %v3055_v50 = vadd.f32 %v9813_v13, %v3054_v40  ;;  %v3380_v17 = vadd.f32 %v9813_v13, %v3379_v16 }
 0x307   : > { %v4474_v20 = vmax.f32 %v3693_v61, 0.0  ;;  %v4602_v28 = vmax.f32 %v4013_v33, 0.0  ;;  %v5512_v48 = vrot.slane %v5511_v3, 2 }
 0x308   : > { %v4219_v32 = vmax.f32 %v3055_v50, 0.0  ;;  %v4349_v34 = vmax.f32 %v3380_v17, 0.0  ;;  %v4843_v17 = vadd.f32 %v4842_v29, %v4841_v12 }
 0x309   : > { %v5523_v9 = vsel %vm4654_vm3, %v4474_v20, 0.0  ;;  %v5859_v8 = vsel %vm4654_vm3, %v4602_v28, 0.0  ;;  %v5513_v37 = vadd.f32 %v5512_v48, %v5511_v3 }
 0x30a   : > { %v5524_v62 = vadd.f32 %v5523_v9, %v5522_v14  ;;  %v5860_v35 = vadd.f32 %v5859_v8, %v5858_v55  ;;  %v4853_v58 = vsel %vm4654_vm3, %v4219_v32, 0.0  ;;  %v5193_v54 = vsel %vm4654_vm3, %v4349_v34, 0.0 }
 0x30b   : > { %v4854_v63 = vadd.f32 %v4853_v58, %v4852_v22  ;;  %v5194_v18 = vadd.f32 %v5193_v54, %v5192_v11  ;;  %v6023_v14 = vmul.f32 0.015625, %v5179_v41  ;;  %v5847_v11 = vadd.f32 %v5846_v2, %v9753_v23 }
 0x30c   : > { %v3694_v1 = vpop.f32.mrf.mxu2  ;;  %v4014_v30 = vpop.f32.mrf.mxu3  ;;  %v9846_v12 = vmul.f32 0.015625, %v4843_v17 }
 0x30d   : > { %v5195_v4 = vrot.slane %v5194_v18, 4  ;;  %v3695_v49 = vadd.f32 %v9813_v13, %v3694_v1  ;;  %v4015_v36 = vadd.f32 %v9813_v13, %v4014_v30  ;;  %v3057_v19 = vpop.f32.mrf.mxu0  ;;  %v3382_v7 = vpop.f32.mrf.mxu1  ;;  %v6230_v40 = vpack.c.bf16 %v6023_v14, %v6023_v14 }
 0x30e   : > { %v3058_v55 = vadd.f32 %v9813_v13, %v3057_v19  ;;  %v3383_v21 = vadd.f32 %v9813_v13, %v3382_v7  ;;  %v5848_v28 = vrot.slane %v5847_v11, 2 }
 0x30f   : > { %v5196_v46 = vadd.f32 %v5195_v4, %v5194_v18  ;;  %v4475_v42 = vmax.f32 %v3695_v49, 0.0  ;;  %v4603_v22 = vmax.f32 %v4015_v36, 0.0  ;;  %v6388_v2 = vperm.slane %v6230_v40, 0 }
 0x310   : > { %v4220_v15 = vmax.f32 %v3058_v55, 0.0  ;;  %7835 = vmatmul.msk.bf16.gmra.mxu0 %vm2077_vm2, %v8117_v39  ;;  %7900 = vmatmul.msk.bf16.gmra.mxu1 %vm2077_vm2, %v8182_v45  ;;  %v4350_v32 = vmax.f32 %v3383_v21, 0.0  ;;  %v5849_v39 = vadd.f32 %v5848_v28, %v5847_v11  ;;  %v5514_v49 = vrot.slane %v5513_v37, 1 }
 0x311   : > { %v5197_v38 = vrot.slane %v5196_v46, 2  ;;  %v5525_v61 = vsel %vm4654_vm3, %v4475_v42, 0.0  ;;  %v5861_v33 = vsel %vm4654_vm3, %v4603_v22, 0.0  ;;  %7963 = vmatmul.msk.bf16.gmra.mxu2 %vm2077_vm2, %v8245_v52  ;;  %8027 = vmatmul.msk.bf16.gmra.mxu3 %vm2077_vm2, %v8309_v60  ;;  %v6214_v28 = vpack.c.bf16 %v9846_v12, %v9846_v12 }
 0x312   : > { %v5526_v16 = vadd.f32 %v5525_v61, %v5524_v62  ;;  %v5862_v23 = vadd.f32 %v5861_v33, %v5860_v35  ;;  %v4855_v50 = vsel %vm4654_vm3, %v4220_v15, 0.0  ;;  %v5201_v45 = vsel %vm4654_vm3, %v4350_v32, 0.0  ;;  %v8183_v61 = vld [vmem:[%s8552_s19 + $0x388] sm:$0xff] }
 0x313   : > { %v5198_v27 = vadd.f32 %v5197_v38, %v5196_v46  ;;  %v4856_v20 = vadd.f32 %v4855_v50, %v4854_v63  ;;  %v6404_v15 = vunpack.c.l.b16 %v6388_v2  ;;  %v8118_v38 = vld [vmem:[%s8552_s19 + $0x180] sm:$0xff]  ;;  %v5850_v32 = vrot.slane %v5849_v39, 1 }
 0x314   : > { %v3697_v34 = vpop.f32.mrf.mxu2  ;;  %v4017_v41 = vpop.f32.mrf.mxu3 }
 0x315   : > { %v5199_v9 = vrot.slane %v5198_v27, 1  ;;  %v3698_v8 = vadd.f32 %v9813_v13, %v3697_v34  ;;  %v4018_v58 = vadd.f32 %v9813_v13, %v4017_v41  ;;  %v3059_v54 = vpop.f32.mrf.mxu0  ;;  %v3384_v18 = vpop.f32.mrf.mxu1 }
 0x316   : > { %v3060_v62 = vadd.f32 %v9813_v13, %v3059_v54  ;;  %v3385_v35 = vadd.f32 %v9813_v13, %v3384_v18 }
 0x317   : > { %v5200_v63 = vadd.f32 %v5199_v9, %v5198_v27  ;;  %v4476_v1 = vmax.f32 %v3698_v8, 0.0  ;;  %v4604_v30 = vmax.f32 %v4018_v58, 0.0  ;;  %v8246_v27 = vld [vmem:[%s8552_s19 + $0x580] sm:$0xff] }
 0x318   : > { %v4221_v3 = vmax.f32 %v3060_v62, 0.0  ;;  %v4351_v4 = vmax.f32 %v3385_v35, 0.0 }
 0x319   : > { %v6024_v36 = vmul.f32 0.015625, %v5200_v63  ;;  %v5527_v19 = vsel %vm4654_vm3, %v4476_v1, 0.0  ;;  %v5863_v7 = vsel %vm4654_vm3, %v4604_v30, 0.0  ;;  %v9875_v63 = vperm.slane %v6214_v28, 0 }
 0x31a   : > { %v5528_v52 = vadd.f32 %v5527_v19, %v5526_v16  ;;  %v5864_v60 = vadd.f32 %v5863_v7, %v5862_v23  ;;  %v4857_v55 = vsel %vm4654_vm3, %v4221_v3, 0.0  ;;  %v5202_v29 = vsel %vm4654_vm3, %v4351_v4, 0.0 }
 0x31b   : > { %v9854_v46 = vsel %vm6127_vm4, %v6024_v36, %v6023_v14  ;;  %v6231_v42 = vpack.c.bf16 %v6024_v36, %v6024_v36  ;;  %v4858_v22 = vadd.f32 %v4857_v55, %v4856_v20  ;;  %v5203_v11 = vadd.f32 %v5202_v29, %v5201_v45  ;;  %v8310_v14 = vld [vmem:[%s8552_s19 + $0x780] sm:$0xff] }
 0x31c   : > { %v3699_v21 = vpop.f32.mrf.mxu2  ;;  %v4019_v48 = vpop.f32.mrf.mxu3  ;;  %v5515_v20 = vadd.f32 %v5514_v49, %v5513_v37  ;;  %v5851_v4 = vadd.f32 %v5850_v32, %v5849_v39 }
 0x31d   : > { %v6389_v33 = vperm.slane %v6231_v42, 0  ;;  %v4859_v40 = vrot.slane %v4858_v22, 4  ;;  %v3700_v16 = vadd.f32 %v9813_v13, %v3699_v21  ;;  %v4020_v23 = vadd.f32 %v9813_v13, %v4019_v48  ;;  %v3062_v50 = vpop.f32.mrf.mxu0  ;;  %v3387_v17 = vpop.f32.mrf.mxu1 }
 0x31e   : > { %v3388_v34 = vadd.f32 %v9813_v13, %v3387_v17  ;;  %v3063_v54 = vadd.f32 %v9813_v13, %v3062_v50  ;;  %v9878_v3 = vmul.f32 0.015625, %v5515_v20 }
 0x31f   : > { %v6405_v41 = vunpack.c.l.b16 %v6389_v33  ;;  %v4860_v9 = vadd.f32 %v4859_v40, %v4858_v22  ;;  %v4477_v8 = vmax.f32 %v3700_v16, 0.0  ;;  %v4605_v58 = vmax.f32 %v4020_v23, 0.0 }
 0x320   : > { %v4352_v18 = vmax.f32 %v3388_v34, 0.0  ;;  %7836 = vmatmul.msk.bf16.gmra.mxu0 %vm2077_vm2, %v8118_v38  ;;  %7901 = vmatmul.msk.bf16.gmra.mxu1 %vm2077_vm2, %v8183_v61  ;;  %v4222_v22 = vmax.f32 %v3063_v54, 0.0  ;;  %v6246_v33 = vpack.c.bf16 %v9878_v3, %v9878_v3  ;;  %v6055_v40 = vmul.f32 0.015625, %v5851_v4  ;;  %v8119_v4 = vld [vmem:[%s8552_s19 + $0x188] sm:$0xff] }
 0x321   : > { %v9869_v2 = vsel %vm6127_vm4, %v6405_v41, %v6404_v15  ;;  %v4861_v62 = vrot.slane %v4860_v9, 2  ;;  %v5529_v37 = vsel %vm4654_vm3, %v4477_v8, 0.0  ;;  %v5865_v35 = vsel %vm4654_vm3, %v4605_v58, 0.0  ;;  %7964 = vmatmul.msk.bf16.gmra.mxu2 %vm2077_vm2, %v8246_v27  ;;  %8028 = vmatmul.msk.bf16.gmra.mxu3 %vm2077_vm2, %v8310_v14 }
 0x322   : > { %v5530_v1 = vadd.f32 %v5529_v37, %v5528_v52  ;;  %v5866_v30 = vadd.f32 %v5865_v35, %v5864_v60  ;;  %v5204_v45 = vsel %vm4654_vm3, %v4352_v18, 0.0  ;;  %v4865_v28 = vsel %vm4654_vm3, %v4222_v22, 0.0  ;;  %v8311_v22 = vld [vmem:[%s8552_s19 + $0x788] sm:$0xff] }
 0x323   : > { %v4862_v49 = vadd.f32 %v4861_v62, %v4860_v9  ;;  %v5205_v36 = vadd.f32 %v5204_v45, %v5203_v11  ;;  %v6318_v11 = vunpack.c.l.b16 %v9875_v63  ;;  %v9894_v37 = vperm.slane %v6246_v33, 0 }
 0x324   : > { %v5531_v19 = vrot.slane %v5530_v1, 4  ;;  %v5867_v7 = vrot.slane %v5866_v30, 4  ;;  %v3702_v55 = vpop.f32.mrf.mxu2  ;;  %v4022_v29 = vpop.f32.mrf.mxu3  ;;  %v6262_v35 = vpack.c.bf16 %v6055_v40, %v6055_v40 }
 0x325   : > { %v4863_v42 = vrot.slane %v4862_v49, 1  ;;  %v3703_v15 = vadd.f32 %v9813_v13, %v3702_v55  ;;  %v4023_v21 = vadd.f32 %v9813_v13, %v4022_v29  ;;  %v3064_v48 = vpop.f32.mrf.mxu0  ;;  %v3389_v52 = vpop.f32.mrf.mxu1 }
 0x326   : > { %v5532_v60 = vadd.f32 %v5531_v19, %v5530_v1  ;;  %v5868_v38 = vadd.f32 %v5867_v7, %v5866_v30  ;;  %v3065_v61 = vadd.f32 %v9813_v13, %v3064_v48  ;;  %v3390_v39 = vadd.f32 %v9813_v13, %v3389_v52 }
 0x327   : > { %v4864_v16 = vadd.f32 %v4863_v42, %v4862_v49  ;;  %v4478_v20 = vmax.f32 %v3703_v15, 0.0  ;;  %v4606_v32 = vmax.f32 %v4023_v21, 0.0  ;;  %v8184_v49 = vld [vmem:[%s8552_s19 + $0x390] sm:$0xff] }
 0x328   : > { %v5533_v23 = vrot.slane %v5532_v60, 2  ;;  %v5869_v50 = vrot.slane %v5868_v38, 2  ;;  %v4223_v17 = vmax.f32 %v3065_v61, 0.0  ;;  %v4353_v27 = vmax.f32 %v3390_v39, 0.0 }
 0x329   : > { %v6008_v14 = vmul.f32 0.015625, %v4864_v16  ;;  %v5537_v7 = vsel %vm4654_vm3, %v4478_v20, 0.0 }
 0x32a   : > { %v5534_v34 = vadd.f32 %v5533_v23, %v5532_v60  ;;  %v5870_v41 = vadd.f32 %v5869_v50, %v5868_v38  ;;  %v4866_v9 = vsel %vm4654_vm3, %v4223_v17, 0.0  ;;  %v5206_v8 = vsel %vm4654_vm3, %v4353_v27, 0.0 }
 0x32b   : > { %v9892_v58 = vsel %vm6127_vm4, %v6008_v14, %v9846_v12  ;;  %v6215_v54 = vpack.c.bf16 %v6008_v14, %v6008_v14  ;;  %v4867_v18 = vadd.f32 %v4866_v9, %v4865_v28  ;;  %v5207_v62 = vadd.f32 %v5206_v8, %v5205_v36  ;;  %v8247_v36 = vld [vmem:[%s8552_s19 + $0x588] sm:$0xff] }
 0x32c   : > { %v5535_v63 = vrot.slane %v5534_v34, 1  ;;  %v5871_v1 = vrot.slane %v5870_v41, 1  ;;  %v3704_v30 = vpop.f32.mrf.mxu2  ;;  %v4024_v45 = vpop.f32.mrf.mxu3  ;;  %v5873_v38 = vsel %vm4654_vm3, %v4606_v32, 0.0  ;;  %v6560_v17 = vperm.slane %v6262_v35, 0 }
 0x32d   : > { %v6303_v19 = vperm.slane %v6215_v54, 0  ;;  %v3705_v12 = vadd.f32 %v9813_v13, %v3704_v30  ;;  %v4025_v55 = vadd.f32 %v9813_v13, %v4024_v45  ;;  %v3067_v29 = vpop.f32.mrf.mxu0  ;;  %v3392_v42 = vpop.f32.mrf.mxu1 }
 0x32e   : > { %v5536_v15 = vadd.f32 %v5535_v63, %v5534_v34  ;;  %v5872_v21 = vadd.f32 %v5871_v1, %v5870_v41  ;;  %v3068_v48 = vadd.f32 %v9813_v13, %v3067_v29  ;;  %v3393_v52 = vadd.f32 %v9813_v13, %v3392_v42 }
 0x32f   : > { %v6319_v60 = vunpack.c.l.b16 %v6303_v19  ;;  %v4479_v61 = vmax.f32 %v3705_v12, 0.0  ;;  %v4607_v39 = vmax.f32 %v4025_v55, 0.0 }
 0x330   : > { %v6040_v33 = vmul.f32 0.015625, %v5536_v15  ;;  %v6056_v16 = vmul.f32 0.015625, %v5872_v21  ;;  %v4224_v23 = vmax.f32 %v3068_v48, 0.0  ;;  %v4354_v50 = vmax.f32 %v3393_v52, 0.0  ;;  %7837 = vmatmul.msk.bf16.gmra.mxu0 %vm2077_vm2, %v8119_v4  ;;  %7902 = vmatmul.msk.bf16.gmra.mxu1 %vm2077_vm2, %v8184_v49 }
 0x331   : > { %v9909_v27 = vsel %vm6127_vm4, %v6319_v60, %v6318_v11  ;;  %v5538_v14 = vsel %vm4654_vm3, %v4479_v61, 0.0  ;;  %v5874_v28 = vsel %vm4654_vm3, %v4607_v39, 0.0  ;;  %7965 = vmatmul.msk.bf16.gmra.mxu2 %vm2077_vm2, %v8247_v36  ;;  %8029 = vmatmul.msk.bf16.gmra.mxu3 %vm2077_vm2, %v8311_v22  ;;  %v6576_v49 = vunpack.c.l.b16 %v6560_v17  ;;  %v8120_v17 = vld [vmem:[%s8552_s19 + $0x190] sm:$0xff] }
 0x332   : > { %v9917_v20 = vsel %vm6127_vm4, %v6040_v33, %v9878_v3  ;;  %v6247_v32 = vpack.c.bf16 %v6040_v33, %v6040_v33  ;;  %v9920_v34 = vsel %vm6127_vm4, %v6056_v16, %v6055_v40  ;;  %v6263_v41 = vpack.c.bf16 %v6056_v16, %v6056_v16 }
 0x333   : > { %v5539_v9 = vadd.f32 %v5538_v14, %v5537_v7  ;;  %v5875_v11 = vadd.f32 %v5874_v28, %v5873_v38  ;;  %v4868_v8 = vsel %vm4654_vm3, %v4224_v23, 0.0  ;;  %v5208_v54 = vsel %vm4654_vm3, %v4354_v50, 0.0  ;;  %v8185_v14 = vld [vmem:[%s8552_s19 + $0x398] sm:$0xff] }
 0x334   : > { %v6475_v35 = vperm.slane %v6247_v32, 0  ;;  %v6561_v63 = vperm.slane %v6263_v41, 0  ;;  %v4869_v1 = vadd.f32 %v4868_v8, %v4867_v18  ;;  %v5209_v30 = vadd.f32 %v5208_v54, %v5207_v62  ;;  %v3707_v45 = vpop.f32.mrf.mxu2  ;;  %v4027_v4 = vpop.f32.mrf.mxu3  ;;  %v8248_v54 = vld [vmem:[%s8552_s19 + $0x590] sm:$0xff] }
 0x335   : > { %v6490_v3 = vunpack.c.l.b16 %v9894_v37  ;;  %v3708_v19 = vadd.f32 %v9813_v13, %v3707_v45  ;;  %v4028_v40 = vadd.f32 %v9813_v13, %v4027_v4  ;;  %v3069_v12 = vpop.f32.mrf.mxu0  ;;  %v3394_v7 = vpop.f32.mrf.mxu1 }
 0x336   : > { %v6491_v55 = vunpack.c.l.b16 %v6475_v35  ;;  %v6577_v29 = vunpack.c.l.b16 %v6561_v63  ;;  %v3070_v42 = vadd.f32 %v9813_v13, %v3069_v12  ;;  %v3395_v36 = vadd.f32 %v9813_v13, %v3394_v7  ;;  %v8312_v35 = vld [vmem:[%s8552_s19 + $0x790] sm:$0xff] }
 0x337   : > { %v4480_v22 = vmax.f32 %v3708_v19, 0.0  ;;  %v4608_v18 = vmax.f32 %v4028_v40, 0.0 }
 0x338   : > { %v9930_v62 = vsel %vm6127_vm4, %v6491_v55, %v6490_v3  ;;  %v9933_v37 = vsel %vm6127_vm4, %v6577_v29, %v6576_v49  ;;  %v4225_v15 = vmax.f32 %v3070_v42, 0.0  ;;  %v4355_v21 = vmax.f32 %v3395_v36, 0.0 }
 0x339   : > { %v5540_v48 = vsel %vm4654_vm3, %v4480_v22, 0.0  ;;  %v5876_v52 = vsel %vm4654_vm3, %v4608_v18, 0.0 }
 0x33a   : > { %v5541_v60 = vadd.f32 %v5540_v48, %v5539_v9  ;;  %v5877_v38 = vadd.f32 %v5876_v52, %v5875_v11  ;;  %v4870_v61 = vsel %vm4654_vm3, %v4225_v15, 0.0  ;;  %v5210_v39 = vsel %vm4654_vm3, %v4355_v21, 0.0 }
 0x33b   : > { %v4871_v33 = vadd.f32 %v4870_v61, %v4869_v1  ;;  %v5211_v16 = vadd.f32 %v5210_v39, %v5209_v30 }
 0x33c   : > { %v3709_v23 = vpop.f32.mrf.mxu2  ;;  %v4029_v50 = vpop.f32.mrf.mxu3 }
 0x33d   : > { %v3710_v28 = vadd.f32 %v9813_v13, %v3709_v23  ;;  %v4030_v32 = vadd.f32 %v9813_v13, %v4029_v50  ;;  %v3072_v41 = vpop.f32.mrf.mxu0  ;;  %v3397_v8 = vpop.f32.mrf.mxu1 }
 0x33e   : > { %v3073_v9 = vadd.f32 %v9813_v13, %v3072_v41  ;;  %v3398_v11 = vadd.f32 %v9813_v13, %v3397_v8  ;;  %v8121_v8 = vld [vmem:[%s8552_s19 + $0x198] sm:$0xff] }
 0x33f   : > { %v4481_v63 = vmax.f32 %v3710_v28, 0.0  ;;  %v4609_v45 = vmax.f32 %v4030_v32, 0.0 }
 0x340   : > { %v4226_v1 = vmax.f32 %v3073_v9, 0.0  ;;  %v4356_v30 = vmax.f32 %v3398_v11, 0.0  ;;  %7838 = vmatmul.msk.bf16.gmra.mxu0 %vm2077_vm2, %v8120_v17  ;;  %7903 = vmatmul.msk.bf16.gmra.mxu1 %vm2077_vm2, %v8185_v14 }
 0x341   : > { %v5542_v4 = vsel %vm4654_vm3, %v4481_v63, 0.0  ;;  %v5878_v3 = vsel %vm4654_vm3, %v4609_v45, 0.0  ;;  %7966 = vmatmul.msk.bf16.gmra.mxu2 %vm2077_vm2, %v8248_v54  ;;  %8030 = vmatmul.msk.bf16.gmra.mxu3 %vm2077_vm2, %v8312_v35  ;;  %v8186_v54 = vld [vmem:[%s8552_s19 + $0x3a0] sm:$0xff] }
 0x342   : > { %v5543_v49 = vadd.f32 %v5542_v4, %v5541_v60  ;;  %v5879_v19 = vadd.f32 %v5878_v3, %v5877_v38  ;;  %v4872_v40 = vsel %vm4654_vm3, %v4226_v1, 0.0  ;;  %v5212_v12 = vsel %vm4654_vm3, %v4356_v30, 0.0  ;;  %v8249_v1 = vld [vmem:[%s8552_s19 + $0x598] sm:$0xff] }
 0x343   : > { %v4873_v7 = vadd.f32 %v4872_v40, %v4871_v33  ;;  %v5213_v55 = vadd.f32 %v5212_v12, %v5211_v16  ;;  %v8313_v30 = vld [vmem:[%s8552_s19 + $0x798] sm:$0xff] }
 0x344   : > { %v3712_v29 = vpop.f32.mrf.mxu2  ;;  %v4032_v42 = vpop.f32.mrf.mxu3 }
 0x345   : > { %v3713_v36 = vadd.f32 %v9813_v13, %v3712_v29  ;;  %v4033_v22 = vadd.f32 %v9813_v13, %v4032_v42  ;;  %v3074_v18 = vpop.f32.mrf.mxu0  ;;  %v3399_v15 = vpop.f32.mrf.mxu1 }
 0x346   : > { %v3075_v21 = vadd.f32 %v9813_v13, %v3074_v18  ;;  %v3400_v48 = vadd.f32 %v9813_v13, %v3399_v15 }
 0x347   : > { %v4482_v52 = vmax.f32 %v3713_v36, 0.0  ;;  %v4610_v60 = vmax.f32 %v4033_v22, 0.0 }
 0x348   : > { %v4227_v38 = vmax.f32 %v3075_v21, 0.0  ;;  %v4357_v61 = vmax.f32 %v3400_v48, 0.0 }
 0x349   : > { %v5544_v39 = vsel %vm4654_vm3, %v4482_v52, 0.0  ;;  %v5880_v33 = vsel %vm4654_vm3, %v4610_v60, 0.0 }
 0x34a   : > { %v5545_v16 = vadd.f32 %v5544_v39, %v5543_v49  ;;  %v5881_v23 = vadd.f32 %v5880_v33, %v5879_v19  ;;  %v4874_v50 = vsel %vm4654_vm3, %v4227_v38, 0.0  ;;  %v5214_v17 = vsel %vm4654_vm3, %v4357_v61, 0.0 }
 0x34b   : > { %v4875_v14 = vadd.f32 %v4874_v50, %v4873_v7  ;;  %v5215_v28 = vadd.f32 %v5214_v17, %v5213_v55 }
 0x34c   : > { %v3714_v32 = vpop.f32.mrf.mxu2  ;;  %v4034_v41 = vpop.f32.mrf.mxu3 }
 0x34d   : > { %v5216_v35 = vrot.slane %v5215_v28, 4  ;;  %v3715_v9 = vadd.f32 %v9813_v13, %v3714_v32  ;;  %v4035_v11 = vadd.f32 %v9813_v13, %v4034_v41  ;;  %v3077_v63 = vpop.f32.mrf.mxu0  ;;  %v3402_v45 = vpop.f32.mrf.mxu1 }
 0x34e   : > { %v3078_v4 = vadd.f32 %v9813_v13, %v3077_v63  ;;  %v3403_v12 = vadd.f32 %v9813_v13, %v3402_v45 }
 0x34f   : > { %v5217_v3 = vadd.f32 %v5216_v35, %v5215_v28  ;;  %v4483_v49 = vmax.f32 %v3715_v9, 0.0  ;;  %v4611_v19 = vmax.f32 %v4035_v11, 0.0 }
 0x350   : > { %v4228_v40 = vmax.f32 %v3078_v4, 0.0  ;;  %7839 = vmatmul.msk.bf16.gmra.mxu0 %vm2077_vm2, %v8121_v8  ;;  %7904 = vmatmul.msk.bf16.gmra.mxu1 %vm2077_vm2, %v8186_v54  ;;  %v4358_v21 = vmax.f32 %v3403_v12, 0.0  ;;  %v8187_v12 = vld [vmem:[%s8552_s19 + $0x3a8] sm:$0xff] }
 0x351   : > { %v5218_v7 = vrot.slane %v5217_v3, 2  ;;  %v5546_v55 = vsel %vm4654_vm3, %v4483_v49, 0.0  ;;  %v5882_v29 = vsel %vm4654_vm3, %v4611_v19, 0.0  ;;  %7967 = vmatmul.msk.bf16.gmra.mxu2 %vm2077_vm2, %v8249_v1  ;;  %8031 = vmatmul.msk.bf16.gmra.mxu3 %vm2077_vm2, %v8313_v30 }
 0x352   : > { %v5547_v42 = vadd.f32 %v5546_v55, %v5545_v16  ;;  %v5883_v36 = vadd.f32 %v5882_v29, %v5881_v23  ;;  %v4876_v22 = vsel %vm4654_vm3, %v4228_v40, 0.0  ;;  %v5222_v32 = vsel %vm4654_vm3, %v4358_v21, 0.0  ;;  %v8122_v40 = vld [vmem:[%s8552_s19 + $0x1a0] sm:$0xff] }
 0x353   : > { %v5219_v18 = vadd.f32 %v5218_v7, %v5217_v3  ;;  %v4877_v15 = vadd.f32 %v4876_v22, %v4875_v14  ;;  %v8314_v21 = vld [vmem:[%s8552_s19 + $0x7a0] sm:$0xff] }
 0x354   : > { %v3717_v48 = vpop.f32.mrf.mxu2  ;;  %v4037_v52 = vpop.f32.mrf.mxu3 }
 0x355   : > { %v5220_v60 = vrot.slane %v5219_v18, 1  ;;  %v3718_v38 = vadd.f32 %v9813_v13, %v3717_v48  ;;  %v4038_v61 = vadd.f32 %v9813_v13, %v4037_v52  ;;  %v3079_v39 = vpop.f32.mrf.mxu0  ;;  %v3404_v33 = vpop.f32.mrf.mxu1 }
 0x356   : > { %v3080_v50 = vadd.f32 %v9813_v13, %v3079_v39  ;;  %v3405_v17 = vadd.f32 %v9813_v13, %v3404_v33 }
 0x357   : > { %v5221_v16 = vadd.f32 %v5220_v60, %v5219_v18  ;;  %v4484_v23 = vmax.f32 %v3718_v38, 0.0  ;;  %v4612_v28 = vmax.f32 %v4038_v61, 0.0  ;;  %v8250_v18 = vld [vmem:[%s8552_s19 + $0x5a0] sm:$0xff] }
 0x358   : > { %v4229_v14 = vmax.f32 %v3080_v50, 0.0  ;;  %v4359_v41 = vmax.f32 %v3405_v17, 0.0 }
 0x359   : > { %v6025_v8 = vmul.f32 0.015625, %v5221_v16  ;;  %v5548_v54 = vsel %vm4654_vm3, %v4484_v23, 0.0  ;;  %v5884_v35 = vsel %vm4654_vm3, %v4612_v28, 0.0 }
 0x35a   : > { %v5549_v9 = vadd.f32 %v5548_v54, %v5547_v42  ;;  %v5885_v11 = vadd.f32 %v5884_v35, %v5883_v36  ;;  %v4878_v63 = vsel %vm4654_vm3, %v4229_v14, 0.0  ;;  %v5223_v45 = vsel %vm4654_vm3, %v4359_v41, 0.0 }
 0x35b   : > { %v9989_v1 = vsel %vm6129_vm5, %v6025_v8, %v9854_v46  ;;  %v6232_v30 = vpack.c.bf16 %v6025_v8, %v6025_v8  ;;  %v4879_v4 = vadd.f32 %v4878_v63, %v4877_v15  ;;  %v5224_v3 = vadd.f32 %v5223_v45, %v5222_v32 }
 0x35c   : > { %v3719_v49 = vpop.f32.mrf.mxu2  ;;  %v4039_v19 = vpop.f32.mrf.mxu3 }
 0x35d   : > { %v6390_v7 = vperm.slane %v6232_v30, 0  ;;  %v4880_v55 = vrot.slane %v4879_v4, 4  ;;  %v3720_v29 = vadd.f32 %v9813_v13, %v3719_v49  ;;  %v4040_v42 = vadd.f32 %v9813_v13, %v4039_v19  ;;  %v3082_v36 = vpop.f32.mrf.mxu0  ;;  %v3407_v22 = vpop.f32.mrf.mxu1 }
 0x35e   : > { %v3408_v46 = vadd.f32 %v9813_v13, %v3407_v22  ;;  %v3083_v38 = vadd.f32 %v9813_v13, %v3082_v36 }
 0x35f   : > { %v6406_v48 = vunpack.c.l.b16 %v6390_v7  ;;  %v4881_v52 = vadd.f32 %v4880_v55, %v4879_v4  ;;  %v4485_v15 = vmax.f32 %v3720_v29, 0.0  ;;  %v4613_v60 = vmax.f32 %v4040_v42, 0.0 }
 0x360   : > { %v4360_v61 = vmax.f32 %v3408_v46, 0.0  ;;  %7840 = vmatmul.msk.bf16.gmra.mxu0 %vm2077_vm2, %v8122_v40  ;;  %7905 = vmatmul.msk.bf16.gmra.mxu1 %vm2077_vm2, %v8187_v12  ;;  %v4230_v63 = vmax.f32 %v3083_v38, 0.0 }
 0x361   : > { %v10003_v39 = vsel %vm6129_vm5, %v6406_v48, %v9869_v2  ;;  %v4882_v33 = vrot.slane %v4881_v52, 2  ;;  %v5550_v50 = vsel %vm4654_vm3, %v4485_v15, 0.0  ;;  %v5886_v17 = vsel %vm4654_vm3, %v4613_v60, 0.0  ;;  %7968 = vmatmul.msk.bf16.gmra.mxu2 %vm2077_vm2, %v8250_v18  ;;  %8032 = vmatmul.msk.bf16.gmra.mxu3 %vm2077_vm2, %v8314_v21 }
 0x362   : > { %v5551_v16 = vadd.f32 %v5550_v50, %v5549_v9  ;;  %v5887_v23 = vadd.f32 %v5886_v17, %v5885_v11  ;;  %v5225_v28 = vsel %vm4654_vm3, %v4360_v61, 0.0  ;;  %v4886_v36 = vsel %vm4654_vm3, %v4230_v63, 0.0  ;;  %v8315_v63 = vld [vmem:[%s8552_s19 + $0x7a8] sm:$0xff] }
 0x363   : > { %v4883_v32 = vadd.f32 %v4882_v33, %v4881_v52  ;;  %v5226_v14 = vadd.f32 %v5225_v28, %v5224_v3  ;;  %v8188_v28 = vld [vmem:[%s8552_s19 + $0x3b0] sm:$0xff] }
 0x364   : > { %v5552_v41 = vrot.slane %v5551_v16, 4  ;;  %v5888_v8 = vrot.slane %v5887_v23, 4  ;;  %v3722_v54 = vpop.f32.mrf.mxu2  ;;  %v4042_v2 = vpop.f32.mrf.mxu3 }
 0x365   : > { %v4884_v35 = vrot.slane %v4883_v32, 1  ;;  %v3723_v45 = vadd.f32 %v9813_v13, %v3722_v54  ;;  %v4043_v30 = vadd.f32 %v9813_v13, %v4042_v2  ;;  %v3084_v4 = vpop.f32.mrf.mxu0  ;;  %v3409_v49 = vpop.f32.mrf.mxu1 }
 0x366   : > { %v5553_v19 = vadd.f32 %v5552_v41, %v5551_v16  ;;  %v5889_v40 = vadd.f32 %v5888_v8, %v5887_v23  ;;  %v3085_v9 = vadd.f32 %v9813_v13, %v3084_v4  ;;  %v3410_v11 = vadd.f32 %v9813_v13, %v3409_v49  ;;  %v8123_v23 = vld [vmem:[%s8552_s19 + $0x1a8] sm:$0xff] }
 0x367   : > { %v4885_v12 = vadd.f32 %v4884_v35, %v4883_v32  ;;  %v4486_v22 = vmax.f32 %v3723_v45, 0.0  ;;  %v4614_v18 = vmax.f32 %v4043_v30, 0.0  ;;  %v8251_v35 = vld [vmem:[%s8552_s19 + $0x5a8] sm:$0xff] }
 0x368   : > { %v5554_v3 = vrot.slane %v5553_v19, 2  ;;  %v5890_v7 = vrot.slane %v5889_v40, 2  ;;  %v4231_v55 = vmax.f32 %v3085_v9, 0.0  ;;  %v4361_v29 = vmax.f32 %v3410_v11, 0.0 }
 0x369   : > { %v6009_v42 = vmul.f32 0.015625, %v4885_v12  ;;  %v5558_v41 = vsel %vm4654_vm3, %v4486_v22, 0.0 }
 0x36a   : > { %v5555_v21 = vadd.f32 %v5554_v3, %v5553_v19  ;;  %v5891_v46 = vadd.f32 %v5890_v7, %v5889_v40  ;;  %v4887_v48 = vsel %vm4654_vm3, %v4231_v55, 0.0  ;;  %v5227_v52 = vsel %vm4654_vm3, %v4361_v29, 0.0 }
 0x36b   : > { %v10019_v15 = vsel %vm6129_vm5, %v6009_v42, %v9892_v58  ;;  %v6216_v60 = vpack.c.bf16 %v6009_v42, %v6009_v42  ;;  %v4888_v38 = vadd.f32 %v4887_v48, %v4886_v36  ;;  %v5228_v61 = vadd.f32 %v5227_v52, %v5226_v14 }
 0x36c   : > { %v5556_v33 = vrot.slane %v5555_v21, 1  ;;  %v5892_v50 = vrot.slane %v5891_v46, 1  ;;  %v3724_v17 = vpop.f32.mrf.mxu2  ;;  %v4044_v16 = vpop.f32.mrf.mxu3  ;;  %v5894_v19 = vsel %vm4654_vm3, %v4614_v18, 0.0 }
 0x36d   : > { %v6304_v32 = vperm.slane %v6216_v60, 0  ;;  %v3725_v8 = vadd.f32 %v9813_v13, %v3724_v17  ;;  %v4045_v54 = vadd.f32 %v9813_v13, %v4044_v16  ;;  %v3087_v58 = vpop.f32.mrf.mxu0  ;;  %v3412_v2 = vpop.f32.mrf.mxu1 }
 0x36e   : > { %v5557_v45 = vadd.f32 %v5556_v33, %v5555_v21  ;;  %v5893_v30 = vadd.f32 %v5892_v50, %v5891_v46  ;;  %v3088_v14 = vadd.f32 %v9813_v13, %v3087_v58  ;;  %v3413_v4 = vadd.f32 %v9813_v13, %v3412_v2 }
 0x36f   : > { %v6320_v49 = vunpack.c.l.b16 %v6304_v32  ;;  %v4487_v40 = vmax.f32 %v3725_v8, 0.0  ;;  %v4615_v9 = vmax.f32 %v4045_v54, 0.0 }
 0x370   : > { %v6041_v11 = vmul.f32 0.015625, %v5557_v45  ;;  %v6057_v12 = vmul.f32 0.015625, %v5893_v30  ;;  %v4232_v3 = vmax.f32 %v3088_v14, 0.0  ;;  %v4362_v7 = vmax.f32 %v3413_v4, 0.0  ;;  %7841 = vmatmul.msk.bf16.gmra.mxu0 %vm2077_vm2, %v8123_v23  ;;  %7906 = vmatmul.msk.bf16.gmra.mxu1 %vm2077_vm2, %v8188_v28 }
 0x371   : > { %v10035_v55 = vsel %vm6129_vm5, %v6320_v49, %v9909_v27  ;;  %v5559_v29 = vsel %vm4654_vm3, %v4487_v40, 0.0  ;;  %v5895_v42 = vsel %vm4654_vm3, %v4615_v9, 0.0  ;;  %7969 = vmatmul.msk.bf16.gmra.mxu2 %vm2077_vm2, %v8251_v35  ;;  %8033 = vmatmul.msk.bf16.gmra.mxu3 %vm2077_vm2, %v8315_v63 }
 0x372   : > { %v10043_v36 = vsel %vm6129_vm5, %v6041_v11, %v9917_v20  ;;  %v6248_v22 = vpack.c.bf16 %v6041_v11, %v6041_v11  ;;  %v10047_v18 = vsel %vm6129_vm5, %v6057_v12, %v9920_v34  ;;  %v6264_v21 = vpack.c.bf16 %v6057_v12, %v6057_v12 }
 0x373   : > { %v5560_v27 = vadd.f32 %v5559_v29, %v5558_v41  ;;  %v5896_v46 = vadd.f32 %v5895_v42, %v5894_v19  ;;  %v4889_v48 = vsel %vm4654_vm3, %v4232_v3, 0.0  ;;  %v5229_v52 = vsel %vm4654_vm3, %v4362_v7, 0.0  ;;  %v8189_v3 = vld [vmem:[%s8552_s19 + $0x3b8] sm:$0xff] }
 0x374   : > { %v6476_v60 = vperm.slane %v6248_v22, 0  ;;  %v6562_v33 = vperm.slane %v6264_v21, 0  ;;  %v4890_v50 = vadd.f32 %v4889_v48, %v4888_v38  ;;  %v5230_v17 = vadd.f32 %v5229_v52, %v5228_v61  ;;  %v3727_v16 = vpop.f32.mrf.mxu2  ;;  %v4047_v23 = vpop.f32.mrf.mxu3  ;;  %v8252_v21 = vld [vmem:[%s8552_s19 + $0x5b0] sm:$0xff] }
 0x375   : > { %v3728_v20 = vadd.f32 %v9813_v13, %v3727_v16  ;;  %v4048_v28 = vadd.f32 %v9813_v13, %v4047_v23  ;;  %v3089_v32 = vpop.f32.mrf.mxu0  ;;  %v3414_v34 = vpop.f32.mrf.mxu1  ;;  %v8316_v48 = vld [vmem:[%s8552_s19 + $0x7b0] sm:$0xff] }
 0x376   : > { %v6492_v8 = vunpack.c.l.b16 %v6476_v60  ;;  %v6578_v54 = vunpack.c.l.b16 %v6562_v33  ;;  %v3090_v41 = vadd.f32 %v9813_v13, %v3089_v32  ;;  %v3415_v58 = vadd.f32 %v9813_v13, %v3414_v34 }
 0x377   : > { %v4488_v2 = vmax.f32 %v3728_v20, 0.0  ;;  %v4616_v35 = vmax.f32 %v4048_v28, 0.0 }
 0x378   : > { %v10057_v38 = vsel %vm6129_vm5, %v6492_v8, %v9930_v62  ;;  %v10061_v61 = vsel %vm6129_vm5, %v6578_v54, %v9933_v37  ;;  %v4233_v63 = vmax.f32 %v3090_v41, 0.0  ;;  %v4363_v45 = vmax.f32 %v3415_v58, 0.0  ;;  %v8124_v37 = vld [vmem:[%s8552_s19 + $0x1b0] sm:$0xff] }
 0x379   : > { %v5561_v30 = vsel %vm4654_vm3, %v4488_v2, 0.0  ;;  %v5897_v14 = vsel %vm4654_vm3, %v4616_v35, 0.0 }
 0x37a   : > { %v5562_v4 = vadd.f32 %v5561_v30, %v5560_v27  ;;  %v5898_v49 = vadd.f32 %v5897_v14, %v5896_v46  ;;  %v4891_v19 = vsel %vm4654_vm3, %v4233_v63, 0.0  ;;  %v5231_v40 = vsel %vm4654_vm3, %v4363_v45, 0.0 }
 0x37b   : > { %v4892_v62 = vadd.f32 %v4891_v19, %v4890_v50  ;;  %v5232_v9 = vadd.f32 %v5231_v40, %v5230_v17 }
 0x37c   : > { %v3729_v11 = vpop.f32.mrf.mxu2  ;;  %v4049_v12 = vpop.f32.mrf.mxu3 }
 0x37d   : > { %v3730_v7 = vadd.f32 %v9813_v13, %v3729_v11  ;;  %v4050_v29 = vadd.f32 %v9813_v13, %v4049_v12  ;;  %v3092_v42 = vpop.f32.mrf.mxu0  ;;  %v3417_v22 = vpop.f32.mrf.mxu1 }
 0x37e   : > { %v3093_v27 = vadd.f32 %v9813_v13, %v3092_v42  ;;  %v3418_v46 = vadd.f32 %v9813_v13, %v3417_v22  ;;  %v8125_v42 = vld [vmem:[%s8552_s19 + $0x1b8] sm:$0xff]  ;;  %v8190_v22 = vld [vmem:[%s8552_s19 + $0x3c0] sm:$0xff] }
 0x37f   : > { %v4489_v52 = vmax.f32 %v3730_v7, 0.0  ;;  %v4617_v60 = vmax.f32 %v4050_v29, 0.0 }
 0x380   : > { %v4234_v33 = vmax.f32 %v3093_v27, 0.0  ;;  %v4364_v50 = vmax.f32 %v3418_v46, 0.0  ;;  %7842 = vmatmul.msk.bf16.gmra.mxu0 %vm2077_vm2, %v8124_v37  ;;  %7907 = vmatmul.msk.bf16.gmra.mxu1 %vm2077_vm2, %v8189_v3 }
 0x381   : > { %v5563_v17 = vsel %vm4654_vm3, %v4489_v52, 0.0  ;;  %v5899_v16 = vsel %vm4654_vm3, %v4617_v60, 0.0  ;;  %7970 = vmatmul.msk.bf16.gmra.mxu2 %vm2077_vm2, %v8252_v21  ;;  %8034 = vmatmul.msk.bf16.gmra.mxu3 %vm2077_vm2, %v8316_v48  ;;  %v10096_v48 = vld [vmem:[%s10716_s2] ss:$0 sm:$0xff] }
 0x382   : > { %v5564_v23 = vadd.f32 %v5563_v17, %v5562_v4  ;;  %v5900_v20 = vadd.f32 %v5899_v16, %v5898_v49  ;;  %v4893_v28 = vsel %vm4654_vm3, %v4234_v33, 0.0  ;;  %v5233_v32 = vsel %vm4654_vm3, %v4364_v50, 0.0  ;;  %v8253_v33 = vld [vmem:[%s8552_s19 + $0x5b8] sm:$0xff] }
 0x383   : > { %v4894_v34 = vadd.f32 %v4893_v28, %v4892_v62  ;;  %v5234_v8 = vadd.f32 %v5233_v32, %v5232_v9  ;;  %v8317_v50 = vld [vmem:[%s8552_s19 + $0x7b8] sm:$0xff] }
 0x384   : > { %v3732_v54 = vpop.f32.mrf.mxu2  ;;  %v4052_v41 = vpop.f32.mrf.mxu3 }
 0x385   : > { %v3733_v58 = vadd.f32 %v9813_v13, %v3732_v54  ;;  %v4053_v2 = vadd.f32 %v9813_v13, %v4052_v41  ;;  %v3094_v35 = vpop.f32.mrf.mxu0  ;;  %v3419_v63 = vpop.f32.mrf.mxu1 }
 0x386   : > { %v3095_v45 = vadd.f32 %v9813_v13, %v3094_v35  ;;  %v3420_v30 = vadd.f32 %v9813_v13, %v3419_v63 }
 0x387   : > { %v4490_v14 = vmax.f32 %v3733_v58, 0.0  ;;  %v4618_v4 = vmax.f32 %v4053_v2, 0.0 }
 0x388   : > { %v4235_v49 = vmax.f32 %v3095_v45, 0.0  ;;  %v4365_v19 = vmax.f32 %v3420_v30, 0.0 }
 0x389   : > { %v5565_v40 = vsel %vm4654_vm3, %v4490_v14, 0.0  ;;  %v5901_v62 = vsel %vm4654_vm3, %v4618_v4, 0.0 }
 0x38a   : > { %v5566_v9 = vadd.f32 %v5565_v40, %v5564_v23  ;;  %v5902_v11 = vadd.f32 %v5901_v62, %v5900_v20  ;;  %v4895_v12 = vsel %vm4654_vm3, %v4235_v49, 0.0  ;;  %v5235_v37 = vsel %vm4654_vm3, %v4365_v19, 0.0 }
 0x38b   : > { %v4896_v3 = vadd.f32 %v4895_v12, %v4894_v34  ;;  %v5236_v7 = vadd.f32 %v5235_v37, %v5234_v8 }
 0x38c   : > { %v3734_v13 = vpop.f32.mrf.mxu2  ;;  %v4054_v29 = vpop.f32.mrf.mxu3 }
 0x38d   : > { %v5237_v21 = vrot.slane %v5236_v7, 4  ;;  %v3735_v27 = vadd.f32 %v10096_v48, %v3734_v13  ;;  %v4055_v46 = vadd.f32 %v10096_v48, %v4054_v29  ;;  %v3097_v52 = vpop.f32.mrf.mxu0  ;;  %v3422_v60 = vpop.f32.mrf.mxu1 }
 0x38e   : > { %v3098_v17 = vadd.f32 %v10096_v48, %v3097_v52  ;;  %v3423_v32 = vadd.f32 %v10096_v48, %v3422_v60 }
 0x38f   : > { %v5238_v16 = vadd.f32 %v5237_v21, %v5236_v7  ;;  %v4491_v23 = vmax.f32 %v3735_v27, 0.0  ;;  %v4619_v20 = vmax.f32 %v4055_v46, 0.0 }
 0x390   : > { %v4236_v28 = vmax.f32 %v3098_v17, 0.0  ;;  %7843 = vmatmul.msk.bf16.gmra.mxu0 %vm2077_vm2, %v8125_v42  ;;  %7908 = vmatmul.msk.bf16.gmra.mxu1 %vm2077_vm2, %v8190_v22  ;;  %v4366_v45 = vmax.f32 %v3423_v32, 0.0  ;;  %v8191_v32 = vld [vmem:[%s8552_s19 + $0x3c8] sm:$0xff] }
 0x391   : > { %v5239_v34 = vrot.slane %v5238_v16, 2  ;;  %v5567_v8 = vsel %vm4654_vm3, %v4491_v23, 0.0  ;;  %v5903_v54 = vsel %vm4654_vm3, %v4619_v20, 0.0  ;;  %7971 = vmatmul.msk.bf16.gmra.mxu2 %vm2077_vm2, %v8253_v33  ;;  %8035 = vmatmul.msk.bf16.gmra.mxu3 %vm2077_vm2, %v8317_v50 }
 0x392   : > { %v5568_v41 = vadd.f32 %v5567_v8, %v5566_v9  ;;  %v5904_v58 = vadd.f32 %v5903_v54, %v5902_v11  ;;  %v4897_v2 = vsel %vm4654_vm3, %v4236_v28, 0.0  ;;  %v5243_v13 = vsel %vm4654_vm3, %v4366_v45, 0.0  ;;  %v8126_v28 = vld [vmem:[%s8552_s19 + $0x1c0] sm:$0xff] }
 0x393   : > { %v5240_v35 = vadd.f32 %v5239_v34, %v5238_v16  ;;  %v4898_v63 = vadd.f32 %v4897_v2, %v4896_v3  ;;  %v8318_v45 = vld [vmem:[%s8552_s19 + $0x7c0] sm:$0xff] }
 0x394   : > { %v3737_v30 = vpop.f32.mrf.mxu2  ;;  %v4057_v14 = vpop.f32.mrf.mxu3 }
 0x395   : > { %v5241_v4 = vrot.slane %v5240_v35, 1  ;;  %v3738_v49 = vadd.f32 %v10096_v48, %v3737_v30  ;;  %v4058_v19 = vadd.f32 %v10096_v48, %v4057_v14  ;;  %v3099_v40 = vpop.f32.mrf.mxu0  ;;  %v3424_v62 = vpop.f32.mrf.mxu1 }
 0x396   : > { %v3100_v12 = vadd.f32 %v10096_v48, %v3099_v40  ;;  %v3425_v37 = vadd.f32 %v10096_v48, %v3424_v62 }
 0x397   : > { %v5242_v9 = vadd.f32 %v5241_v4, %v5240_v35  ;;  %v4492_v11 = vmax.f32 %v3738_v49, 0.0  ;;  %v4620_v7 = vmax.f32 %v4058_v19, 0.0  ;;  %v8254_v35 = vld [vmem:[%s8552_s19 + $0x5c0] sm:$0xff] }
 0x398   : > { %v4237_v3 = vmax.f32 %v3100_v12, 0.0  ;;  %v4367_v29 = vmax.f32 %v3425_v37, 0.0 }
 0x399   : > { %v6026_v42 = vmul.f32 0.015625, %v5242_v9  ;;  %v5569_v22 = vsel %vm4654_vm3, %v4492_v11, 0.0  ;;  %v5905_v21 = vsel %vm4654_vm3, %v4620_v7, 0.0 }
 0x39a   : > { %v5570_v27 = vadd.f32 %v5569_v22, %v5568_v41  ;;  %v5906_v46 = vadd.f32 %v5905_v21, %v5904_v58  ;;  %v4899_v52 = vsel %vm4654_vm3, %v4237_v3, 0.0  ;;  %v5244_v60 = vsel %vm4654_vm3, %v4367_v29, 0.0 }
 0x39b   : > { %v10122_v33 = vsel %vm6131_vm6, %v6026_v42, %v9989_v1  ;;  %v6233_v50 = vpack.c.bf16 %v6026_v42, %v6026_v42  ;;  %v4900_v17 = vadd.f32 %v4899_v52, %v4898_v63  ;;  %v5245_v16 = vadd.f32 %v5244_v60, %v5243_v13 }
 0x39c   : > { %v3739_v23 = vpop.f32.mrf.mxu2  ;;  %v4059_v20 = vpop.f32.mrf.mxu3 }
 0x39d   : > { %v6391_v34 = vperm.slane %v6233_v50, 0  ;;  %v4901_v8 = vrot.slane %v4900_v17, 4  ;;  %v3740_v54 = vadd.f32 %v10096_v48, %v3739_v23  ;;  %v4060_v41 = vadd.f32 %v10096_v48, %v4059_v20  ;;  %v3102_v58 = vpop.f32.mrf.mxu0  ;;  %v3427_v2 = vpop.f32.mrf.mxu1 }
 0x39e   : > { %v3428_v1 = vadd.f32 %v10096_v48, %v3427_v2  ;;  %v3103_v49 = vadd.f32 %v10096_v48, %v3102_v58 }
 0x39f   : > { %v6407_v30 = vunpack.c.l.b16 %v6391_v34  ;;  %v4902_v14 = vadd.f32 %v4901_v8, %v4900_v17  ;;  %v4493_v63 = vmax.f32 %v3740_v54, 0.0  ;;  %v4621_v4 = vmax.f32 %v4060_v41, 0.0 }
 0x3a0   : > { %v4368_v19 = vmax.f32 %v3428_v1, 0.0  ;;  %7844 = vmatmul.msk.bf16.gmra.mxu0 %vm2077_vm2, %v8126_v28  ;;  %7909 = vmatmul.msk.bf16.gmra.mxu1 %vm2077_vm2, %v8191_v32  ;;  %v4238_v52 = vmax.f32 %v3103_v49, 0.0 }
 0x3a1   : > { %v10136_v40 = vsel %vm6131_vm6, %v6407_v30, %v10003_v39  ;;  %v4903_v62 = vrot.slane %v4902_v14, 2  ;;  %v5571_v12 = vsel %vm4654_vm3, %v4493_v63, 0.0  ;;  %v5907_v37 = vsel %vm4654_vm3, %v4621_v4, 0.0  ;;  %7972 = vmatmul.msk.bf16.gmra.mxu2 %vm2077_vm2, %v8254_v35  ;;  %8036 = vmatmul.msk.bf16.gmra.mxu3 %vm2077_vm2, %v8318_v45 }
 0x3a2   : > { %v5572_v9 = vadd.f32 %v5571_v12, %v5570_v27  ;;  %v5908_v11 = vadd.f32 %v5907_v37, %v5906_v46  ;;  %v5246_v7 = vsel %vm4654_vm3, %v4368_v19, 0.0  ;;  %v4907_v58 = vsel %vm4654_vm3, %v4238_v52, 0.0  ;;  %v8319_v52 = vld [vmem:[%s8552_s19 + $0x7c8] sm:$0xff] }
 0x3a3   : > { %v4904_v13 = vadd.f32 %v4903_v62, %v4902_v14  ;;  %v5247_v3 = vadd.f32 %v5246_v7, %v5245_v16  ;;  %v8192_v7 = vld [vmem:[%s8552_s19 + $0x3d0] sm:$0xff] }
 0x3a4   : > { %v5573_v29 = vrot.slane %v5572_v9, 4  ;;  %v5909_v42 = vrot.slane %v5908_v11, 4  ;;  %v3742_v22 = vpop.f32.mrf.mxu2  ;;  %v4062_v39 = vpop.f32.mrf.mxu3 }
 0x3a5   : > { %v4905_v21 = vrot.slane %v4904_v13, 1  ;;  %v3743_v60 = vadd.f32 %v10096_v48, %v3742_v22  ;;  %v4063_v50 = vadd.f32 %v10096_v48, %v4062_v39  ;;  %v3104_v17 = vpop.f32.mrf.mxu0  ;;  %v3429_v23 = vpop.f32.mrf.mxu1 }
 0x3a6   : > { %v5574_v20 = vadd.f32 %v5573_v29, %v5572_v9  ;;  %v5910_v28 = vadd.f32 %v5909_v42, %v5908_v11  ;;  %v3105_v27 = vadd.f32 %v10096_v48, %v3104_v17  ;;  %v3430_v46 = vadd.f32 %v10096_v48, %v3429_v23  ;;  %v8127_v11 = vld [vmem:[%s8552_s19 + $0x1c8] sm:$0xff] }
 0x3a7   : > { %v4906_v32 = vadd.f32 %v4905_v21, %v4904_v13  ;;  %v4494_v2 = vmax.f32 %v3743_v60, 0.0  ;;  %v4622_v35 = vmax.f32 %v4063_v50, 0.0  ;;  %v8255_v21 = vld [vmem:[%s8552_s19 + $0x5c8] sm:$0xff] }
 0x3a8   : > { %v5575_v16 = vrot.slane %v5574_v20, 2  ;;  %v5911_v34 = vrot.slane %v5910_v28, 2  ;;  %v4239_v8 = vmax.f32 %v3105_v27, 0.0  ;;  %v4369_v54 = vmax.f32 %v3430_v46, 0.0 }
 0x3a9   : > { %v6010_v41 = vmul.f32 0.015625, %v4906_v32  ;;  %v5579_v29 = vsel %vm4654_vm3, %v4494_v2, 0.0 }
 0x3aa   : > { %v5576_v45 = vadd.f32 %v5575_v16, %v5574_v20  ;;  %v5912_v1 = vadd.f32 %v5911_v34, %v5910_v28  ;;  %v4908_v30 = vsel %vm4654_vm3, %v4239_v8, 0.0  ;;  %v5248_v14 = vsel %vm4654_vm3, %v4369_v54, 0.0 }
 0x3ab   : > { %v10152_v63 = vsel %vm6131_vm6, %v6010_v41, %v10019_v15  ;;  %v6217_v4 = vpack.c.bf16 %v6010_v41, %v6010_v41  ;;  %v4909_v49 = vadd.f32 %v4908_v30, %v4907_v58  ;;  %v5249_v19 = vadd.f32 %v5248_v14, %v5247_v3 }
 0x3ac   : > { %v5577_v62 = vrot.slane %v5576_v45, 1  ;;  %v5913_v12 = vrot.slane %v5912_v1, 1  ;;  %v3744_v37 = vpop.f32.mrf.mxu2  ;;  %v4064_v9 = vpop.f32.mrf.mxu3  ;;  %v5915_v20 = vsel %vm4654_vm3, %v4622_v35, 0.0 }
 0x3ad   : > { %v6305_v13 = vperm.slane %v6217_v4, 0  ;;  %v3745_v42 = vadd.f32 %v10096_v48, %v3744_v37  ;;  %v4065_v22 = vadd.f32 %v10096_v48, %v4064_v9  ;;  %v3107_v15 = vpop.f32.mrf.mxu0  ;;  %v3432_v39 = vpop.f32.mrf.mxu1 }
 0x3ae   : > { %v5578_v60 = vadd.f32 %v5577_v62, %v5576_v45  ;;  %v5914_v50 = vadd.f32 %v5913_v12, %v5912_v1  ;;  %v3108_v3 = vadd.f32 %v10096_v48, %v3107_v15  ;;  %v3433_v17 = vadd.f32 %v10096_v48, %v3432_v39 }
 0x3af   : > { %v6321_v23 = vunpack.c.l.b16 %v6305_v13  ;;  %v4495_v28 = vmax.f32 %v3745_v42, 0.0  ;;  %v4623_v27 = vmax.f32 %v4065_v22, 0.0 }
 0x3b0   : > { %v6042_v46 = vmul.f32 0.015625, %v5578_v60  ;;  %v6058_v32 = vmul.f32 0.015625, %v5914_v50  ;;  %v4240_v16 = vmax.f32 %v3108_v3, 0.0  ;;  %v4370_v34 = vmax.f32 %v3433_v17, 0.0  ;;  %7845 = vmatmul.msk.bf16.gmra.mxu0 %vm2077_vm2, %v8127_v11  ;;  %7910 = vmatmul.msk.bf16.gmra.mxu1 %vm2077_vm2, %v8192_v7 }
 0x3b1   : > { %v10168_v8 = vsel %vm6131_vm6, %v6321_v23, %v10035_v55  ;;  %v5580_v54 = vsel %vm4654_vm3, %v4495_v28, 0.0  ;;  %v5916_v41 = vsel %vm4654_vm3, %v4623_v27, 0.0  ;;  %7973 = vmatmul.msk.bf16.gmra.mxu2 %vm2077_vm2, %v8255_v21  ;;  %8037 = vmatmul.msk.bf16.gmra.mxu3 %vm2077_vm2, %v8319_v52 }
 0x3b2   : > { %v10176_v58 = vsel %vm6131_vm6, %v6042_v46, %v10043_v36  ;;  %v6249_v2 = vpack.c.bf16 %v6042_v46, %v6042_v46  ;;  %v10180_v35 = vsel %vm6131_vm6, %v6058_v32, %v10047_v18  ;;  %v6265_v45 = vpack.c.bf16 %v6058_v32, %v6058_v32 }
 0x3b3   : > { %v5581_v55 = vadd.f32 %v5580_v54, %v5579_v29  ;;  %v5917_v1 = vadd.f32 %v5916_v41, %v5915_v20  ;;  %v4910_v30 = vsel %vm4654_vm3, %v4240_v16, 0.0  ;;  %v5250_v14 = vsel %vm4654_vm3, %v4370_v34, 0.0  ;;  %v8193_v16 = vld [vmem:[%s8552_s19 + $0x3d8] sm:$0xff] }
 0x3b4   : > { %v6477_v4 = vperm.slane %v6249_v2, 0  ;;  %v6563_v62 = vperm.slane %v6265_v45, 0  ;;  %v4911_v12 = vadd.f32 %v4910_v30, %v4909_v49  ;;  %v5251_v37 = vadd.f32 %v5250_v14, %v5249_v19  ;;  %v3747_v9 = vpop.f32.mrf.mxu2  ;;  %v4067_v11 = vpop.f32.mrf.mxu3  ;;  %v8256_v45 = vld [vmem:[%s8552_s19 + $0x5d0] sm:$0xff] }
 0x3b5   : > { %v3748_v36 = vadd.f32 %v10096_v48, %v3747_v9  ;;  %v4068_v7 = vadd.f32 %v10096_v48, %v4067_v11  ;;  %v3109_v13 = vpop.f32.mrf.mxu0  ;;  %v3434_v18 = vpop.f32.mrf.mxu1  ;;  %v8320_v30 = vld [vmem:[%s8552_s19 + $0x7d0] sm:$0xff] }
 0x3b6   : > { %v6493_v42 = vunpack.c.l.b16 %v6477_v4  ;;  %v6579_v22 = vunpack.c.l.b16 %v6563_v62  ;;  %v3110_v29 = vadd.f32 %v10096_v48, %v3109_v13  ;;  %v3435_v15 = vadd.f32 %v10096_v48, %v3434_v18 }
 0x3b7   : > { %v4496_v39 = vmax.f32 %v3748_v36, 0.0  ;;  %v4624_v21 = vmax.f32 %v4068_v7, 0.0 }
 0x3b8   : > { %v10190_v49 = vsel %vm6131_vm6, %v6493_v42, %v10057_v38  ;;  %v10194_v19 = vsel %vm6131_vm6, %v6579_v22, %v10061_v61  ;;  %v4241_v52 = vmax.f32 %v3110_v29, 0.0  ;;  %v4371_v60 = vmax.f32 %v3435_v15, 0.0  ;;  %v8128_v61 = vld [vmem:[%s8552_s19 + $0x1d0] sm:$0xff] }
 0x3b9   : > { %v5582_v50 = vsel %vm4654_vm3, %v4496_v39, 0.0  ;;  %v5918_v3 = vsel %vm4654_vm3, %v4624_v21, 0.0 }
 0x3ba   : > { %v5583_v17 = vadd.f32 %v5582_v50, %v5581_v55  ;;  %v5919_v23 = vadd.f32 %v5918_v3, %v5917_v1  ;;  %v4912_v20 = vsel %vm4654_vm3, %v4241_v52, 0.0  ;;  %v5252_v28 = vsel %vm4654_vm3, %v4371_v60, 0.0 }
 0x3bb   : > { %v4913_v38 = vadd.f32 %v4912_v20, %v4911_v12  ;;  %v5253_v27 = vadd.f32 %v5252_v28, %v5251_v37 }
 0x3bc   : > { %v3749_v46 = vpop.f32.mrf.mxu2  ;;  %v4069_v32 = vpop.f32.mrf.mxu3 }
 0x3bd   : > { %v3750_v34 = vadd.f32 %v10096_v48, %v3749_v46  ;;  %v4070_v54 = vadd.f32 %v10096_v48, %v4069_v32  ;;  %v3112_v41 = vpop.f32.mrf.mxu0  ;;  %v3437_v2 = vpop.f32.mrf.mxu1 }
 0x3be   : > { %v3113_v55 = vadd.f32 %v10096_v48, %v3112_v41  ;;  %v3438_v1 = vadd.f32 %v10096_v48, %v3437_v2  ;;  %v8129_v2 = vld [vmem:[%s8552_s19 + $0x1d8] sm:$0xff] }
 0x3bf   : > { %v4497_v14 = vmax.f32 %v3750_v34, 0.0  ;;  %v4625_v4 = vmax.f32 %v4070_v54, 0.0 }
 0x3c0   : > { %v4242_v62 = vmax.f32 %v3113_v55, 0.0  ;;  %v4372_v12 = vmax.f32 %v3438_v1, 0.0  ;;  %7846 = vmatmul.msk.bf16.gmra.mxu0 %vm2077_vm2, %v8128_v61  ;;  %7911 = vmatmul.msk.bf16.gmra.mxu1 %vm2077_vm2, %v8193_v16 }
 0x3c1   : > { %v5584_v37 = vsel %vm4654_vm3, %v4497_v14, 0.0  ;;  %v5920_v9 = vsel %vm4654_vm3, %v4625_v4, 0.0  ;;  %7974 = vmatmul.msk.bf16.gmra.mxu2 %vm2077_vm2, %v8256_v45  ;;  %8038 = vmatmul.msk.bf16.gmra.mxu3 %vm2077_vm2, %v8320_v30  ;;  %v8194_v45 = vld [vmem:[%s8552_s19 + $0x3e0] sm:$0xff] }
 0x3c2   : > { %v5585_v11 = vadd.f32 %v5584_v37, %v5583_v17  ;;  %v5921_v36 = vadd.f32 %v5920_v9, %v5919_v23  ;;  %v4914_v7 = vsel %vm4654_vm3, %v4242_v62, 0.0  ;;  %v5254_v13 = vsel %vm4654_vm3, %v4372_v12, 0.0  ;;  %v8257_v62 = vld [vmem:[%s8552_s19 + $0x5d8] sm:$0xff] }
 0x3c3   : > { %v4915_v18 = vadd.f32 %v4914_v7, %v4913_v38  ;;  %v5255_v42 = vadd.f32 %v5254_v13, %v5253_v27  ;;  %v8321_v12 = vld [vmem:[%s8552_s19 + $0x7d8] sm:$0xff] }
 0x3c4   : > { %v3752_v22 = vpop.f32.mrf.mxu2  ;;  %v4072_v29 = vpop.f32.mrf.mxu3 }
 0x3c5   : > { %v3753_v15 = vadd.f32 %v10096_v48, %v3752_v22  ;;  %v4073_v39 = vadd.f32 %v10096_v48, %v4072_v29  ;;  %v3114_v21 = vpop.f32.mrf.mxu0  ;;  %v3439_v52 = vpop.f32.mrf.mxu1 }
 0x3c6   : > { %v3115_v60 = vadd.f32 %v10096_v48, %v3114_v21  ;;  %v3440_v50 = vadd.f32 %v10096_v48, %v3439_v52 }
 0x3c7   : > { %v4498_v3 = vmax.f32 %v3753_v15, 0.0  ;;  %v4626_v17 = vmax.f32 %v4073_v39, 0.0 }
 0x3c8   : > { %v4243_v23 = vmax.f32 %v3115_v60, 0.0  ;;  %v4373_v20 = vmax.f32 %v3440_v50, 0.0 }
 0x3c9   : > { %v5586_v28 = vsel %vm4654_vm3, %v4498_v3, 0.0  ;;  %v5922_v38 = vsel %vm4654_vm3, %v4626_v17, 0.0 }
 0x3ca   : > { %v5587_v27 = vadd.f32 %v5586_v28, %v5585_v11  ;;  %v5923_v46 = vadd.f32 %v5922_v38, %v5921_v36  ;;  %v4916_v32 = vsel %vm4654_vm3, %v4243_v23, 0.0  ;;  %v5256_v61 = vsel %vm4654_vm3, %v4373_v20, 0.0 }
 0x3cb   : > { %v4917_v16 = vadd.f32 %v4916_v32, %v4915_v18  ;;  %v5257_v34 = vadd.f32 %v5256_v61, %v5255_v42 }
 0x3cc   : > { %v3754_v54 = vpop.f32.mrf.mxu2  ;;  %v4074_v41 = vpop.f32.mrf.mxu3 }
 0x3cd   : > { %v5258_v30 = vrot.slane %v5257_v34, 4  ;;  %v3755_v55 = vadd.f32 %v10096_v48, %v3754_v54  ;;  %v4075_v1 = vadd.f32 %v10096_v48, %v4074_v41  ;;  %v3117_v14 = vpop.f32.mrf.mxu0  ;;  %v3442_v4 = vpop.f32.mrf.mxu1 }
 0x3ce   : > { %v3118_v37 = vadd.f32 %v10096_v48, %v3117_v14  ;;  %v3443_v39 = vadd.f32 %v10096_v48, %v3442_v4 }
 0x3cf   : > { %v5259_v9 = vadd.f32 %v5258_v30, %v5257_v34  ;;  %v4499_v11 = vmax.f32 %v3755_v55, 0.0  ;;  %v4627_v36 = vmax.f32 %v4075_v1, 0.0 }
 0x3d0   : > { %v4244_v7 = vmax.f32 %v3118_v37, 0.0  ;;  %7847 = vmatmul.msk.bf16.gmra.mxu0 %vm2077_vm2, %v8129_v2  ;;  %7912 = vmatmul.msk.bf16.gmra.mxu1 %vm2077_vm2, %v8194_v45  ;;  %v4374_v38 = vmax.f32 %v3443_v39, 0.0  ;;  %v8258_v39 = vld [vmem:[%s8552_s19 + $0x5e0] sm:$0xff] }
 0x3d1   : > { %v5260_v13 = vrot.slane %v5259_v9, 2  ;;  %v5588_v18 = vsel %vm4654_vm3, %v4499_v11, 0.0  ;;  %v5924_v42 = vsel %vm4654_vm3, %v4627_v36, 0.0  ;;  %7975 = vmatmul.msk.bf16.gmra.mxu2 %vm2077_vm2, %v8257_v62  ;;  %8039 = vmatmul.msk.bf16.gmra.mxu3 %vm2077_vm2, %v8321_v12  ;;  %v8130_v36 = vld [vmem:[%s8552_s19 + $0x1e0] sm:$0xff] }
 0x3d2   : > { %v5589_v22 = vadd.f32 %v5588_v18, %v5587_v27  ;;  %v5925_v29 = vadd.f32 %v5924_v42, %v5923_v46  ;;  %v4918_v15 = vsel %vm4654_vm3, %v4244_v7, 0.0  ;;  %v5264_v30 = vsel %vm4654_vm3, %v4374_v38, 0.0  ;;  %v8195_v7 = vld [vmem:[%s8552_s19 + $0x3e8] sm:$0xff] }
 0x3d3   : > { %v5261_v21 = vadd.f32 %v5260_v13, %v5259_v9  ;;  %v4919_v52 = vadd.f32 %v4918_v15, %v4917_v16 }
 0x3d4   : > { %v3757_v60 = vpop.f32.mrf.mxu2  ;;  %v4077_v50 = vpop.f32.mrf.mxu3 }
 0x3d5   : > { %v5262_v3 = vrot.slane %v5261_v21, 1  ;;  %v3758_v17 = vadd.f32 %v10096_v48, %v3757_v60  ;;  %v4078_v23 = vadd.f32 %v10096_v48, %v4077_v50  ;;  %v3119_v20 = vpop.f32.mrf.mxu0  ;;  %v3444_v28 = vpop.f32.mrf.mxu1 }
 0x3d6   : > { %v3120_v32 = vadd.f32 %v10096_v48, %v3119_v20  ;;  %v3445_v27 = vadd.f32 %v10096_v48, %v3444_v28 }
 0x3d7   : > { %v5263_v46 = vadd.f32 %v5262_v3, %v5261_v21  ;;  %v4500_v61 = vmax.f32 %v3758_v17, 0.0  ;;  %v4628_v34 = vmax.f32 %v4078_v23, 0.0  ;;  %v8322_v21 = vld [vmem:[%s8552_s19 + $0x7e0] sm:$0xff] }
 0x3d8   : > { %v4245_v54 = vmax.f32 %v3120_v32, 0.0  ;;  %v4375_v16 = vmax.f32 %v3445_v27, 0.0 }
 0x3d9   : > { %v6027_v41 = vmul.f32 0.015625, %v5263_v46  ;;  %v5590_v2 = vsel %vm4654_vm3, %v4500_v61, 0.0  ;;  %v5926_v45 = vsel %vm4654_vm3, %v4628_v34, 0.0 }
 0x3da   : > { %v5591_v55 = vadd.f32 %v5590_v2, %v5589_v22  ;;  %v5927_v1 = vadd.f32 %v5926_v45, %v5925_v29  ;;  %v4920_v14 = vsel %vm4654_vm3, %v4245_v54, 0.0  ;;  %v5265_v37 = vsel %vm4654_vm3, %v4375_v16, 0.0 }
 0x3db   : > { %v10249_v4 = vsel %vm6133_vm7, %v6027_v41, %v10122_v33  ;;  %v6234_v62 = vpack.c.bf16 %v6027_v41, %v6027_v41  ;;  %v4921_v12 = vadd.f32 %v4920_v14, %v4919_v52  ;;  %v5266_v33 = vadd.f32 %v5265_v37, %v5264_v30 }
 0x3dc   : > { %v3759_v9 = vpop.f32.mrf.mxu2  ;;  %v4079_v11 = vpop.f32.mrf.mxu3 }
 0x3dd   : > { %v6392_v13 = vperm.slane %v6234_v62, 0  ;;  %v4922_v18 = vrot.slane %v4921_v12, 4  ;;  %v3760_v42 = vadd.f32 %v10096_v48, %v3759_v9  ;;  %v4080_v22 = vadd.f32 %v10096_v48, %v4079_v11  ;;  %v3122_v29 = vpop.f32.mrf.mxu0  ;;  %v3447_v15 = vpop.f32.mrf.mxu1 }
 0x3de   : > { %v3448_v60 = vadd.f32 %v10096_v48, %v3447_v15  ;;  %v3123_v23 = vadd.f32 %v10096_v48, %v3122_v29 }
 0x3df   : > { %v6408_v52 = vunpack.c.l.b16 %v6392_v13  ;;  %v4923_v50 = vadd.f32 %v4922_v18, %v4921_v12  ;;  %v4501_v3 = vmax.f32 %v3760_v42, 0.0  ;;  %v4629_v17 = vmax.f32 %v4080_v22, 0.0 }
 0x3e0   : > { %v4376_v20 = vmax.f32 %v3448_v60, 0.0  ;;  %7848 = vmatmul.msk.bf16.gmra.mxu0 %vm2077_vm2, %v8130_v36  ;;  %7913 = vmatmul.msk.bf16.gmra.mxu1 %vm2077_vm2, %v8195_v7  ;;  %v4246_v14 = vmax.f32 %v3123_v23, 0.0 }
 0x3e1   : > { %v10264_v28 = vsel %vm6133_vm7, %v6408_v52, %v10136_v40  ;;  %v4924_v38 = vrot.slane %v4923_v50, 2  ;;  %v5592_v32 = vsel %vm4654_vm3, %v4501_v3, 0.0  ;;  %v5928_v27 = vsel %vm4654_vm3, %v4629_v17, 0.0  ;;  %7976 = vmatmul.msk.bf16.gmra.mxu2 %vm2077_vm2, %v8258_v39  ;;  %8040 = vmatmul.msk.bf16.gmra.mxu3 %vm2077_vm2, %v8322_v21 }
 0x3e2   : > { %v5593_v46 = vadd.f32 %v5592_v32, %v5591_v55  ;;  %v5929_v61 = vadd.f32 %v5928_v27, %v5927_v1  ;;  %v5267_v34 = vsel %vm4654_vm3, %v4376_v20, 0.0 }
 0x3e3   : > { %v4925_v54 = vadd.f32 %v4924_v38, %v4923_v50  ;;  %v5268_v16 = vadd.f32 %v5267_v34, %v5266_v33  ;;  %v4928_v33 = vsel %vm4654_vm3, %v4246_v14, 0.0 }
 0x3e4   : > { %v5594_v41 = vrot.slane %v5593_v46, 4  ;;  %v5930_v2 = vrot.slane %v5929_v61, 4  ;;  %v3762_v45 = vpop.f32.mrf.mxu2  ;;  %v4082_v40 = vpop.f32.mrf.mxu3 }
 0x3e5   : > { %v4926_v30 = vrot.slane %v4925_v54, 1  ;;  %v3763_v62 = vadd.f32 %v10096_v48, %v3762_v45  ;;  %v3124_v12 = vpop.f32.mrf.mxu0  ;;  %v3449_v37 = vpop.f32.mrf.mxu1  ;;  %v4083_v7 = vadd.f32 %v10096_v48, %v4082_v40  ;;  %v8259_v40 = vld [vmem:[%s8552_s19 + $0x5e8] sm:$0xff] }
 0x3e6   : > { %v5595_v9 = vadd.f32 %v5594_v41, %v5593_v46  ;;  %v5931_v11 = vadd.f32 %v5930_v2, %v5929_v61  ;;  %v3125_v36 = vadd.f32 %v10096_v48, %v3124_v12  ;;  %v3450_v55 = vadd.f32 %v10096_v48, %v3449_v37  ;;  %v8131_v46 = vld [vmem:[%s8552_s19 + $0x1e8] sm:$0xff]  ;;  %v8196_v61 = vld [vmem:[%s8552_s19 + $0x3f0] sm:$0xff] }
 0x3e7   : > { %v4927_v1 = vadd.f32 %v4926_v30, %v4925_v54  ;;  %v4502_v15 = vmax.f32 %v3763_v62, 0.0  ;;  %v4630_v20 = vmax.f32 %v4083_v7, 0.0  ;;  %v8323_v30 = vld [vmem:[%s8552_s19 + $0x7e8] sm:$0xff] }
 0x3e8   : > { %v5596_v13 = vrot.slane %v5595_v9, 2  ;;  %v5932_v18 = vrot.slane %v5931_v11, 2  ;;  %v4247_v42 = vmax.f32 %v3125_v36, 0.0  ;;  %v4377_v22 = vmax.f32 %v3450_v55, 0.0 }
 0x3e9   : > { %v6011_v29 = vmul.f32 0.015625, %v4927_v1  ;;  %v5600_v54 = vsel %vm4654_vm3, %v4502_v15, 0.0 }
 0x3ea   : > { %v5597_v39 = vadd.f32 %v5596_v13, %v5595_v9  ;;  %v5933_v21 = vadd.f32 %v5932_v18, %v5931_v11  ;;  %v4929_v60 = vsel %vm4654_vm3, %v4247_v42, 0.0  ;;  %v5269_v38 = vsel %vm4654_vm3, %v4377_v22, 0.0 }
 0x3eb   : > { %v10279_v52 = vsel %vm6133_vm7, %v6011_v29, %v10152_v63  ;;  %v6218_v50 = vpack.c.bf16 %v6011_v29, %v6011_v29  ;;  %v4930_v3 = vadd.f32 %v4929_v60, %v4928_v33  ;;  %v5270_v11 = vadd.f32 %v5269_v38, %v5268_v16 }
 0x3ec   : > { %v5598_v17 = vrot.slane %v5597_v39, 1  ;;  %v5934_v23 = vrot.slane %v5933_v21, 1  ;;  %v3764_v32 = vpop.f32.mrf.mxu2  ;;  %v4084_v27 = vpop.f32.mrf.mxu3  ;;  %v5936_v22 = vsel %vm4654_vm3, %v4630_v20, 0.0 }
 0x3ed   : > { %v6306_v34 = vperm.slane %v6218_v50, 0  ;;  %v3765_v41 = vadd.f32 %v10096_v48, %v3764_v32  ;;  %v4085_v63 = vadd.f32 %v10096_v48, %v4084_v27  ;;  %v3127_v2 = vpop.f32.mrf.mxu0  ;;  %v3452_v45 = vpop.f32.mrf.mxu1 }
 0x3ee   : > { %v5599_v14 = vadd.f32 %v5598_v17, %v5597_v39  ;;  %v5935_v62 = vadd.f32 %v5934_v23, %v5933_v21  ;;  %v3128_v12 = vadd.f32 %v10096_v48, %v3127_v2  ;;  %v3453_v37 = vadd.f32 %v10096_v48, %v3452_v45 }
 0x3ef   : > { %v6322_v9 = vunpack.c.l.b16 %v6306_v34  ;;  %v4503_v36 = vmax.f32 %v3765_v41, 0.0  ;;  %v4631_v55 = vmax.f32 %v4085_v63, 0.0 }
 0x3f0   : > { %v6043_v1 = vmul.f32 0.015625, %v5599_v14  ;;  %v6059_v7 = vmul.f32 0.015625, %v5935_v62  ;;  %v4248_v13 = vmax.f32 %v3128_v12, 0.0  ;;  %v4378_v18 = vmax.f32 %v3453_v37, 0.0  ;;  %7849 = vmatmul.msk.bf16.gmra.mxu0 %vm2077_vm2, %v8131_v46  ;;  %7914 = vmatmul.msk.bf16.gmra.mxu1 %vm2077_vm2, %v8196_v61 }
 0x3f1   : > { %v10295_v42 = vsel %vm6133_vm7, %v6322_v9, %v10168_v8  ;;  %v5601_v29 = vsel %vm4654_vm3, %v4503_v36, 0.0  ;;  %v5937_v16 = vsel %vm4654_vm3, %v4631_v55, 0.0  ;;  %7977 = vmatmul.msk.bf16.gmra.mxu2 %vm2077_vm2, %v8259_v40  ;;  %8041 = vmatmul.msk.bf16.gmra.mxu3 %vm2077_vm2, %v8323_v30 }
 0x3f2   : > { %v10304_v15 = vsel %vm6133_vm7, %v6043_v1, %v10176_v58  ;;  %v6250_v39 = vpack.c.bf16 %v6043_v1, %v6043_v1  ;;  %v10308_v21 = vsel %vm6133_vm7, %v6059_v7, %v10180_v35  ;;  %v6266_v8 = vpack.c.bf16 %v6059_v7, %v6059_v7 }
 0x3f3   : > { %v4931_v33 = vsel %vm4654_vm3, %v4248_v13, 0.0  ;;  %v5271_v60 = vsel %vm4654_vm3, %v4378_v18, 0.0  ;;  %v5602_v27 = vadd.f32 %v5601_v29, %v5600_v54  ;;  %v5938_v46 = vadd.f32 %v5937_v16, %v5936_v22  ;;  %v8197_v18 = vld [vmem:[%s8552_s19 + $0x3f8] sm:$0xff] }
 0x3f4   : > { %v6478_v50 = vperm.slane %v6250_v39, 0  ;;  %v6564_v17 = vperm.slane %v6266_v8, 0  ;;  %v4932_v23 = vadd.f32 %v4931_v33, %v4930_v3  ;;  %v5272_v20 = vadd.f32 %v5271_v60, %v5270_v11  ;;  %v3767_v38 = vpop.f32.mrf.mxu2  ;;  %v4087_v32 = vpop.f32.mrf.mxu3  ;;  %v8260_v8 = vld [vmem:[%s8552_s19 + $0x5f0] sm:$0xff] }
 0x3f5   : > { %v3768_v58 = vadd.f32 %v10096_v48, %v3767_v38  ;;  %v4088_v61 = vadd.f32 %v10096_v48, %v4087_v32  ;;  %v3129_v34 = vpop.f32.mrf.mxu0  ;;  %v3454_v35 = vpop.f32.mrf.mxu1  ;;  %v8324_v33 = vld [vmem:[%s8552_s19 + $0x7f0] sm:$0xff] }
 0x3f6   : > { %v6494_v41 = vunpack.c.l.b16 %v6478_v50  ;;  %v6580_v63 = vunpack.c.l.b16 %v6564_v17  ;;  %v3130_v2 = vadd.f32 %v10096_v48, %v3129_v34  ;;  %v3455_v45 = vadd.f32 %v10096_v48, %v3454_v35 }
 0x3f7   : > { %v4504_v40 = vmax.f32 %v3768_v58, 0.0  ;;  %v4632_v3 = vmax.f32 %v4088_v61, 0.0 }
 0x3f8   : > { %v10318_v54 = vsel %vm6133_vm7, %v6494_v41, %v10190_v49  ;;  %v10322_v30 = vsel %vm6133_vm7, %v6580_v63, %v10194_v19  ;;  %v4249_v14 = vmax.f32 %v3130_v2, 0.0  ;;  %v4379_v62 = vmax.f32 %v3455_v45, 0.0  ;;  %v8132_v19 = vld [vmem:[%s8552_s19 + $0x1f0] sm:$0xff] }
 0x3f9   : > { %v5603_v12 = vsel %vm4654_vm3, %v4504_v40, 0.0  ;;  %v5939_v37 = vsel %vm4654_vm3, %v4632_v3, 0.0 }
 0x3fa   : > { %v5604_v9 = vadd.f32 %v5603_v12, %v5602_v27  ;;  %v5940_v11 = vadd.f32 %v5939_v37, %v5938_v46  ;;  %v4933_v36 = vsel %vm4654_vm3, %v4249_v14, 0.0  ;;  %v5273_v55 = vsel %vm4654_vm3, %v4379_v62, 0.0 }
 0x3fb   : > { %v4934_v49 = vadd.f32 %v4933_v36, %v4932_v23  ;;  %v5274_v1 = vadd.f32 %v5273_v55, %v5272_v20 }
 0x3fc   : > { %v3769_v7 = vpop.f32.mrf.mxu2  ;;  %v4089_v13 = vpop.f32.mrf.mxu3 }
 0x3fd   : > { %v3770_v22 = vadd.f32 %v10096_v48, %v3769_v7  ;;  %v4090_v29 = vadd.f32 %v10096_v48, %v4089_v13  ;;  %v3132_v16 = vpop.f32.mrf.mxu0  ;;  %v3457_v39 = vpop.f32.mrf.mxu1 }
 0x3fe   : > { %v3133_v60 = vadd.f32 %v10096_v48, %v3132_v16  ;;  %v3458_v50 = vadd.f32 %v10096_v48, %v3457_v39  ;;  %v8133_v39 = vld [vmem:[%s8552_s19 + $0x1f8] sm:$0xff] }
 0x3ff   : > { %v4505_v17 = vmax.f32 %v3770_v22, 0.0  ;;  %v4633_v38 = vmax.f32 %v4090_v29, 0.0 }
 0x400   : > { %v4250_v23 = vmax.f32 %v3133_v60, 0.0  ;;  %v4380_v20 = vmax.f32 %v3458_v50, 0.0  ;;  %7850 = vmatmul.msk.bf16.gmra.mxu0 %vm2077_vm2, %v8132_v19  ;;  %7915 = vmatmul.msk.bf16.gmra.mxu1 %vm2077_vm2, %v8197_v18 }
 0x401   : > { %v5605_v32 = vsel %vm4654_vm3, %v4505_v17, 0.0  ;;  %v5941_v27 = vsel %vm4654_vm3, %v4633_v38, 0.0  ;;  %7978 = vmatmul.msk.bf16.gmra.mxu2 %vm2077_vm2, %v8260_v8  ;;  %8042 = vmatmul.msk.bf16.gmra.mxu3 %vm2077_vm2, %v8324_v33  ;;  %v8261_v38 = vld [vmem:[%s8552_s19 + $0x5f8] sm:$0xff] }
 0x402   : > { %v5606_v46 = vadd.f32 %v5605_v32, %v5604_v9  ;;  %v5942_v58 = vadd.f32 %v5941_v27, %v5940_v11  ;;  %v4935_v61 = vsel %vm4654_vm3, %v4250_v23, 0.0  ;;  %v5275_v34 = vsel %vm4654_vm3, %v4380_v20, 0.0  ;;  %v8325_v23 = vld [vmem:[%s8552_s19 + $0x7f8] sm:$0xff] }
 0x403   : > { %v4936_v35 = vadd.f32 %v4935_v61, %v4934_v49  ;;  %v5276_v41 = vadd.f32 %v5275_v34, %v5274_v1 }
 0x404   : > { %v3772_v63 = vpop.f32.mrf.mxu2  ;;  %v4092_v2 = vpop.f32.mrf.mxu3 }
 0x405   : > { %v3773_v45 = vadd.f32 %v10096_v48, %v3772_v63  ;;  %v4093_v40 = vadd.f32 %v10096_v48, %v4092_v2  ;;  %v3134_v3 = vpop.f32.mrf.mxu0  ;;  %v3459_v14 = vpop.f32.mrf.mxu1 }
 0x406   : > { %v3135_v62 = vadd.f32 %v10096_v48, %v3134_v3  ;;  %v3460_v12 = vadd.f32 %v10096_v48, %v3459_v14 }
 0x407   : > { %v4506_v37 = vmax.f32 %v3773_v45, 0.0  ;;  %v4634_v9 = vmax.f32 %v4093_v40, 0.0 }
 0x408   : > { %v4251_v11 = vmax.f32 %v3135_v62, 0.0  ;;  %v4381_v36 = vmax.f32 %v3460_v12, 0.0 }
 0x409   : > { %v5607_v55 = vsel %vm4654_vm3, %v4506_v37, 0.0  ;;  %v5943_v49 = vsel %vm4654_vm3, %v4634_v9, 0.0 }
 0x40a   : > { %v5608_v1 = vadd.f32 %v5607_v55, %v5606_v46  ;;  %v5944_v7 = vadd.f32 %v5943_v49, %v5942_v58  ;;  %v4937_v13 = vsel %vm4654_vm3, %v4251_v11, 0.0  ;;  %v5277_v19 = vsel %vm4654_vm3, %v4381_v36, 0.0 }
 0x40b   : > { %v4938_v18 = vadd.f32 %v4937_v13, %v4936_v35  ;;  %v5278_v22 = vadd.f32 %v5277_v19, %v5276_v41 }
 0x40c   : > { %v3774_v29 = vpop.f32.mrf.mxu2  ;;  %v4094_v16 = vpop.f32.mrf.mxu3 }
 0x40d   : > { %v5279_v8 = vrot.slane %v5278_v22, 4  ;;  %v3775_v33 = vadd.f32 %v10096_v48, %v3774_v29  ;;  %v4095_v60 = vadd.f32 %v10096_v48, %v4094_v16  ;;  %v3137_v50 = vpop.f32.mrf.mxu0  ;;  %v3462_v17 = vpop.f32.mrf.mxu1 }
 0x40e   : > { %v3138_v20 = vadd.f32 %v10096_v48, %v3137_v50  ;;  %v3463_v61 = vadd.f32 %v10096_v48, %v3462_v17 }
 0x40f   : > { %v5280_v32 = vadd.f32 %v5279_v8, %v5278_v22  ;;  %v4507_v27 = vmax.f32 %v3775_v33, 0.0  ;;  %v4635_v46 = vmax.f32 %v4095_v60, 0.0 }
 0x410   : > { %v4252_v58 = vmax.f32 %v3138_v20, 0.0  ;;  %7851 = vmatmul.msk.bf16.gmra.mxu0 %vm2077_vm2, %v8133_v39  ;;  %v4382_v14 = vmax.f32 %v3463_v61, 0.0 }
 0x411   : > { %v5281_v34 = vrot.slane %v5280_v32, 2  ;;  %v5609_v35 = vsel %vm4654_vm3, %v4507_v27, 0.0  ;;  %v5945_v41 = vsel %vm4654_vm3, %v4635_v46, 0.0  ;;  %7979 = vmatmul.msk.bf16.gmra.mxu2 %vm2077_vm2, %v8261_v38  ;;  %8043 = vmatmul.msk.bf16.gmra.mxu3 %vm2077_vm2, %v8325_v23  ;;  %v8134_v46 = vld [vmem:[%s8552_s19 + $0x200] sm:$0xff] }
 0x412   : > { %v5610_v63 = vadd.f32 %v5609_v35, %v5608_v1  ;;  %v5946_v2 = vadd.f32 %v5945_v41, %v5944_v7  ;;  %v4939_v45 = vsel %vm4654_vm3, %v4252_v58, 0.0  ;;  %v5285_v22 = vsel %vm4654_vm3, %v4382_v14, 0.0 }
 0x413   : > { %v5282_v40 = vadd.f32 %v5281_v34, %v5280_v32  ;;  %v4940_v3 = vadd.f32 %v4939_v45, %v4938_v18  ;;  %v10382_v34 = vld [vmem:[%s10716_s2] ss:$0 sm:$0xff] }
 0x414   : > { %v3777_v62 = vpop.f32.mrf.mxu2  ;;  %v4097_v12 = vpop.f32.mrf.mxu3 }
 0x415   : > { %v5283_v37 = vrot.slane %v5282_v40, 1  ;;  %v3778_v9 = vadd.f32 %v10096_v48, %v3777_v62  ;;  %v4098_v11 = vadd.f32 %v10096_v48, %v4097_v12  ;;  %v3139_v36 = vpop.f32.mrf.mxu0  ;;  %v3464_v55 = vpop.f32.mrf.mxu1 }
 0x416   : > { %v3140_v49 = vadd.f32 %v10096_v48, %v3139_v36  ;;  %v3465_v13 = vadd.f32 %v10096_v48, %v3464_v55 }
 0x417   : > { %v5284_v1 = vadd.f32 %v5283_v37, %v5282_v40  ;;  %v4508_v7 = vmax.f32 %v3778_v9, 0.0  ;;  %v4636_v19 = vmax.f32 %v4098_v11, 0.0 }
 0x418   : > { %v4253_v18 = vmax.f32 %v3140_v49, 0.0  ;;  %v4383_v29 = vmax.f32 %v3465_v13, 0.0 }
 0x419   : > { %v6028_v16 = vmul.f32 0.015625, %v5284_v1  ;;  %v5611_v39 = vsel %vm4654_vm3, %v4508_v7, 0.0  ;;  %v5947_v8 = vsel %vm4654_vm3, %v4636_v19, 0.0 }
 0x41a   : > { %v5612_v33 = vadd.f32 %v5611_v39, %v5610_v63  ;;  %v5948_v60 = vadd.f32 %v5947_v8, %v5946_v2  ;;  %v4941_v50 = vsel %vm4654_vm3, %v4253_v18, 0.0  ;;  %v5286_v17 = vsel %vm4654_vm3, %v4383_v29, 0.0 }
 0x41b   : > { %v10376_v48 = vsel %vm6135_vm8, %v6028_v16, %v10249_v4  ;;  %v6235_v38 = vpack.c.bf16 %v6028_v16, %v6028_v16  ;;  %v4942_v23 = vadd.f32 %v4941_v50, %v4940_v3  ;;  %v5287_v20 = vadd.f32 %v5286_v17, %v5285_v22 }
 0x41c   : > { %v3779_v32 = vpop.f32.mrf.mxu2  ;;  %v4099_v27 = vpop.f32.mrf.mxu3 }
 0x41d   : > { %v6393_v58 = vperm.slane %v6235_v38, 0  ;;  %v4943_v61 = vrot.slane %v4942_v23, 4  ;;  %v3780_v35 = vadd.f32 %v10382_v34, %v3779_v32  ;;  %v4100_v41 = vadd.f32 %v10382_v34, %v4099_v27  ;;  %v3142_v63 = vpop.f32.mrf.mxu0  ;;  %v3467_v4 = vpop.f32.mrf.mxu1 }
 0x41e   : > { %v3468_v2 = vadd.f32 %v10382_v34, %v3467_v4  ;;  %v3143_v62 = vadd.f32 %v10382_v34, %v3142_v63 }
 0x41f   : > { %v6409_v45 = vunpack.c.l.b16 %v6393_v58  ;;  %v4944_v40 = vadd.f32 %v4943_v61, %v4942_v23  ;;  %v4509_v3 = vmax.f32 %v3780_v35, 0.0  ;;  %v4637_v14 = vmax.f32 %v4100_v41, 0.0 }
 0x420   : > { %v4384_v12 = vmax.f32 %v3468_v2, 0.0  ;;  %7852 = vmatmul.msk.bf16.gmra.mxu0 %vm2077_vm2, %v8134_v46  ;;  %v4254_v39 = vmax.f32 %v3143_v62, 0.0 }
 0x421   : > { %v4945_v37 = vrot.slane %v4944_v40, 2  ;;  %v5613_v9 = vsel %vm4654_vm3, %v4509_v3, 0.0  ;;  %v5949_v11 = vsel %vm4654_vm3, %v4637_v14, 0.0  ;;  %v10393_v36 = vsel %vm6135_vm8, %v6409_v45, %v10264_v28 }
 0x422   : > { %v5614_v55 = vadd.f32 %v5613_v9, %v5612_v33  ;;  %v5950_v49 = vadd.f32 %v5949_v11, %v5948_v60  ;;  %v5288_v13 = vsel %vm4654_vm3, %v4384_v12, 0.0  ;;  %v4949_v35 = vsel %vm4654_vm3, %v4254_v39, 0.0 }
 0x423   : > { %v4946_v1 = vadd.f32 %v4945_v37, %v4944_v40  ;;  %v5289_v7 = vadd.f32 %v5288_v13, %v5287_v20 }
 0x424   : > { %v5615_v19 = vrot.slane %v5614_v55, 4  ;;  %v5951_v22 = vrot.slane %v5950_v49, 4  ;;  %v3782_v18 = vpop.f32.mrf.mxu2  ;;  %v4102_v29 = vpop.f32.mrf.mxu3 }
 0x425   : > { %v4947_v16 = vrot.slane %v4946_v1, 1  ;;  %v3783_v8 = vadd.f32 %v10382_v34, %v3782_v18  ;;  %v4103_v50 = vadd.f32 %v10382_v34, %v4102_v29  ;;  %v3144_v17 = vpop.f32.mrf.mxu0  ;;  %v3469_v38 = vpop.f32.mrf.mxu1 }
 0x426   : > { %v5616_v28 = vadd.f32 %v5615_v19, %v5614_v55  ;;  %v5952_v23 = vadd.f32 %v5951_v22, %v5950_v49  ;;  %v3145_v33 = vadd.f32 %v10382_v34, %v3144_v17  ;;  %v3470_v60 = vadd.f32 %v10382_v34, %v3469_v38 }
 0x427   : > { %v4948_v32 = vadd.f32 %v4947_v16, %v4946_v1  ;;  %v4510_v41 = vmax.f32 %v3783_v8, 0.0  ;;  %v4638_v63 = vmax.f32 %v4103_v50, 0.0 }
 0x428   : > { %v5617_v20 = vrot.slane %v5616_v28, 2  ;;  %v5953_v27 = vrot.slane %v5952_v23, 2  ;;  %v4255_v46 = vmax.f32 %v3145_v33, 0.0  ;;  %v4385_v58 = vmax.f32 %v3470_v60, 0.0 }
 0x429   : > { %v6012_v61 = vmul.f32 0.015625, %v4948_v32  ;;  %v5621_v13 = vsel %vm4654_vm3, %v4510_v41, 0.0  ;;  %v5957_v8 = vsel %vm4654_vm3, %v4638_v63, 0.0 }
 0x42a   : > { %v5618_v4 = vadd.f32 %v5617_v20, %v5616_v28  ;;  %v5954_v2 = vadd.f32 %v5953_v27, %v5952_v23  ;;  %v4950_v45 = vsel %vm4654_vm3, %v4255_v46, 0.0  ;;  %v5290_v40 = vsel %vm4654_vm3, %v4385_v58, 0.0 }
 0x42b   : > { %v10405_v3 = vsel %vm6135_vm8, %v6012_v61, %v10279_v52  ;;  %v6219_v14 = vpack.c.bf16 %v6012_v61, %v6012_v61  ;;  %v4951_v62 = vadd.f32 %v4950_v45, %v4949_v35  ;;  %v5291_v12 = vadd.f32 %v5290_v40, %v5289_v7 }
 0x42c   : > { %v5619_v37 = vrot.slane %v5618_v4, 1  ;;  %v5955_v9 = vrot.slane %v5954_v2, 1  ;;  %v3784_v11 = vpop.f32.mrf.mxu2  ;;  %v4104_v55 = vpop.f32.mrf.mxu3 }
 0x42d   : > { %v6307_v49 = vperm.slane %v6219_v14, 0  ;;  %v3785_v1 = vadd.f32 %v10382_v34, %v3784_v11  ;;  %v4105_v19 = vadd.f32 %v10382_v34, %v4104_v55  ;;  %v3147_v22 = vpop.f32.mrf.mxu0  ;;  %v3472_v18 = vpop.f32.mrf.mxu1 }
 0x42e   : > { %v5620_v29 = vadd.f32 %v5619_v37, %v5618_v4  ;;  %v5956_v16 = vadd.f32 %v5955_v9, %v5954_v2  ;;  %v3148_v52 = vadd.f32 %v10382_v34, %v3147_v22  ;;  %v3473_v39 = vadd.f32 %v10382_v34, %v3472_v18 }
 0x42f   : > { %v6323_v7 = vunpack.c.l.b16 %v6307_v49  ;;  %v4511_v50 = vmax.f32 %v3785_v1, 0.0  ;;  %v4639_v17 = vmax.f32 %v4105_v19, 0.0 }
 0x430   : > { %v6044_v38 = vmul.f32 0.015625, %v5620_v29  ;;  %v6060_v28 = vmul.f32 0.015625, %v5956_v16  ;;  %v4256_v23 = vmax.f32 %v3148_v52, 0.0  ;;  %v4386_v33 = vmax.f32 %v3473_v39, 0.0 }
 0x431   : > { %v5622_v60 = vsel %vm4654_vm3, %v4511_v50, 0.0  ;;  %v5958_v32 = vsel %vm4654_vm3, %v4639_v17, 0.0  ;;  %v10417_v20 = vsel %vm6135_vm8, %v6323_v7, %v10295_v42 }
 0x432   : > { %v10421_v27 = vsel %vm6135_vm8, %v6044_v38, %v10304_v15  ;;  %v6251_v46 = vpack.c.bf16 %v6044_v38, %v6044_v38  ;;  %v10425_v58 = vsel %vm6135_vm8, %v6060_v28, %v10308_v21  ;;  %v6267_v61 = vpack.c.bf16 %v6060_v28, %v6060_v28 }
 0x433   : > { %v5623_v35 = vadd.f32 %v5622_v60, %v5621_v13  ;;  %v5959_v41 = vadd.f32 %v5958_v32, %v5957_v8  ;;  %v4952_v63 = vsel %vm4654_vm3, %v4256_v23, 0.0  ;;  %v5292_v4 = vsel %vm4654_vm3, %v4386_v33, 0.0 }
 0x434   : > { %v6479_v2 = vperm.slane %v6251_v46, 0  ;;  %v6565_v45 = vperm.slane %v6267_v61, 0  ;;  %v4953_v42 = vadd.f32 %v4952_v63, %v4951_v62  ;;  %v5293_v40 = vadd.f32 %v5292_v4, %v5291_v12  ;;  %v3787_v14 = vpop.f32.mrf.mxu2  ;;  %v4107_v37 = vpop.f32.mrf.mxu3 }
 0x435   : > { %v3788_v15 = vadd.f32 %v10382_v34, %v3787_v14  ;;  %v4108_v9 = vadd.f32 %v10382_v34, %v4107_v37  ;;  %v3149_v11 = vpop.f32.mrf.mxu0  ;;  %v3474_v21 = vpop.f32.mrf.mxu1 }
 0x436   : > { %v6495_v55 = vunpack.c.l.b16 %v6479_v2  ;;  %v6581_v49 = vunpack.c.l.b16 %v6565_v45  ;;  %v3150_v13 = vadd.f32 %v10382_v34, %v3149_v11  ;;  %v3475_v1 = vadd.f32 %v10382_v34, %v3474_v21 }
 0x437   : > { %v4512_v19 = vmax.f32 %v3788_v15, 0.0  ;;  %v4640_v22 = vmax.f32 %v4108_v9, 0.0 }
 0x438   : > { %v10435_v62 = vsel %vm6135_vm8, %v6581_v49, %v10322_v30  ;;  %v4257_v12 = vmax.f32 %v3150_v13, 0.0  ;;  %v4387_v18 = vmax.f32 %v3475_v1, 0.0  ;;  %v10439_v29 = vsel %vm6135_vm8, %v6495_v55, %v10318_v54 }
 0x439   : > { %v5624_v16 = vsel %vm4654_vm3, %v4512_v19, 0.0  ;;  %v5960_v52 = vsel %vm4654_vm3, %v4640_v22, 0.0 }
 0x43a   : > { %v5625_v39 = vadd.f32 %v5624_v16, %v5623_v35  ;;  %v5961_v7 = vadd.f32 %v5960_v52, %v5959_v41  ;;  %v4954_v8 = vsel %vm4654_vm3, %v4257_v12, 0.0  ;;  %v5294_v50 = vsel %vm4654_vm3, %v4387_v18, 0.0 }
 0x43b   : > { %v4955_v17 = vadd.f32 %v4954_v8, %v4953_v42  ;;  %v5295_v38 = vadd.f32 %v5294_v50, %v5293_v40 }
 0x43c   : > { %v3789_v30 = vpop.f32.mrf.mxu2  ;;  %v4109_v28 = vpop.f32.mrf.mxu3 }
 0x43d   : > { %v3790_v23 = vadd.f32 %v10382_v34, %v3789_v30  ;;  %v4110_v33 = vadd.f32 %v10382_v34, %v4109_v28  ;;  %v3152_v54 = vpop.f32.mrf.mxu0  ;;  %v3477_v60 = vpop.f32.mrf.mxu1 }
 0x43e   : > { %v3153_v32 = vadd.f32 %v10382_v34, %v3152_v54  ;;  %v3478_v46 = vadd.f32 %v10382_v34, %v3477_v60 }
 0x43f   : > { %v4513_v61 = vmax.f32 %v3790_v23, 0.0  ;;  %v4641_v35 = vmax.f32 %v4110_v33, 0.0 }
 0x440   : > { %v4258_v41 = vmax.f32 %v3153_v32, 0.0  ;;  %v4388_v63 = vmax.f32 %v3478_v46, 0.0 }
 0x441   : > { %v5626_v4 = vsel %vm4654_vm3, %v4513_v61, 0.0  ;;  %v5962_v2 = vsel %vm4654_vm3, %v4641_v35, 0.0 }
 0x442   : > { %v5627_v45 = vadd.f32 %v5626_v4, %v5625_v39  ;;  %v5963_v42 = vadd.f32 %v5962_v2, %v5961_v7  ;;  %v4956_v40 = vsel %vm4654_vm3, %v4258_v41, 0.0  ;;  %v5296_v14 = vsel %vm4654_vm3, %v4388_v63, 0.0 }
 0x443   : > { %v4957_v37 = vadd.f32 %v4956_v40, %v4955_v17  ;;  %v5297_v15 = vadd.f32 %v5296_v14, %v5295_v38 }
 0x444   : > { %v3792_v9 = vpop.f32.mrf.mxu2  ;;  %v4112_v11 = vpop.f32.mrf.mxu3 }
 0x445   : > { %v3793_v21 = vadd.f32 %v10382_v34, %v3792_v9  ;;  %v4113_v55 = vadd.f32 %v10382_v34, %v4112_v11  ;;  %v3154_v49 = vpop.f32.mrf.mxu0  ;;  %v3479_v13 = vpop.f32.mrf.mxu1 }
 0x446   : > { %v3155_v1 = vadd.f32 %v10382_v34, %v3154_v49  ;;  %v3480_v19 = vadd.f32 %v10382_v34, %v3479_v13 }
 0x447   : > { %v4514_v22 = vmax.f32 %v3793_v21, 0.0  ;;  %v4642_v12 = vmax.f32 %v4113_v55, 0.0 }
 0x448   : > { %v4259_v18 = vmax.f32 %v3155_v1, 0.0  ;;  %v4389_v16 = vmax.f32 %v3480_v19, 0.0 }
 0x449   : > { %v5628_v52 = vsel %vm4654_vm3, %v4514_v22, 0.0  ;;  %v5964_v39 = vsel %vm4654_vm3, %v4642_v12, 0.0 }
 0x44a   : > { %v5629_v7 = vadd.f32 %v5628_v52, %v5627_v45  ;;  %v5965_v8 = vadd.f32 %v5964_v39, %v5963_v42  ;;  %v4958_v50 = vsel %vm4654_vm3, %v4259_v18, 0.0  ;;  %v5298_v17 = vsel %vm4654_vm3, %v4389_v16, 0.0 }
 0x44b   : > { %v4959_v38 = vadd.f32 %v4958_v50, %v4957_v37  ;;  %v5299_v30 = vadd.f32 %v5298_v17, %v5297_v15 }
 0x44c   : > { %v3794_v28 = vpop.f32.mrf.mxu2  ;;  %v4114_v23 = vpop.f32.mrf.mxu3 }
 0x44d   : > { %v5300_v33 = vrot.slane %v5299_v30, 4  ;;  %v3795_v54 = vadd.f32 %v10382_v34, %v3794_v28  ;;  %v4115_v60 = vadd.f32 %v10382_v34, %v4114_v23  ;;  %v3157_v32 = vpop.f32.mrf.mxu0  ;;  %v10463_v46 = vpop.f32.mrf.mxu1 }
 0x44e   : > { %v3158_v61 = vadd.f32 %v10382_v34, %v3157_v32 }
 0x44f   : > { %v5301_v35 = vadd.f32 %v5300_v33, %v5299_v30  ;;  %v4515_v41 = vmax.f32 %v3795_v54, 0.0  ;;  %v4643_v63 = vmax.f32 %v4115_v60, 0.0 }
 0x450   : > { %v4260_v4 = vmax.f32 %v3158_v61, 0.0 }
 0x451   : > { %v5302_v2 = vrot.slane %v5301_v35, 2  ;;  %v5630_v45 = vsel %vm4654_vm3, %v4515_v41, 0.0  ;;  %v5966_v42 = vsel %vm4654_vm3, %v4643_v63, 0.0 }
 0x452   : > { %v5631_v40 = vadd.f32 %v5630_v45, %v5629_v7  ;;  %v5967_v14 = vadd.f32 %v5966_v42, %v5965_v8  ;;  %v4960_v37 = vsel %vm4654_vm3, %v4260_v4, 0.0 }
 0x453   : > { %v5303_v15 = vadd.f32 %v5302_v2, %v5301_v35  ;;  %v4961_v9 = vadd.f32 %v4960_v37, %v4959_v38 }
 0x454   : > { %v3797_v11 = vpop.f32.mrf.mxu2  ;;  %v4117_v21 = vpop.f32.mrf.mxu3 }
 0x455   : > { %v5304_v55 = vrot.slane %v5303_v15, 1  ;;  %v3798_v49 = vadd.f32 %v10382_v34, %v3797_v11  ;;  %v4118_v13 = vadd.f32 %v10382_v34, %v4117_v21  ;;  %v3159_v1 = vpop.f32.mrf.mxu0  ;;  %v3484_v19 = vpop.f32.mrf.mxu1 }
 0x456   : > { %v3160_v22 = vadd.f32 %v10382_v34, %v3159_v1 }
 0x457   : > { %v5305_v12 = vadd.f32 %v5304_v55, %v5303_v15  ;;  %v4516_v18 = vmax.f32 %v3798_v49, 0.0  ;;  %v4644_v16 = vmax.f32 %v4118_v13, 0.0 }
 0x458   : > { %v4261_v52 = vmax.f32 %v3160_v22, 0.0 }
 0x459   : > { %v6029_v39 = vmul.f32 0.015625, %v5305_v12  ;;  %v5632_v7 = vsel %vm4654_vm3, %v4516_v18, 0.0  ;;  %v5968_v8 = vsel %vm4654_vm3, %v4644_v16, 0.0 }
 0x45a   : > { %v5633_v50 = vadd.f32 %v5632_v7, %v5631_v40  ;;  %v5969_v17 = vadd.f32 %v5968_v8, %v5967_v14  ;;  %v4962_v38 = vsel %vm4654_vm3, %v4261_v52, 0.0  ;;  %v3483_v52 = vadd.f32 %v10382_v34, %v10463_v46 }
 0x45b   : > { %v10477_v30 = vsel %vm6137_vm9, %v6029_v39, %v10376_v48  ;;  %v6236_v28 = vpack.c.bf16 %v6029_v39, %v6029_v39  ;;  %v4963_v23 = vadd.f32 %v4962_v38, %v4961_v9  ;;  %v3485_v39 = vadd.f32 %v10382_v34, %v3484_v19 }
 0x45c   : > { %v3799_v33 = vpop.f32.mrf.mxu2  ;;  %v4119_v54 = vpop.f32.mrf.mxu3 }
 0x45d   : > { %v6394_v60 = vperm.slane %v6236_v28, 0  ;;  %v4964_v32 = vrot.slane %v4963_v23, 4  ;;  %v3800_v61 = vadd.f32 %v10382_v34, %v3799_v33  ;;  %v4120_v35 = vadd.f32 %v10382_v34, %v4119_v54  ;;  %v10481_v41 = vpop.f32.mrf.mxu0  ;;  %v3487_v63 = vpop.f32.mrf.mxu1 }
 0x45e   : > { %v4390_v28 = vmax.f32 %v3483_v52, 0.0  ;;  %v4391_v54 = vmax.f32 %v3485_v39, 0.0 }
 0x45f   : > { %v6410_v4 = vunpack.c.l.b16 %v6394_v60  ;;  %v4965_v2 = vadd.f32 %v4964_v32, %v4963_v23  ;;  %v4517_v45 = vmax.f32 %v3800_v61, 0.0  ;;  %v4645_v42 = vmax.f32 %v4120_v35, 0.0 }
 0x460   : > { %v3488_v61 = vadd.f32 %v10382_v34, %v3487_v63 }
 0x461   : > { %v4966_v40 = vrot.slane %v4965_v2, 2  ;;  %v5634_v48 = vsel %vm4654_vm3, %v4517_v45, 0.0  ;;  %v5970_v14 = vsel %vm4654_vm3, %v4645_v42, 0.0  ;;  %v10487_v37 = vsel %vm6137_vm9, %v6410_v4, %v10393_v36 }
 0x462   : > { %v5635_v15 = vadd.f32 %v5634_v48, %v5633_v50  ;;  %v5971_v9 = vadd.f32 %v5970_v14, %v5969_v17 }
 0x463   : > { %v4967_v11 = vadd.f32 %v4966_v40, %v4965_v2  ;;  %v5306_v40 = vsel %vm4654_vm3, %v4390_v28, 0.0 }
 0x464   : > { %v5636_v21 = vrot.slane %v5635_v15, 4  ;;  %v5972_v55 = vrot.slane %v5971_v9, 4  ;;  %v10489_v49 = vpop.f32.mrf.mxu2  ;;  %v10491_v13 = vpop.f32.mrf.mxu3 }
 0x465   : > { %v4968_v1 = vrot.slane %v4967_v11, 1  ;;  %v10493_v22 = vpop.f32.mrf.mxu0  ;;  %v3489_v12 = vpop.f32.mrf.mxu1 }
 0x466   : > { %v5637_v18 = vadd.f32 %v5636_v21, %v5635_v15  ;;  %v5973_v16 = vadd.f32 %v5972_v55, %v5971_v9  ;;  %v3490_v14 = vadd.f32 %v10382_v34, %v3489_v12 }
 0x467   : > { %v4969_v36 = vadd.f32 %v4968_v1, %v4967_v11  ;;  %v4392_v11 = vmax.f32 %v3488_v61, 0.0 }
 0x468   : > { %v5638_v7 = vrot.slane %v5637_v18, 2  ;;  %v5974_v8 = vrot.slane %v5973_v16, 2 }
 0x469   : > { %v6013_v50 = vmul.f32 0.015625, %v4969_v36  ;;  %v5309_v39 = vsel %vm4654_vm3, %v4392_v11, 0.0 }
 0x46a   : > { %v5639_v17 = vadd.f32 %v5638_v7, %v5637_v18  ;;  %v5975_v38 = vadd.f32 %v5974_v8, %v5973_v16  ;;  %v4393_v16 = vmax.f32 %v3490_v14, 0.0 }
 0x46b   : > { %v10500_v23 = vsel %vm6137_vm9, %v6013_v50, %v10405_v3  ;;  %v6220_v33 = vpack.c.bf16 %v6013_v50, %v6013_v50  ;;  %v5307_v3 = vsel %vm4654_vm3, %v4391_v54, 0.0 }
 0x46c   : > { %v5640_v60 = vrot.slane %v5639_v17, 1  ;;  %v5976_v32 = vrot.slane %v5975_v38, 1  ;;  %v3804_v46 = vpop.f32.mrf.mxu2  ;;  %v4124_v35 = vpop.f32.mrf.mxu3  ;;  %v5308_v12 = vadd.f32 %v5307_v3, %v5306_v40  ;;  %v4123_v40 = vadd.f32 %v10382_v34, %v10491_v13 }
 0x46d   : > { %v6308_v4 = vperm.slane %v6220_v33, 0  ;;  %v3167_v19 = vpop.f32.mrf.mxu0  ;;  %v3492_v2 = vpop.f32.mrf.mxu1  ;;  %v5311_v33 = vsel %vm4654_vm3, %v4393_v16, 0.0  ;;  %v3805_v16 = vadd.f32 %v10382_v34, %v3804_v46 }
 0x46e   : > { %v5641_v45 = vadd.f32 %v5640_v60, %v5639_v17  ;;  %v5977_v42 = vadd.f32 %v5976_v32, %v5975_v38  ;;  %v3493_v7 = vadd.f32 %v10382_v34, %v3492_v2  ;;  %v5310_v28 = vadd.f32 %v5309_v39, %v5308_v12 }
 0x46f   : > { %v6324_v48 = vunpack.c.l.b16 %v6308_v4  ;;  %v4646_v13 = vmax.f32 %v4123_v40, 0.0 }
 0x470   : > { %v6045_v15 = vmul.f32 0.015625, %v5641_v45  ;;  %v6061_v9 = vmul.f32 0.015625, %v5977_v42  ;;  %v4394_v54 = vmax.f32 %v3493_v7, 0.0  ;;  %v5312_v61 = vadd.f32 %v5311_v33, %v5310_v28 }
 0x471   : > { %v10508_v63 = vsel %vm6137_vm9, %v6324_v48, %v10417_v20 }
 0x472   : > { %v10512_v21 = vsel %vm6137_vm9, %v6045_v15, %v10421_v27  ;;  %v6252_v55 = vpack.c.bf16 %v6045_v15, %v6045_v15  ;;  %v10516_v1 = vsel %vm6137_vm9, %v6061_v9, %v10425_v58  ;;  %v6268_v18 = vpack.c.bf16 %v6061_v9, %v6061_v9 }
 0x473   : > { %v5313_v4 = vsel %vm4654_vm3, %v4394_v54, 0.0  ;;  %v4125_v15 = vadd.f32 %v10382_v34, %v4124_v35  ;;  %v3163_v9 = vadd.f32 %v10382_v34, %v10481_v41  ;;  %v4519_v54 = vmax.f32 %v3805_v16, 0.0 }
 0x474   : > { %v6480_v52 = vperm.slane %v6252_v55, 0  ;;  %v6566_v36 = vperm.slane %v6268_v18, 0  ;;  %v3807_v20 = vpop.f32.mrf.mxu2  ;;  %v4127_v8 = vpop.f32.mrf.mxu3  ;;  %v3803_v18 = vadd.f32 %v10382_v34, %v10489_v49 }
 0x475   : > { %v3169_v50 = vpop.f32.mrf.mxu0  ;;  %v3494_v17 = vpop.f32.mrf.mxu1  ;;  %v4262_v39 = vmax.f32 %v3163_v9, 0.0  ;;  %v4128_v35 = vadd.f32 %v10382_v34, %v4127_v8  ;;  %v3808_v46 = vadd.f32 %v10382_v34, %v3807_v20  ;;  %v5643_v20 = vsel %vm4654_vm3, %v4519_v54, 0.0 }
 0x476   : > { %v6496_v27 = vunpack.c.l.b16 %v6480_v52  ;;  %v6582_v38 = vunpack.c.l.b16 %v6566_v36  ;;  %v3495_v60 = vadd.f32 %v10382_v34, %v3494_v17  ;;  %v4647_v52 = vmax.f32 %v4125_v15, 0.0 }
 0x477   : > { %v3170_v8 = vadd.f32 %v10382_v34, %v3169_v50  ;;  %v4648_v40 = vmax.f32 %v4128_v35, 0.0 }
 0x478   : > { %v10523_v58 = vsel %vm6137_vm9, %v6582_v38, %v10435_v62  ;;  %v10528_v32 = vsel %vm6137_vm9, %v6496_v27, %v10439_v29  ;;  %v4395_v2 = vmax.f32 %v3495_v60, 0.0  ;;  %v3165_v62 = vadd.f32 %v10382_v34, %v10493_v22 }
 0x479   : > { %v5314_v29 = vadd.f32 %v5313_v4, %v5312_v61  ;;  %v3168_v22 = vadd.f32 %v10382_v34, %v3167_v19  ;;  %v4518_v27 = vmax.f32 %v3803_v18, 0.0  ;;  %v5978_v38 = vsel %vm4654_vm3, %v4646_v13, 0.0 }
 0x47a   : > { %v5315_v11 = vsel %vm4654_vm3, %v4395_v2, 0.0  ;;  %v4263_v12 = vmax.f32 %v3165_v62, 0.0  ;;  %v5979_v60 = vsel %vm4654_vm3, %v4647_v52, 0.0  ;;  %v4970_v2 = vsel %vm4654_vm3, %v4262_v39, 0.0 }
 0x47b   : > { %v5316_v36 = vadd.f32 %v5315_v11, %v5314_v29  ;;  %v4264_v61 = vmax.f32 %v3168_v22, 0.0  ;;  %v5980_v9 = vadd.f32 %v5979_v60, %v5978_v38  ;;  %v4520_v11 = vmax.f32 %v3808_v46, 0.0 }
 0x47c   : > { %v3809_v45 = vpop.f32.mrf.mxu2  ;;  %v4129_v42 = vpop.f32.mrf.mxu3  ;;  %v4971_v33 = vsel %vm4654_vm3, %v4263_v12, 0.0  ;;  %v4265_v18 = vmax.f32 %v3170_v8, 0.0 }
 0x47d   : > { %v3172_v48 = vpop.f32.mrf.mxu0  ;;  %v3497_v14 = vpop.f32.mrf.mxu1  ;;  %v4972_v15 = vadd.f32 %v4971_v33, %v4970_v2  ;;  %v4973_v50 = vsel %vm4654_vm3, %v4264_v61, 0.0  ;;  %v3810_v13 = vadd.f32 %v10382_v34, %v3809_v45 }
 0x47e   : > { %v3498_v3 = vadd.f32 %v10382_v34, %v3497_v14  ;;  %v4130_v14 = vadd.f32 %v10382_v34, %v4129_v42  ;;  %v3173_v29 = vadd.f32 %v10382_v34, %v3172_v48  ;;  %v5981_v42 = vsel %vm4654_vm3, %v4648_v40, 0.0 }
 0x47f   : > { %v4974_v38 = vadd.f32 %v4973_v50, %v4972_v15  ;;  %v5982_v45 = vadd.f32 %v5981_v42, %v5980_v9  ;;  %v4975_v54 = vsel %vm4654_vm3, %v4265_v18, 0.0  ;;  %v4521_v46 = vmax.f32 %v3810_v13, 0.0 }
 0x480   : > { %v4396_v55 = vmax.f32 %v3498_v3, 0.0  ;;  %v5642_v3 = vsel %vm4654_vm3, %v4518_v27, 0.0  ;;  %v4649_v16 = vmax.f32 %v4130_v14, 0.0  ;;  %v4266_v39 = vmax.f32 %v3173_v29, 0.0 }
 0x481   : > { %v5644_v27 = vadd.f32 %v5643_v20, %v5642_v3  ;;  %v4976_v14 = vadd.f32 %v4975_v54, %v4974_v38  ;;  %v5647_v3 = vsel %vm4654_vm3, %v4521_v46, 0.0 }
 0x482   : > { %v5317_v7 = vsel %vm4654_vm3, %v4396_v55, 0.0  ;;  %v4977_v8 = vsel %vm4654_vm3, %v4266_v39, 0.0 }
 0x483   : > { %v5318_v4 = vadd.f32 %v5317_v7, %v5316_v36  ;;  %v4978_v9 = vadd.f32 %v4977_v8, %v4976_v14 }
 0x484   : > { %v3812_v41 = vpop.f32.mrf.mxu2  ;;  %v4132_v17 = vpop.f32.mrf.mxu3 }
 0x485   : > { %v3174_v28 = vpop.f32.mrf.mxu0  ;;  %v3499_v49 = vpop.f32.mrf.mxu1  ;;  %v4133_v52 = vadd.f32 %v10382_v34, %v4132_v17  ;;  %v5983_v17 = vsel %vm4654_vm3, %v4649_v16, 0.0 }
 0x486   : > { %v3500_v19 = vadd.f32 %v10382_v34, %v3499_v49  ;;  %v3175_v22 = vadd.f32 %v10382_v34, %v3174_v28  ;;  %v5645_v49 = vsel %vm4654_vm3, %v4520_v11, 0.0  ;;  %v3813_v28 = vadd.f32 %v10382_v34, %v3812_v41 }
 0x487   : > { %v4650_v60 = vmax.f32 %v4133_v52, 0.0  ;;  %v5646_v40 = vadd.f32 %v5645_v49, %v5644_v27  ;;  %v5984_v15 = vadd.f32 %v5983_v17, %v5982_v45  ;;  %v3188_v17 = vadd.f32 %v10382_v34, %v8620_v43 }
 0x488   : > { %v4397_v62 = vmax.f32 %v3500_v19, 0.0  ;;  %v4267_v61 = vmax.f32 %v3175_v22, 0.0  ;;  %v4522_v11 = vmax.f32 %v3813_v28, 0.0 }
 0x489   : > { %v5985_v41 = vsel %vm4654_vm3, %v4650_v60, 0.0  ;;  %v3190_v60 = vadd.f32 %v10382_v34, %v8634_v51 }
 0x48a   : > { %v5319_v55 = vsel %vm4654_vm3, %v4397_v62, 0.0  ;;  %v5649_v27 = vsel %vm4654_vm3, %v4522_v11, 0.0  ;;  %v5986_v38 = vadd.f32 %v5985_v41, %v5984_v15  ;;  %v3198_v41 = vadd.f32 %v10382_v34, %v8671_v44 }
 0x48b   : > { %v5320_v12 = vadd.f32 %v5319_v55, %v5318_v4  ;;  %v4979_v55 = vsel %vm4654_vm3, %v4267_v61, 0.0 }
 0x48c   : > { %v3814_v48 = vpop.f32.mrf.mxu2  ;;  %v4134_v36 = vpop.f32.mrf.mxu3  ;;  %v4980_v39 = vadd.f32 %v4979_v55, %v4978_v9  ;;  %v4272_v9 = vmax.f32 %v3188_v17, 0.0 }
 0x48d   : > { %v5321_v35 = vrot.slane %v5320_v12, 4  ;;  %v3177_v7 = vpop.f32.mrf.mxu0  ;;  %v4135_v2 = vadd.f32 %v10382_v34, %v4134_v36  ;;  %v3815_v20 = vadd.f32 %v10382_v34, %v3814_v48  ;;  %v5648_v48 = vadd.f32 %v5647_v3, %v5646_v40 }
 0x48e   : > { %v3178_v33 = vadd.f32 %v10382_v34, %v3177_v7 }
 0x48f   : > { %v5322_v19 = vadd.f32 %v5321_v35, %v5320_v12  ;;  %v4651_v12 = vmax.f32 %v4135_v2, 0.0  ;;  %v4523_v7 = vmax.f32 %v3815_v20, 0.0  ;;  %v3193_v2 = vadd.f32 %v10382_v34, %v8645_v5 }
 0x490   : > { %v4268_v62 = vmax.f32 %v3178_v33, 0.0  ;;  %v5650_v40 = vadd.f32 %v5649_v27, %v5648_v48  ;;  %v3195_v5 = vadd.f32 %v10382_v34, %v8661_v25  ;;  %v8331_v25 = vld [vmem:[%s10717_s3 + $0x18] sm:$0xff]  ;;  %v4276_v27 = vmax.f32 %v3198_v41, 0.0 }
 0x491   : > { %v5323_v4 = vrot.slane %v5322_v19, 2  ;;  %v5987_v54 = vsel %vm4654_vm3, %v4651_v12, 0.0  ;;  %v5651_v8 = vsel %vm4654_vm3, %v4523_v7, 0.0  ;;  %v4274_v12 = vmax.f32 %v3193_v2, 0.0  ;;  %6615 = vmatpush.bf16.msra.mxu1 %v8331_v25 }
 0x492   : > { %v4981_v22 = vsel %vm4654_vm3, %v4268_v62, 0.0  ;;  %v5988_v14 = vadd.f32 %v5987_v54, %v5986_v38  ;;  %v5652_v11 = vadd.f32 %v5651_v8, %v5650_v40  ;;  %v4275_v7 = vmax.f32 %v3195_v5, 0.0 }
 0x493   : > { %v5324_v29 = vadd.f32 %v5323_v4, %v5322_v19  ;;  %v4982_v46 = vadd.f32 %v4981_v22, %v4980_v39 }
 0x494   : > { %v3817_v50 = vpop.f32.mrf.mxu2  ;;  %v4137_v18 = vpop.f32.mrf.mxu3 }
 0x495   : > { %v5325_v13 = vrot.slane %v5324_v29, 1  ;;  %v3818_v42 = vadd.f32 %v10382_v34, %v3817_v50  ;;  %v4138_v16 = vadd.f32 %v10382_v34, %v4137_v18  ;;  %v3179_v52 = vpop.f32.mrf.mxu0 }
 0x496   : > { %v3180_v36 = vadd.f32 %v10382_v34, %v3179_v52  ;;  %v5027_v52 = vrot.slane %v8805_v24, 4 }
 0x497   : > { %v5326_v35 = vadd.f32 %v5325_v13, %v5324_v29  ;;  %v4524_v49 = vmax.f32 %v3818_v42, 0.0  ;;  %v4652_v19 = vmax.f32 %v4138_v16, 0.0  ;;  %v4273_v13 = vmax.f32 %v3190_v60, 0.0 }
 0x498   : > { %v4269_v33 = vmax.f32 %v3180_v36, 0.0  ;;  %v5028_v17 = vadd.f32 %v5027_v52, %v8805_v24 }
 0x499   : > { %v10579_v45 = vmul.f32 0.015625, %v5326_v35  ;;  %v5653_v43 = vsel %vm4654_vm3, %v4524_v49, 0.0  ;;  %v5989_v51 = vsel %vm4654_vm3, %v4652_v19, 0.0  ;;  %v4994_v49 = vsel %vm4654_vm3, %v4272_v9, 0.0 }
 0x49a   : > { %v4983_v28 = vsel %vm4654_vm3, %v4269_v33, 0.0  ;;  %v5654_v42 = vadd.f32 %v5653_v43, %v5652_v11  ;;  %v5990_v16 = vadd.f32 %v5989_v51, %v5988_v14  ;;  %v4996_v33 = vsel %vm4654_vm3, %v4273_v13, 0.0 }
 0x49b   : > { %v6161_v61 = vsel %vm6139_vm10, %v10579_v45, %v10477_v30  ;;  %v4984_v4 = vadd.f32 %v4983_v28, %v4982_v46  ;;  %v4998_v19 = vsel %vm4654_vm3, %v4274_v12, 0.0  ;;  %v5048_v28 = vrot.slane %v8947_v47, 4 }
 0x49c   : > { %6201 = vst.msk [vmem:[%s9631_s9 + $0x18] sm:$0xff] %vm4654_vm3, %v6161_v61  ;;  %v3819_v62 = vpop.f32.mrf.mxu2  ;;  %v4139_v3 = vpop.f32.mrf.mxu3  ;;  %v5000_v14 = vsel %vm4654_vm3, %v4275_v7, 0.0  ;;  %v5002_v43 = vsel %vm4654_vm3, %v4276_v27, 0.0  ;;  %v5069_v51 = vrot.slane %v9069_v56, 4  ;;  %v5090_v9 = vrot.slane %v9191_v6, 4 }
 0x49d   : > { %v4985_v15 = vrot.slane %v4984_v4, 4  ;;  %v3820_v29 = vadd.f32 %v10382_v34, %v3819_v62  ;;  %v4140_v30 = vadd.f32 %v10382_v34, %v4139_v3  ;;  %v3182_v20 = vpop.f32.mrf.mxu0  ;;  %v3200_v62 = vadd.f32 %v10382_v34, %v8685_v0 }
 0x49e   : > { %v3183_v35 = vadd.f32 %v10382_v34, %v3182_v20  ;;  %v5049_v20 = vadd.f32 %v5048_v28, %v8947_v47  ;;  %v5111_v0 = vrot.slane %v9318_v26, 4  ;;  %v5070_v12 = vadd.f32 %v5069_v51, %v9069_v56 }
 0x49f   : > { %v4986_v55 = vadd.f32 %v4985_v15, %v4984_v4  ;;  %v4525_v50 = vmax.f32 %v3820_v29, 0.0  ;;  %v4653_v18 = vmax.f32 %v4140_v30, 0.0  ;;  %v5029_v30 = vrot.slane %v5028_v17, 2 }
 0x4a0   : > { %v4270_v2 = vmax.f32 %v3183_v35, 0.0  ;;  %v5132_v47 = vrot.slane %v9440_v53, 4  ;;  %v5091_v52 = vadd.f32 %v5090_v9, %v9191_v6  ;;  %v4277_v25 = vmax.f32 %v3200_v62, 0.0 }
 0x4a1   : > { %v4987_v22 = vrot.slane %v4986_v55, 2  ;;  %v5655_v36 = vsel %vm4654_vm3, %v4525_v50, 0.0  ;;  %v5991_v48 = vsel %vm4654_vm3, %v4653_v18, 0.0  ;;  %v5050_v35 = vrot.slane %v5049_v20, 2 }
 0x4a2   : > { %v5656_v39 = vadd.f32 %v5655_v36, %v5654_v42  ;;  %v5992_v44 = vadd.f32 %v5991_v48, %v5990_v16  ;;  %v5112_v7 = vadd.f32 %v5111_v0, %v9318_v26  ;;  %v5092_v6 = vrot.slane %v5091_v52, 2 }
 0x4a3   : > { %v4988_v38 = vadd.f32 %v4987_v22, %v4986_v55  ;;  %v4991_v55 = vsel %vm4654_vm3, %v4270_v2, 0.0  ;;  %v5153_v22 = vrot.slane %v9567_v31, 4 }
 0x4a4   : > { %v5657_v54 = vrot.slane %v5656_v39, 4  ;;  %v5993_v46 = vrot.slane %v5992_v44, 4 }
 0x4a5   : > { %v4989_v60 = vrot.slane %v4988_v38, 1  ;;  %v3184_v61 = vpop.f32.mrf.mxu0 }
 0x4a6   : > { %v5658_v8 = vadd.f32 %v5657_v54, %v5656_v39  ;;  %v5994_v4 = vadd.f32 %v5993_v46, %v5992_v44  ;;  %v3185_v40 = vadd.f32 %v10382_v34, %v3184_v61  ;;  %v5030_v39 = vadd.f32 %v5029_v30, %v5028_v17 }
 0x4a7   : > { %v4990_v3 = vadd.f32 %v4989_v60, %v4988_v38  ;;  %v5071_v38 = vrot.slane %v5070_v12, 2  ;;  %v5133_v54 = vadd.f32 %v5132_v47, %v9440_v53  ;;  %v5154_v60 = vadd.f32 %v5153_v22, %v9567_v31 }
 0x4a8   : > { %v5659_v24 = vrot.slane %v5658_v8, 2  ;;  %v5995_v15 = vrot.slane %v5994_v4, 2  ;;  %v4271_v29 = vmax.f32 %v3185_v40, 0.0  ;;  %v5113_v53 = vrot.slane %v5112_v7, 2 }
 0x4a9   : > { %v6014_v5 = vmul.f32 0.015625, %v4990_v3  ;;  %v5072_v31 = vadd.f32 %v5071_v38, %v5070_v12  ;;  %v5155_v3 = vrot.slane %v5154_v60, 2 }
 0x4aa   : > { %v5660_v11 = vadd.f32 %v5659_v24, %v5658_v8  ;;  %v5996_v41 = vadd.f32 %v5995_v15, %v5994_v4  ;;  %v4992_v50 = vsel %vm4654_vm3, %v4271_v29, 0.0  ;;  %v5051_v4 = vadd.f32 %v5050_v35, %v5049_v20 }
 0x4ab   : > { %v6147_v34 = vsel %vm6139_vm10, %v6014_v5, %v10500_v23  ;;  %v6221_v18 = vpack.c.bf16 %v6014_v5, %v6014_v5  ;;  %v4993_v13 = vadd.f32 %v4992_v50, %v4991_v55  ;;  %v5093_v24 = vadd.f32 %v5092_v6, %v5091_v52 }
 0x4ac   : > { %6199 = vst.msk [vmem:[%s9631_s9 + $0x8] sm:$0xff] %vm4654_vm3, %v6147_v34  ;;  %v5661_v42 = vrot.slane %v5660_v11, 1  ;;  %v5997_v16 = vrot.slane %v5996_v41, 1  ;;  %v5052_v30 = vrot.slane %v5051_v4, 1 }
 0x4ad   : > { %v6309_v36 = vperm.slane %v6221_v18, 0  ;;  %v4995_v48 = vadd.f32 %v4994_v49, %v4993_v13  ;;  %v5094_v34 = vrot.slane %v5093_v24, 1 }
 0x4ae   : > { %v5662_v44 = vadd.f32 %v5661_v42, %v5660_v11  ;;  %v5998_v23 = vadd.f32 %v5997_v16, %v5996_v41  ;;  %v5156_v41 = vadd.f32 %v5155_v3, %v5154_v60  ;;  %v5053_v12 = vadd.f32 %v5052_v30, %v5051_v4 }
 0x4af   : > { %v6325_v56 = vunpack.c.l.b16 %v6309_v36  ;;  %v4997_v27 = vadd.f32 %v4996_v33, %v4995_v48  ;;  %v5095_v22 = vadd.f32 %v5094_v34, %v5093_v24 }
 0x4b0   : > { %v6046_v46 = vmul.f32 0.015625, %v5662_v44  ;;  %v6062_v28 = vmul.f32 0.015625, %v5998_v23  ;;  %v5157_v16 = vrot.slane %v5156_v41, 1  ;;  %v6017_v48 = vmul.f32 0.015625, %v5053_v12 }
 0x4b1   : > { %v4999_v49 = vadd.f32 %v4998_v19, %v4997_v27  ;;  %v6339_v17 = vsel %vm6139_vm10, %v6325_v56, %v10508_v63  ;;  %v5134_v19 = vrot.slane %v5133_v54, 2  ;;  %v6019_v23 = vmul.f32 0.015625, %v5095_v22 }
 0x4b2   : > { %v6175_v61 = vsel %vm6139_vm10, %v6046_v46, %v10512_v21  ;;  %v6253_v26 = vpack.c.bf16 %v6046_v46, %v6046_v46  ;;  %v6189_v33 = vsel %vm6139_vm10, %v6062_v28, %v10516_v1  ;;  %v6269_v8 = vpack.c.bf16 %v6062_v28, %v6062_v28 }
 0x4b3   : > { %6203 = vst.msk [vmem:[%s9631_s9 + $0x28] sm:$0xff] %vm4654_vm3, %v6175_v61  ;;  %v5001_v2 = vadd.f32 %v5000_v14, %v4999_v49  ;;  %v6340_v40 = vpack.c.b16 %v6339_v17, %v9658_v59  ;;  %v5004_v21 = vsel %vm4654_vm3, %v4277_v25, 0.0  ;;  %v5031_v1 = vrot.slane %v5030_v39, 1 }
 0x4b4   : > { %v6481_v62 = vperm.slane %v6253_v26, 0  ;;  %6205 = vst.msk [vmem:[%s9631_s9 + $0x38] sm:$0xff] %vm4654_vm3, %v6189_v33  ;;  %v6567_v63 = vperm.slane %v6269_v8, 0  ;;  %v5114_v14 = vadd.f32 %v5113_v53, %v5112_v7  ;;  %v5073_v59 = vrot.slane %v5072_v31, 1 }
 0x4b5   : > { %v5003_v51 = vadd.f32 %v5002_v43, %v5001_v2  ;;  %8048 = vmatmul.msk.bf16.vlgmr.msrb.gmra.mxu1 %vm4654_vm3, %v6340_v40  ;;  %v5135_v9 = vadd.f32 %v5134_v19, %v5133_v54  ;;  %v5032_v0 = vadd.f32 %v5031_v1, %v5030_v39  ;;  %v5158_v44 = vadd.f32 %v5157_v16, %v5156_v41 }
 0x4b6   : > { %v6497_v15 = vunpack.c.l.b16 %v6481_v62  ;;  %v6583_v29 = vunpack.c.l.b16 %v6567_v63  ;;  %v5115_v18 = vrot.slane %v5114_v14, 1  ;;  %v5074_v42 = vadd.f32 %v5073_v59, %v5072_v31 }
 0x4b7   : > { %v5005_v20 = vadd.f32 %v5004_v21, %v5003_v51  ;;  %v5136_v47 = vrot.slane %v5135_v9, 1  ;;  %v6016_v52 = vmul.f32 0.015625, %v5032_v0  ;;  %v6224_v56 = vpack.c.bf16 %v6017_v48, %v6017_v48 }
 0x4b8   : > { %v6597_v5 = vsel %vm6139_vm10, %v6583_v29, %v10523_v58  ;;  %v6511_v11 = vsel %vm6139_vm10, %v6497_v15, %v10528_v32  ;;  %v5116_v32 = vadd.f32 %v5115_v18, %v5114_v14  ;;  %v6022_v54 = vmul.f32 0.015625, %v5158_v44 }
 0x4b9   : > { %v5006_v55 = vrot.slane %v5005_v20, 4  ;;  %v6512_v43 = vpack.c.b16 %v6511_v11, %v9676_v57  ;;  %v6598_v50 = vpack.c.b16 %v6597_v5, %v9680_v10  ;;  %v5137_v25 = vadd.f32 %v5136_v47, %v5135_v9 }
 0x4ba   : > { %v6018_v57 = vmul.f32 0.015625, %v5074_v42  ;;  %v6223_v39 = vpack.c.bf16 %v6016_v52, %v6016_v52  ;;  %v6020_v35 = vmul.f32 0.015625, %v5116_v32  ;;  %v6226_v6 = vpack.c.bf16 %v6019_v23, %v6019_v23  ;;  %v8382_v32 = vld [vmem:[%s10718_s4] ss:$0 sm:$0xff] }
 0x4bb   : > { %v5007_v13 = vadd.f32 %v5006_v55, %v5005_v20  ;;  %8058 = vmatmul.msk.bf16.vlgmr.msrb.gmra.mxu3 %vm4654_vm3, %v6512_v43  ;;  %v6021_v27 = vmul.f32 0.015625, %v5137_v25  ;;  %v6237_v49 = vpack.c.bf16 %v10579_v45, %v10579_v45  ;;  %v6382_v26 = vperm.slane %v6224_v56, 0 }
 0x4bc   : > { %v6225_v38 = vpack.c.bf16 %v6018_v57, %v6018_v57  ;;  %v6381_v28 = vperm.slane %v6223_v39, 0  ;;  %v6227_v60 = vpack.c.bf16 %v6020_v35, %v6020_v35  ;;  %v6229_v53 = vpack.c.bf16 %v6022_v54, %v6022_v54 }
 0x4bd   : > { %v5008_v58 = vrot.slane %v5007_v13, 2  ;;  %v6228_v33 = vpack.c.bf16 %v6021_v27, %v6021_v27  ;;  %v6384_v19 = vperm.slane %v6226_v6, 0  ;;  %v6395_v21 = vperm.slane %v6237_v49, 0 }
 0x4be   : > { %v6383_v4 = vperm.slane %v6225_v38, 0  ;;  %v6397_v31 = vunpack.c.l.b16 %v6381_v28  ;;  %v6385_v63 = vperm.slane %v6227_v60, 0  ;;  %v6398_v51 = vunpack.c.l.b16 %v6382_v26 }
 0x4bf   : > { %v5009_v36 = vadd.f32 %v5008_v58, %v5007_v13  ;;  %v6386_v1 = vperm.slane %v6228_v33, 0  ;;  %v6387_v29 = vperm.slane %v6229_v53, 0  ;;  %v6400_v20 = vunpack.c.l.b16 %v6384_v19 }
 0x4c0   : > { %v6399_v15 = vunpack.c.l.b16 %v6383_v4  ;;  %v6401_v9 = vunpack.c.l.b16 %v6385_v63  ;;  %v6411_v5 = vunpack.c.l.b16 %v6395_v21 }
 0x4c1   : > { %v5010_v10 = vrot.slane %v5009_v36, 1  ;;  %v6402_v41 = vunpack.c.l.b16 %v6386_v1  ;;  %v6403_v43 = vunpack.c.l.b16 %v6387_v29 }
 0x4c2   : > { %v6425_v18 = vsel %vm6139_vm10, %v6411_v5, %v10487_v37 }
 0x4c3   : > { %v5011_v7 = vadd.f32 %v5010_v10, %v5009_v36 }
 0x4c5   : > { %v6015_v46 = vmul.f32 0.015625, %v5011_v7  ;;  %8063 = vmatmul.msk.bf16.vlgmr.msra.gmra.mxu1 %vm4654_vm3, %v6598_v50 }
 0x4c7   : > { %v6148_v17 = vsel %vm6127_vm4, %v6016_v52, %v6015_v46  ;;  %v6222_v61 = vpack.c.bf16 %v6015_v46, %v6015_v46 }
 0x4c8   : > { %v6149_v8 = vsel %vm6129_vm5, %v6017_v48, %v6148_v17 }
 0x4c9   : > { %v6150_v2 = vsel %vm6131_vm6, %v6018_v57, %v6149_v8  ;;  %v6380_v40 = vperm.slane %v6222_v61, 0 }
 0x4ca   : > { %v6151_v62 = vsel %vm6133_vm7, %v6019_v23, %v6150_v2 }
 0x4cb   : > { %v6152_v45 = vsel %vm6135_vm8, %v6020_v35, %v6151_v62  ;;  %v6396_v3 = vunpack.c.l.b16 %v6380_v40 }
 0x4cc   : > { %v6153_v24 = vsel %vm6137_vm9, %v6021_v27, %v6152_v45 }
 0x4cd   : > { %v6154_v30 = vsel %vm6139_vm10, %v6022_v54, %v6153_v24  ;;  %v6412_v14 = vsel %vm6127_vm4, %v6397_v31, %v6396_v3 }
 0x4ce   : > { %6200 = vst.msk [vmem:[%s9631_s9 + $0x10] sm:$0xff] %vm4654_vm3, %v6154_v30  ;;  %v6413_v59 = vsel %vm6129_vm5, %v6398_v51, %v6412_v14 }
 0x4cf   : > { %v6414_v11 = vsel %vm6131_vm6, %v6399_v15, %v6413_v59 }
 0x4d0   : > { %v6415_v55 = vsel %vm6133_vm7, %v6400_v20, %v6414_v11 }
 0x4d1   : > { %v6416_v50 = vsel %vm6135_vm8, %v6401_v9, %v6415_v55 }
 0x4d2   : > { %v6417_v0 = vsel %vm6137_vm9, %v6402_v41, %v6416_v50 }
 0x4d3   : > { %v6418_v34 = vsel %vm6139_vm10, %v6403_v43, %v6417_v0 }
 0x4d4   : > { %v6426_v13 = vpack.c.b16 %v6425_v18, %v6418_v34 }
 0x4d6   : > { %8053 = vmatmul.msk.bf16.vlgmr.msrb.gmra.mxu2 %vm4654_vm3, %v6426_v13 }
 0x532   : > { %v6359_v12 = vpop.f32.mrf.mxu1 }
 0x53a   : > { %v6361_v47 = vpop.f32.mrf.mxu1 }
 0x53e   : > { %v6531_v42 = vpop.f32.mrf.mxu3 }
 0x542   : > { %v6617_v52 = vpop.f32.mrf.mxu1 }
 0x546   : > { %v6533_v57 = vpop.f32.mrf.mxu3 }
 0x54a   : > { %v6619_v10 = vpop.f32.mrf.mxu1 }
 0x559   : > { %v6445_v16 = vpop.f32.mrf.mxu2 }
 0x55a   : > { %v6622_v58 = vadd.f32 %v6445_v16, %v6359_v12 }
 0x55c   : > { %v6623_v22 = vadd.f32 %v6622_v58, %v6531_v42 }
 0x55e   : > { %v6624_v36 = vadd.f32 %v6623_v22, %v6617_v52 }
 0x560   : > { %v6632_v48 = vadd.f32 %v8382_v32, %v6624_v36 }
 0x561   : > { %v6447_v37 = vpop.f32.mrf.mxu2 }
 0x562   : > { %6634 = vst [vmem:[%s253_s11] sm:$0xff] %v6632_v48  ;;  %v6625_v25 = vadd.f32 %v6447_v37, %v6361_v47 }
 0x564   : > { %v6626_v44 = vadd.f32 %v6625_v25, %v6533_v57 }
 0x566   : > { %v6627_v39 = vadd.f32 %v6626_v44, %v6619_v10 }
 0x568   : > { %v6633_v23 = vadd.f32 %v8382_v32, %v6627_v39 }
 0x56a   : > { %6635 = vst [vmem:[%s253_s11 + $0x8] sm:$0xff] %v6633_v23 }
 0x56b   : > { %8416 = shalt.err (!%p8413_p4)
}
 0x56c   : > { %s8454_s17 = smov 128   ;;  %s8455_s28 = smov 8  }
 0x56d   : > { %8339 = dma.vmem_to_hbm [thread:$0]  (%p8529_p5), %s6658_s12, 256, %s6660_s13, %s6642_s25, %s8454_s17, %s8454_s17, %s8455_s28  }
 0x56e PF: > { %p8345_p7 = scmp.ge.s32.totalorder %s8451_s24, 2  ;;  %s6682_s29 = sand.u32 1, %s8439_s21  }
 0x56f   : > { %s6683_s9 = scalar_lea.sflag [#allocation3], %s6682_s29 }
 0x570   : > { %p8342_p8 = pnand %p8345_p7, %p8533_p6 }
 0x572   : > { %p8343_p9 = pneg %p8342_p8 }
 0x574   : > { %8434 = dma.done.wait (%p8343_p9), %s6683_s9, 256  }
 0x575   : > { %8436 = vsyncadd (%p8343_p9), %s6683_s9, 4294967040  ;;  %p17_p10 = scmp.ge.s32.totalorder %s8516_s27, 4   ;;  %s10723_s21 = smov %s8443_s22 }
 0x576   : > { %s10724_s22 = smov %s8447_s23  ;;  %s10725_s23 = smov %s8527_s30 }
 0x577   : > { %s10726_s24 = smov %s8516_s27  ;;  %19 = sbr.rel (!%p17_p10) target bundleno = 3 (0x3), region = 87 }
 0x57c   :  { %6689 = vsyncpa [#allocation3], 1 }
 0x57d   :  { %6691 = vsyncpa [#allocation3 + $0x1], 1 }

</bundles_post_ra>
